<compile_context>
chip_gen: v5e
topology: v5e:2x2
jax: 0.10.0
libtpu: 0.0.40
codegen_flags: <defaults>
</compile_context>

<pallas_src>
import jax
import jax.numpy as jnp
from jax.experimental import pallas as pl
from jax.experimental.pallas import tpu as pltpu

EPS = 1e-5
DIMS = [9, 500, 1000, 200, 100, 1]  # fixed by the module's __init__

# Row layout of the packed small-operand slab (16, 1024) f32:
#   rows 0..8 : w1 (9, 500) in cols 0:500   (BN0-gamma folded, kept f32 for the VPU)
ROW_B1 = 9    # b1 (500)  cols 0:500
ROW_B2 = 10   # b2 (1000) cols 0:1000
ROW_B3 = 11   # b3 (200)  cols 0:200
ROW_B4 = 12   # b4 (100)  cols 0:100
ROW_W5 = 13   # w5 row (100) cols 0:100
ROW_B5 = 14   # b5 (1)   col 0


def complex_model_kernel(x_ref, packed_ref, w4_ref, w2_hbm, w3_hbm,
                         o_ref, w2_vmem, w3_vmem, sem):
    # Kick off the two large weight copies immediately so they overlap the
    # BN0 / layer-1 (VPU) / BN1 compute below.
    cp_w2 = pltpu.make_async_copy(w2_hbm, w2_vmem, sem.at[0])
    cp_w3 = pltpu.make_async_copy(w3_hbm, w3_vmem, sem.at[1])
    cp_w2.start()
    cp_w3.start()

    def bn_normalize(h, out_dtype=jnp.float32):
        # One-pass training-mode BatchNorm1d normalization (gamma/beta folded
        # into the following Linear). var = E[x^2] - mean^2, clamped at 0 to
        # guard cancellation; eps guards the rsqrt.
        inv_n = 1.0 / h.shape[0]
        mean = jnp.sum(h, axis=0, keepdims=True) * inv_n
        msq = jnp.sum(h * h, axis=0, keepdims=True) * inv_n
        var = jnp.maximum(msq - mean * mean, 0.0)
        return ((h - mean) * jax.lax.rsqrt(var + EPS)).astype(out_dtype)

    x = x_ref[...].astype(jnp.float32)              # (B, 9)
    pk = packed_ref[...]                            # (16, 1024) f32, single read

    # ---- bn0 -> lin1 (9 -> 500) -> relu, on the VPU as 9 broadcast MACs ----
    xn = bn_normalize(x)                            # (B, 9) f32
    w1 = pk[0:9, 0:500]                             # (9, 500)
    b1 = pk[ROW_B1:ROW_B1 + 1, 0:500]               # (1, 500)
    acc = xn[:, 0:1] * w1[0:1, :]
    for k in range(1, 9):                           # fully unrolled, static
        acc = acc + xn[:, k:k + 1] * w1[k:k + 1, :]
    h = jnp.maximum(acc + b1, 0.0)                  # (B, 500) f32

    # ---- bn1 -> lin2 (500 -> 1000) -> relu (MXU, bf16 operands, f32 acc) ----
    hn = bn_normalize(h, jnp.bfloat16)
    cp_w2.wait()                                    # w2 now resident in VMEM
    h = jnp.dot(hn, w2_vmem[...], preferred_element_type=jnp.float32)
    h = jnp.maximum(h + pk[ROW_B2:ROW_B2 + 1, 0:1000], 0.0)

    # ---- bn2 -> lin3 (1000 -> 200) -> relu ----
    hn = bn_normalize(h, jnp.bfloat16)
    cp_w3.wait()                                    # w3 now resident in VMEM
    h = jnp.dot(hn, w3_vmem[...], preferred_element_type=jnp.float32)
    h = jnp.maximum(h + pk[ROW_B3:ROW_B3 + 1, 0:200], 0.0)

    # ---- bn3 -> lin4 (200 -> 100) -> relu ----
    hn = bn_normalize(h, jnp.bfloat16)
    h = jnp.dot(hn, w4_ref[...], preferred_element_type=jnp.float32)
    h = jnp.maximum(h + pk[ROW_B4:ROW_B4 + 1, 0:100], 0.0)

    # ---- bn4 -> lin5 (100 -> 1) -> sigmoid, as a VPU multiply + lane reduce ----
    hn = bn_normalize(h)                            # (B, 100) f32
    w5 = pk[ROW_W5:ROW_W5 + 1, 0:100]               # (1, 100)
    b5 = pk[ROW_B5:ROW_B5 + 1, 0:1]                 # (1, 1)
    logits = jnp.sum(hn * w5, axis=-1, keepdims=True) + b5
    o_ref[...] = jax.nn.sigmoid(logits)             # (B, 1); squeeze in wrapper


def fold_params(params, weight_dtype=jnp.bfloat16):
    """One-time fold of BN affine into the following Linear + operand packing.

    BN(x) @ W + b = xhat @ (gamma[:,None] * W) + (beta @ W + b).
    Large weights (w2/w3/w4) are cast to bf16; the small operands are packed into
    a single (16, 1024) f32 slab so the kernel sees one DMA instead of seven.
    """
    def fold(i):
        g = params[f"g{i-1}"]      # (1, fan_in)
        be = params[f"be{i-1}"]    # (1, fan_in)
        w = params[f"w{i}"]        # (fan_in, fan_out)
        b = params[f"b{i}"]        # (1, fan_out)
        return w * g.reshape(-1, 1), be @ w + b

    w1, b1 = fold(1)
    w2, b2 = fold(2)
    w3, b3 = fold(3)
    w4, b4 = fold(4)
    w5, b5 = fold(5)

    packed = jnp.zeros((16, 1024), jnp.float32)
    packed = packed.at[0:9, 0:500].set(w1)
    packed = packed.at[ROW_B1, 0:500].set(b1[0])
    packed = packed.at[ROW_B2, 0:1000].set(b2[0])
    packed = packed.at[ROW_B3, 0:200].set(b3[0])
    packed = packed.at[ROW_B4, 0:100].set(b4[0])
    packed = packed.at[ROW_W5, 0:100].set(w5[:, 0])
    packed = packed.at[ROW_B5, 0].set(b5[0, 0])

    return {
        "packed": packed,
        "w2": w2.astype(weight_dtype),   # (500, 1000) streamed via manual DMA
        "w3": w3.astype(weight_dtype),   # (1000, 200) streamed via manual DMA
        "w4": w4.astype(weight_dtype),   # (200, 100)  small, prologue DMA
    }


def _vmem_limit_bytes(batch):
    """Shape-derived, generation-aware scoped-VMEM budget."""
    # Padded weight-resident bytes: w2 (512x1024) + w3 (1008x256) + w4 (208x128)
    # bf16 + the (16,1024) f32 packed slab, plus 1 MiB for x/out/misc slabs.
    fixed = (512 * 1024 + 1008 * 256 + 208 * 128) * 2 + 16 * 1024 * 4 + (1 << 20)
    # Per-row activation slabs: f32 (128+512+1024+256+128) + bf16 MXU copies
    # (512+1024+256); x2 for compiler temporaries.
    per_row = 2 * (4 * (128 + 512 + 1024 + 256 + 128) + 2 * (512 + 1024 + 256))
    need = fixed + batch * per_row + (2 << 20)
    try:
        phys = int(pltpu.get_tpu_info().vmem_capacity_bytes)
    except Exception:
        phys = 64 << 20          # smallest per-TC VMEM across v5e/v6e/v7x
    ceiling = int(phys * 0.85)   # explicit headroom below physical VMEM
    return max(min(need, ceiling), 4 << 20)


@jax.jit
def complex_model_forward(x, folded):
    """x: (B, 9) float. folded: output of fold_params. Returns (B,)."""
    B = x.shape[0]
    x = x.astype(jnp.float32)

    flops = 2 * B * sum(DIMS[i] * DIMS[i + 1] for i in range(len(DIMS) - 1))
    weight_bytes = (
        folded["w2"].size * 2 + folded["w3"].size * 2 + folded["w4"].size * 2
        + folded["packed"].size * 4
    )
    bytes_accessed = weight_bytes + B * 9 * 4 + B * 4
    transcendentals = sum(DIMS[:-1]) + B   # per-feature rsqrt (5 BNs) + sigmoid

    vmem = pl.BlockSpec(memory_space=pltpu.MemorySpace.VMEM)
    anyspace = pl.BlockSpec(memory_space=pl.ANY)

    out = pl.pallas_call(
        complex_model_kernel,
        out_shape=jax.ShapeDtypeStruct((B, 1), jnp.float32),
        in_specs=[vmem, vmem, vmem, anyspace, anyspace],
        out_specs=vmem,
        scratch_shapes=[
            pltpu.VMEM((500, 1000), jnp.bfloat16),   # w2 landing buffer
            pltpu.VMEM((1000, 200), jnp.bfloat16),   # w3 landing buffer
            pltpu.SemaphoreType.DMA((2,)),
        ],
        compiler_params=pltpu.CompilerParams(
            vmem_limit_bytes=_vmem_limit_bytes(B)),
        cost_estimate=pl.CostEstimate(
            flops=flops,
            transcendentals=transcendentals,
            bytes_accessed=bytes_accessed,
        ),
    )(x, folded["packed"], folded["w4"], folded["w2"], folded["w3"])
    return out[:, 0]  # x.squeeze(-1)


def init_params(key):
    """PyTorch-style Linear init U(-1/sqrt(fan_in), 1/sqrt(fan_in)); BN affine is
    randomized (instead of gamma=1/beta=0) so the fold path is actually exercised
    against the reference."""
    params = {}
    keys = jax.random.split(key, 4 * (len(DIMS) - 1))
    for i in range(len(DIMS) - 1):
        fan_in, fan_out = DIMS[i], DIMS[i + 1]
        bound = 1.0 / (fan_in ** 0.5)
        params[f"w{i+1}"] = jax.random.uniform(
            keys[4 * i], (fan_in, fan_out), jnp.float32, -bound, bound)
        params[f"b{i+1}"] = jax.random.uniform(
            keys[4 * i + 1], (1, fan_out), jnp.float32, -bound, bound)
        params[f"g{i}"] = jax.random.uniform(
            keys[4 * i + 2], (1, fan_in), jnp.float32, 0.5, 1.5)
        params[f"be{i}"] = jax.random.uniform(
            keys[4 * i + 3], (1, fan_in), jnp.float32, -0.5, 0.5)
    return params


def reference_forward(x, params):
    """Pure-JAX f32 reference of the original PyTorch forward (training-mode BN)."""
    h = x
    for i in range(1, 6):
        g, be = params[f"g{i-1}"], params[f"be{i-1}"]
        mean = jnp.mean(h, axis=0, keepdims=True)
        var = jnp.mean((h - mean) ** 2, axis=0, keepdims=True)
        h = g * (h - mean) * jax.lax.rsqrt(var + EPS) + be
        h = h @ params[f"w{i}"] + params[f"b{i}"]
        if i < 5:
            h = jnp.maximum(h, 0.0)
    return jax.nn.sigmoid(h)[:, 0]


if __name__ == "__main__":
    key = jax.random.PRNGKey(0)
    k_params, k_x = jax.random.split(key)

    params = init_params(k_params)
    folded = fold_params(params)        # one-time BN-affine fold + packing

    B = 8                               # small batch; feature dim is 9 per the module
    x = jax.random.normal(k_x, (B, 9), jnp.float32)

    y = complex_model_forward(x, folded)
    jax.block_until_ready(y)

    assert y.shape == (B,), y.shape
    assert bool(jnp.all(jnp.isfinite(y))), "non-finite output"
    assert bool(jnp.all((y >= 0.0) & (y <= 1.0))), "sigmoid output out of range"

    # Correctness vs f32 reference (bf16 hidden weights -> loose tolerance on sigmoid).
    y_ref = reference_forward(x, params)
    assert bool(jnp.max(jnp.abs(y - y_ref)) < 5e-2), "mismatch vs pure-JAX reference"

    print("KERNEL_OK")
</pallas_src>

<mosaic_0001>
module attributes {stable_mosaic.version = 11 : i64} {
  func.func @complex_model_kernel(%arg0: memref<8x9xf32, #tpu.memory_space<vmem>>, %arg1: memref<16x1024xf32, #tpu.memory_space<vmem>>, %arg2: memref<200x100xbf16, #tpu.memory_space<vmem>>, %arg3: memref<500x1000xbf16, #tpu.memory_space<any>>, %arg4: memref<1000x200xbf16, #tpu.memory_space<any>>, %arg5: memref<8x1xf32, #tpu.memory_space<vmem>>, %arg6: memref<500x1000xbf16, #tpu.memory_space<vmem>>, %arg7: memref<1000x200xbf16, #tpu.memory_space<vmem>>, %arg8: memref<2x!tpu.dma_semaphore, #tpu.memory_space<semaphore_mem>>) attributes {dimension_semantics = [], scalar_prefetch = 0 : i64, scratch_operands = 3 : i64, tpu.core_type = #tpu.core_type<tc>} {
    %c0_i32 = arith.constant 0 : i32
    %0 = tpu.memref_slice %arg8[%c0_i32] : memref<2x!tpu.dma_semaphore, #tpu.memory_space<semaphore_mem>> -> memref<1x!tpu.dma_semaphore, #tpu.memory_space<semaphore_mem>>
    %1 = tpu.memref_squeeze %0 : memref<1x!tpu.dma_semaphore, #tpu.memory_space<semaphore_mem>> -> memref<!tpu.dma_semaphore, #tpu.memory_space<semaphore_mem>>
    tpu.enqueue_dma source(%arg3 : memref<500x1000xbf16, #tpu.memory_space<any>>) target(%arg6 : memref<500x1000xbf16, #tpu.memory_space<vmem>>) target_semaphore(%1 : memref<!tpu.dma_semaphore, #tpu.memory_space<semaphore_mem>>)
    %c1_i32 = arith.constant 1 : i32
    %2 = tpu.memref_slice %arg8[%c1_i32] : memref<2x!tpu.dma_semaphore, #tpu.memory_space<semaphore_mem>> -> memref<1x!tpu.dma_semaphore, #tpu.memory_space<semaphore_mem>>
    %3 = tpu.memref_squeeze %2 : memref<1x!tpu.dma_semaphore, #tpu.memory_space<semaphore_mem>> -> memref<!tpu.dma_semaphore, #tpu.memory_space<semaphore_mem>>
    tpu.enqueue_dma source(%arg4 : memref<1000x200xbf16, #tpu.memory_space<any>>) target(%arg7 : memref<1000x200xbf16, #tpu.memory_space<vmem>>) target_semaphore(%3 : memref<!tpu.dma_semaphore, #tpu.memory_space<semaphore_mem>>)
    %c0 = arith.constant 0 : index
    %c0_0 = arith.constant 0 : index
    %4 = vector.load %arg0[%c0, %c0_0] : memref<8x9xf32, #tpu.memory_space<vmem>>, vector<8x9xf32>
    %c0_1 = arith.constant 0 : index
    %c0_2 = arith.constant 0 : index
    %5 = vector.load %arg1[%c0_1, %c0_2] : memref<16x1024xf32, #tpu.memory_space<vmem>>, vector<16x1024xf32>
    %cst = arith.constant dense<0.000000e+00> : vector<9xf32>
    %6 = vector.multi_reduction <add>, %4, %cst [0] : vector<8x9xf32> to vector<9xf32>
    %7 = vector.shape_cast %6 : vector<9xf32> to vector<1x9xf32>
    %cst_3 = arith.constant 1.250000e-01 : f32
    %8 = vector.broadcast %cst_3 : f32 to vector<1x9xf32>
    %9 = arith.mulf %7, %8 : vector<1x9xf32>
    %10 = arith.mulf %4, %4 : vector<8x9xf32>
    %cst_4 = arith.constant dense<0.000000e+00> : vector<9xf32>
    %11 = vector.multi_reduction <add>, %10, %cst_4 [0] : vector<8x9xf32> to vector<9xf32>
    %12 = vector.shape_cast %11 : vector<9xf32> to vector<1x9xf32>
    %cst_5 = arith.constant 1.250000e-01 : f32
    %13 = vector.broadcast %cst_5 : f32 to vector<1x9xf32>
    %14 = arith.mulf %12, %13 : vector<1x9xf32>
    %15 = arith.mulf %9, %9 : vector<1x9xf32>
    %16 = arith.subf %14, %15 : vector<1x9xf32>
    %cst_6 = arith.constant 0.000000e+00 : f32
    %17 = vector.broadcast %cst_6 : f32 to vector<1x9xf32>
    %18 = arith.maximumf %16, %17 : vector<1x9xf32>
    %19 = vector.broadcast %9 : vector<1x9xf32> to vector<8x9xf32>
    %20 = arith.subf %4, %19 : vector<8x9xf32>
    %cst_7 = arith.constant 9.99999974E-6 : f32
    %21 = vector.broadcast %cst_7 : f32 to vector<1x9xf32>
    %22 = arith.addf %18, %21 : vector<1x9xf32>
    %23 = math.rsqrt %22 : vector<1x9xf32>
    %24 = vector.broadcast %23 : vector<1x9xf32> to vector<8x9xf32>
    %25 = arith.mulf %20, %24 : vector<8x9xf32>
    %26 = vector.extract_strided_slice %5 {offsets = [0, 0], sizes = [9, 500], strides = [1, 1]} : vector<16x1024xf32> to vector<9x500xf32>
    %27 = vector.extract_strided_slice %5 {offsets = [9, 0], sizes = [1, 500], strides = [1, 1]} : vector<16x1024xf32> to vector<1x500xf32>
    %28 = vector.extract_strided_slice %25 {offsets = [0, 0], sizes = [8, 1], strides = [1, 1]} : vector<8x9xf32> to vector<8x1xf32>
    %29 = vector.extract_strided_slice %26 {offsets = [0, 0], sizes = [1, 500], strides = [1, 1]} : vector<9x500xf32> to vector<1x500xf32>
    %30 = vector.broadcast %28 : vector<8x1xf32> to vector<8x500xf32>
    %31 = vector.broadcast %29 : vector<1x500xf32> to vector<8x500xf32>
    %32 = arith.mulf %30, %31 : vector<8x500xf32>
    %33 = vector.extract_strided_slice %25 {offsets = [0, 1], sizes = [8, 1], strides = [1, 1]} : vector<8x9xf32> to vector<8x1xf32>
    %34 = vector.extract_strided_slice %26 {offsets = [1, 0], sizes = [1, 500], strides = [1, 1]} : vector<9x500xf32> to vector<1x500xf32>
    %35 = vector.broadcast %33 : vector<8x1xf32> to vector<8x500xf32>
    %36 = vector.broadcast %34 : vector<1x500xf32> to vector<8x500xf32>
    %37 = arith.mulf %35, %36 : vector<8x500xf32>
    %38 = arith.addf %32, %37 : vector<8x500xf32>
    %39 = vector.extract_strided_slice %25 {offsets = [0, 2], sizes = [8, 1], strides = [1, 1]} : vector<8x9xf32> to vector<8x1xf32>
    %40 = vector.extract_strided_slice %26 {offsets = [2, 0], sizes = [1, 500], strides = [1, 1]} : vector<9x500xf32> to vector<1x500xf32>
    %41 = vector.broadcast %39 : vector<8x1xf32> to vector<8x500xf32>
    %42 = vector.broadcast %40 : vector<1x500xf32> to vector<8x500xf32>
    %43 = arith.mulf %41, %42 : vector<8x500xf32>
    %44 = arith.addf %38, %43 : vector<8x500xf32>
    %45 = vector.extract_strided_slice %25 {offsets = [0, 3], sizes = [8, 1], strides = [1, 1]} : vector<8x9xf32> to vector<8x1xf32>
    %46 = vector.extract_strided_slice %26 {offsets = [3, 0], sizes = [1, 500], strides = [1, 1]} : vector<9x500xf32> to vector<1x500xf32>
    %47 = vector.broadcast %45 : vector<8x1xf32> to vector<8x500xf32>
    %48 = vector.broadcast %46 : vector<1x500xf32> to vector<8x500xf32>
    %49 = arith.mulf %47, %48 : vector<8x500xf32>
    %50 = arith.addf %44, %49 : vector<8x500xf32>
    %51 = vector.extract_strided_slice %25 {offsets = [0, 4], sizes = [8, 1], strides = [1, 1]} : vector<8x9xf32> to vector<8x1xf32>
    %52 = vector.extract_strided_slice %26 {offsets = [4, 0], sizes = [1, 500], strides = [1, 1]} : vector<9x500xf32> to vector<1x500xf32>
    %53 = vector.broadcast %51 : vector<8x1xf32> to vector<8x500xf32>
    %54 = vector.broadcast %52 : vector<1x500xf32> to vector<8x500xf32>
    %55 = arith.mulf %53, %54 : vector<8x500xf32>
    %56 = arith.addf %50, %55 : vector<8x500xf32>
    %57 = vector.extract_strided_slice %25 {offsets = [0, 5], sizes = [8, 1], strides = [1, 1]} : vector<8x9xf32> to vector<8x1xf32>
    %58 = vector.extract_strided_slice %26 {offsets = [5, 0], sizes = [1, 500], strides = [1, 1]} : vector<9x500xf32> to vector<1x500xf32>
    %59 = vector.broadcast %57 : vector<8x1xf32> to vector<8x500xf32>
    %60 = vector.broadcast %58 : vector<1x500xf32> to vector<8x500xf32>
    %61 = arith.mulf %59, %60 : vector<8x500xf32>
    %62 = arith.addf %56, %61 : vector<8x500xf32>
    %63 = vector.extract_strided_slice %25 {offsets = [0, 6], sizes = [8, 1], strides = [1, 1]} : vector<8x9xf32> to vector<8x1xf32>
    %64 = vector.extract_strided_slice %26 {offsets = [6, 0], sizes = [1, 500], strides = [1, 1]} : vector<9x500xf32> to vector<1x500xf32>
    %65 = vector.broadcast %63 : vector<8x1xf32> to vector<8x500xf32>
    %66 = vector.broadcast %64 : vector<1x500xf32> to vector<8x500xf32>
    %67 = arith.mulf %65, %66 : vector<8x500xf32>
    %68 = arith.addf %62, %67 : vector<8x500xf32>
    %69 = vector.extract_strided_slice %25 {offsets = [0, 7], sizes = [8, 1], strides = [1, 1]} : vector<8x9xf32> to vector<8x1xf32>
    %70 = vector.extract_strided_slice %26 {offsets = [7, 0], sizes = [1, 500], strides = [1, 1]} : vector<9x500xf32> to vector<1x500xf32>
    %71 = vector.broadcast %69 : vector<8x1xf32> to vector<8x500xf32>
    %72 = vector.broadcast %70 : vector<1x500xf32> to vector<8x500xf32>
    %73 = arith.mulf %71, %72 : vector<8x500xf32>
    %74 = arith.addf %68, %73 : vector<8x500xf32>
    %75 = vector.extract_strided_slice %25 {offsets = [0, 8], sizes = [8, 1], strides = [1, 1]} : vector<8x9xf32> to vector<8x1xf32>
    %76 = vector.extract_strided_slice %26 {offsets = [8, 0], sizes = [1, 500], strides = [1, 1]} : vector<9x500xf32> to vector<1x500xf32>
    %77 = vector.broadcast %75 : vector<8x1xf32> to vector<8x500xf32>
    %78 = vector.broadcast %76 : vector<1x500xf32> to vector<8x500xf32>
    %79 = arith.mulf %77, %78 : vector<8x500xf32>
    %80 = arith.addf %74, %79 : vector<8x500xf32>
    %81 = vector.broadcast %27 : vector<1x500xf32> to vector<8x500xf32>
    %82 = arith.addf %80, %81 : vector<8x500xf32>
    %cst_8 = arith.constant 0.000000e+00 : f32
    %83 = vector.broadcast %cst_8 : f32 to vector<8x500xf32>
    %84 = arith.maximumf %82, %83 : vector<8x500xf32>
    %cst_9 = arith.constant dense<0.000000e+00> : vector<500xf32>
    %85 = vector.multi_reduction <add>, %84, %cst_9 [0] : vector<8x500xf32> to vector<500xf32>
    %86 = vector.shape_cast %85 : vector<500xf32> to vector<1x500xf32>
    %cst_10 = arith.constant 1.250000e-01 : f32
    %87 = vector.broadcast %cst_10 : f32 to vector<1x500xf32>
    %88 = arith.mulf %86, %87 : vector<1x500xf32>
    %89 = arith.mulf %84, %84 : vector<8x500xf32>
    %cst_11 = arith.constant dense<0.000000e+00> : vector<500xf32>
    %90 = vector.multi_reduction <add>, %89, %cst_11 [0] : vector<8x500xf32> to vector<500xf32>
    %91 = vector.shape_cast %90 : vector<500xf32> to vector<1x500xf32>
    %cst_12 = arith.constant 1.250000e-01 : f32
    %92 = vector.broadcast %cst_12 : f32 to vector<1x500xf32>
    %93 = arith.mulf %91, %92 : vector<1x500xf32>
    %94 = arith.mulf %88, %88 : vector<1x500xf32>
    %95 = arith.subf %93, %94 : vector<1x500xf32>
    %cst_13 = arith.constant 0.000000e+00 : f32
    %96 = vector.broadcast %cst_13 : f32 to vector<1x500xf32>
    %97 = arith.maximumf %95, %96 : vector<1x500xf32>
    %98 = vector.broadcast %88 : vector<1x500xf32> to vector<8x500xf32>
    %99 = arith.subf %84, %98 : vector<8x500xf32>
    %cst_14 = arith.constant 9.99999974E-6 : f32
    %100 = vector.broadcast %cst_14 : f32 to vector<1x500xf32>
    %101 = arith.addf %97, %100 : vector<1x500xf32>
    %102 = math.rsqrt %101 : vector<1x500xf32>
    %103 = vector.broadcast %102 : vector<1x500xf32> to vector<8x500xf32>
    %104 = arith.mulf %99, %103 : vector<8x500xf32>
    %105 = arith.truncf %104 : vector<8x500xf32> to vector<8x500xbf16>
    %c0_i32_15 = arith.constant 0 : i32
    %106 = tpu.memref_slice %arg8[%c0_i32_15] : memref<2x!tpu.dma_semaphore, #tpu.memory_space<semaphore_mem>> -> memref<1x!tpu.dma_semaphore, #tpu.memory_space<semaphore_mem>>
    %107 = tpu.memref_squeeze %106 : memref<1x!tpu.dma_semaphore, #tpu.memory_space<semaphore_mem>> -> memref<!tpu.dma_semaphore, #tpu.memory_space<semaphore_mem>>
    tpu.wait_dma2 semaphore(%107 : memref<!tpu.dma_semaphore, #tpu.memory_space<semaphore_mem>>) src(%arg3 : memref<500x1000xbf16, #tpu.memory_space<any>>) dst(%arg6 : memref<500x1000xbf16, #tpu.memory_space<vmem>>)
    %c0_16 = arith.constant 0 : index
    %c0_17 = arith.constant 0 : index
    %108 = vector.load %arg6[%c0_16, %c0_17] : memref<500x1000xbf16, #tpu.memory_space<vmem>>, vector<500x1000xbf16>
    %cst_18 = arith.constant dense<0.000000e+00> : vector<8x1000xf32>
    %109 = tpu.matmul %105, %108, %cst_18 {dimension_numbers = #tpu.dot_dimension_numbers<[1], [0], [0], [1], [0, 0, 1, 1], [], []>} : vector<8x500xbf16>, vector<500x1000xbf16>, vector<8x1000xf32> -> vector<8x1000xf32>
    %110 = vector.extract_strided_slice %5 {offsets = [10, 0], sizes = [1, 1000], strides = [1, 1]} : vector<16x1024xf32> to vector<1x1000xf32>
    %111 = vector.broadcast %110 : vector<1x1000xf32> to vector<8x1000xf32>
    %112 = arith.addf %109, %111 : vector<8x1000xf32>
    %cst_19 = arith.constant 0.000000e+00 : f32
    %113 = vector.broadcast %cst_19 : f32 to vector<8x1000xf32>
    %114 = arith.maximumf %112, %113 : vector<8x1000xf32>
    %cst_20 = arith.constant dense<0.000000e+00> : vector<1000xf32>
    %115 = vector.multi_reduction <add>, %114, %cst_20 [0] : vector<8x1000xf32> to vector<1000xf32>
    %116 = vector.shape_cast %115 : vector<1000xf32> to vector<1x1000xf32>
    %cst_21 = arith.constant 1.250000e-01 : f32
    %117 = vector.broadcast %cst_21 : f32 to vector<1x1000xf32>
    %118 = arith.mulf %116, %117 : vector<1x1000xf32>
    %119 = arith.mulf %114, %114 : vector<8x1000xf32>
    %cst_22 = arith.constant dense<0.000000e+00> : vector<1000xf32>
    %120 = vector.multi_reduction <add>, %119, %cst_22 [0] : vector<8x1000xf32> to vector<1000xf32>
    %121 = vector.shape_cast %120 : vector<1000xf32> to vector<1x1000xf32>
    %cst_23 = arith.constant 1.250000e-01 : f32
    %122 = vector.broadcast %cst_23 : f32 to vector<1x1000xf32>
    %123 = arith.mulf %121, %122 : vector<1x1000xf32>
    %124 = arith.mulf %118, %118 : vector<1x1000xf32>
    %125 = arith.subf %123, %124 : vector<1x1000xf32>
    %cst_24 = arith.constant 0.000000e+00 : f32
    %126 = vector.broadcast %cst_24 : f32 to vector<1x1000xf32>
    %127 = arith.maximumf %125, %126 : vector<1x1000xf32>
    %128 = vector.broadcast %118 : vector<1x1000xf32> to vector<8x1000xf32>
    %129 = arith.subf %114, %128 : vector<8x1000xf32>
    %cst_25 = arith.constant 9.99999974E-6 : f32
    %130 = vector.broadcast %cst_25 : f32 to vector<1x1000xf32>
    %131 = arith.addf %127, %130 : vector<1x1000xf32>
    %132 = math.rsqrt %131 : vector<1x1000xf32>
    %133 = vector.broadcast %132 : vector<1x1000xf32> to vector<8x1000xf32>
    %134 = arith.mulf %129, %133 : vector<8x1000xf32>
    %135 = arith.truncf %134 : vector<8x1000xf32> to vector<8x1000xbf16>
    %c1_i32_26 = arith.constant 1 : i32
    %136 = tpu.memref_slice %arg8[%c1_i32_26] : memref<2x!tpu.dma_semaphore, #tpu.memory_space<semaphore_mem>> -> memref<1x!tpu.dma_semaphore, #tpu.memory_space<semaphore_mem>>
    %137 = tpu.memref_squeeze %136 : memref<1x!tpu.dma_semaphore, #tpu.memory_space<semaphore_mem>> -> memref<!tpu.dma_semaphore, #tpu.memory_space<semaphore_mem>>
    tpu.wait_dma2 semaphore(%137 : memref<!tpu.dma_semaphore, #tpu.memory_space<semaphore_mem>>) src(%arg4 : memref<1000x200xbf16, #tpu.memory_space<any>>) dst(%arg7 : memref<1000x200xbf16, #tpu.memory_space<vmem>>)
    %c0_27 = arith.constant 0 : index
    %c0_28 = arith.constant 0 : index
    %138 = vector.load %arg7[%c0_27, %c0_28] : memref<1000x200xbf16, #tpu.memory_space<vmem>>, vector<1000x200xbf16>
    %cst_29 = arith.constant dense<0.000000e+00> : vector<8x200xf32>
    %139 = tpu.matmul %135, %138, %cst_29 {dimension_numbers = #tpu.dot_dimension_numbers<[1], [0], [0], [1], [0, 0, 1, 1], [], []>} : vector<8x1000xbf16>, vector<1000x200xbf16>, vector<8x200xf32> -> vector<8x200xf32>
    %140 = vector.extract_strided_slice %5 {offsets = [11, 0], sizes = [1, 200], strides = [1, 1]} : vector<16x1024xf32> to vector<1x200xf32>
    %141 = vector.broadcast %140 : vector<1x200xf32> to vector<8x200xf32>
    %142 = arith.addf %139, %141 : vector<8x200xf32>
    %cst_30 = arith.constant 0.000000e+00 : f32
    %143 = vector.broadcast %cst_30 : f32 to vector<8x200xf32>
    %144 = arith.maximumf %142, %143 : vector<8x200xf32>
    %cst_31 = arith.constant dense<0.000000e+00> : vector<200xf32>
    %145 = vector.multi_reduction <add>, %144, %cst_31 [0] : vector<8x200xf32> to vector<200xf32>
    %146 = vector.shape_cast %145 : vector<200xf32> to vector<1x200xf32>
    %cst_32 = arith.constant 1.250000e-01 : f32
    %147 = vector.broadcast %cst_32 : f32 to vector<1x200xf32>
    %148 = arith.mulf %146, %147 : vector<1x200xf32>
    %149 = arith.mulf %144, %144 : vector<8x200xf32>
    %cst_33 = arith.constant dense<0.000000e+00> : vector<200xf32>
    %150 = vector.multi_reduction <add>, %149, %cst_33 [0] : vector<8x200xf32> to vector<200xf32>
    %151 = vector.shape_cast %150 : vector<200xf32> to vector<1x200xf32>
    %cst_34 = arith.constant 1.250000e-01 : f32
    %152 = vector.broadcast %cst_34 : f32 to vector<1x200xf32>
    %153 = arith.mulf %151, %152 : vector<1x200xf32>
    %154 = arith.mulf %148, %148 : vector<1x200xf32>
    %155 = arith.subf %153, %154 : vector<1x200xf32>
    %cst_35 = arith.constant 0.000000e+00 : f32
    %156 = vector.broadcast %cst_35 : f32 to vector<1x200xf32>
    %157 = arith.maximumf %155, %156 : vector<1x200xf32>
    %158 = vector.broadcast %148 : vector<1x200xf32> to vector<8x200xf32>
    %159 = arith.subf %144, %158 : vector<8x200xf32>
    %cst_36 = arith.constant 9.99999974E-6 : f32
    %160 = vector.broadcast %cst_36 : f32 to vector<1x200xf32>
    %161 = arith.addf %157, %160 : vector<1x200xf32>
    %162 = math.rsqrt %161 : vector<1x200xf32>
    %163 = vector.broadcast %162 : vector<1x200xf32> to vector<8x200xf32>
    %164 = arith.mulf %159, %163 : vector<8x200xf32>
    %165 = arith.truncf %164 : vector<8x200xf32> to vector<8x200xbf16>
    %c0_37 = arith.constant 0 : index
    %c0_38 = arith.constant 0 : index
    %166 = vector.load %arg2[%c0_37, %c0_38] : memref<200x100xbf16, #tpu.memory_space<vmem>>, vector<200x100xbf16>
    %cst_39 = arith.constant dense<0.000000e+00> : vector<8x100xf32>
    %167 = tpu.matmul %165, %166, %cst_39 {dimension_numbers = #tpu.dot_dimension_numbers<[1], [0], [0], [1], [0, 0, 1, 1], [], []>} : vector<8x200xbf16>, vector<200x100xbf16>, vector<8x100xf32> -> vector<8x100xf32>
    %168 = vector.extract_strided_slice %5 {offsets = [12, 0], sizes = [1, 100], strides = [1, 1]} : vector<16x1024xf32> to vector<1x100xf32>
    %169 = vector.broadcast %168 : vector<1x100xf32> to vector<8x100xf32>
    %170 = arith.addf %167, %169 : vector<8x100xf32>
    %cst_40 = arith.constant 0.000000e+00 : f32
    %171 = vector.broadcast %cst_40 : f32 to vector<8x100xf32>
    %172 = arith.maximumf %170, %171 : vector<8x100xf32>
    %cst_41 = arith.constant dense<0.000000e+00> : vector<100xf32>
    %173 = vector.multi_reduction <add>, %172, %cst_41 [0] : vector<8x100xf32> to vector<100xf32>
    %174 = vector.shape_cast %173 : vector<100xf32> to vector<1x100xf32>
    %cst_42 = arith.constant 1.250000e-01 : f32
    %175 = vector.broadcast %cst_42 : f32 to vector<1x100xf32>
    %176 = arith.mulf %174, %175 : vector<1x100xf32>
    %177 = arith.mulf %172, %172 : vector<8x100xf32>
    %cst_43 = arith.constant dense<0.000000e+00> : vector<100xf32>
    %178 = vector.multi_reduction <add>, %177, %cst_43 [0] : vector<8x100xf32> to vector<100xf32>
    %179 = vector.shape_cast %178 : vector<100xf32> to vector<1x100xf32>
    %cst_44 = arith.constant 1.250000e-01 : f32
    %180 = vector.broadcast %cst_44 : f32 to vector<1x100xf32>
    %181 = arith.mulf %179, %180 : vector<1x100xf32>
    %182 = arith.mulf %176, %176 : vector<1x100xf32>
    %183 = arith.subf %181, %182 : vector<1x100xf32>
    %cst_45 = arith.constant 0.000000e+00 : f32
    %184 = vector.broadcast %cst_45 : f32 to vector<1x100xf32>
    %185 = arith.maximumf %183, %184 : vector<1x100xf32>
    %186 = vector.broadcast %176 : vector<1x100xf32> to vector<8x100xf32>
    %187 = arith.subf %172, %186 : vector<8x100xf32>
    %cst_46 = arith.constant 9.99999974E-6 : f32
    %188 = vector.broadcast %cst_46 : f32 to vector<1x100xf32>
    %189 = arith.addf %185, %188 : vector<1x100xf32>
    %190 = math.rsqrt %189 : vector<1x100xf32>
    %191 = vector.broadcast %190 : vector<1x100xf32> to vector<8x100xf32>
    %192 = arith.mulf %187, %191 : vector<8x100xf32>
    %193 = vector.extract_strided_slice %5 {offsets = [13, 0], sizes = [1, 100], strides = [1, 1]} : vector<16x1024xf32> to vector<1x100xf32>
    %194 = vector.extract_strided_slice %5 {offsets = [14, 0], sizes = [1, 1], strides = [1, 1]} : vector<16x1024xf32> to vector<1x1xf32>
    %195 = vector.broadcast %193 : vector<1x100xf32> to vector<8x100xf32>
    %196 = arith.mulf %192, %195 : vector<8x100xf32>
    %cst_47 = arith.constant dense<0.000000e+00> : vector<8xf32>
    %197 = vector.multi_reduction <add>, %196, %cst_47 [1] : vector<8x100xf32> to vector<8xf32>
    %198 = vector.shape_cast %197 : vector<8xf32> to vector<8x1xf32>
    %199 = vector.broadcast %194 : vector<1x1xf32> to vector<8x1xf32>
    %200 = arith.addf %198, %199 : vector<8x1xf32>
    %201 = arith.negf %200 : vector<8x1xf32>
    %202 = math.exp %201 : vector<8x1xf32>
    %cst_48 = arith.constant 1.000000e+00 : f32
    %203 = vector.broadcast %cst_48 : f32 to vector<8x1xf32>
    %204 = arith.addf %203, %202 : vector<8x1xf32>
    %205 = arith.divf %203, %204 : vector<8x1xf32>
    %c0_49 = arith.constant 0 : index
    %c0_50 = arith.constant 0 : index
    %206 = vector.load %arg5[%c0_49, %c0_50] : memref<8x1xf32, #tpu.memory_space<vmem>>, vector<8x1xf32>
    tpu.vector_store %arg5[%c0_49, %c0_50], %205 {strides = array<i32>} : memref<8x1xf32, #tpu.memory_space<vmem>>, vector<8x1xf32>,
    return
  }
}

</mosaic_0001>

<bundles_post_ra>
// kernel: complex_model_forward.1
= control target key start
LH: loop header
LB: loop body
LE: loop exit
PB: predicated region body
PF: predicated region fallthrough
CT: control target
= control target key end

     0   :  { %s8210_s0 = inlined_call_operand.vmem [shape: f32[8,9], index: 0, kind: input, shape index: {}]   ;;  %s8211_s1 = inlined_call_operand.vmem [shape: f32[16,1024], index: 1, kind: input, shape index: {}]   ;;  %s8212_s2 = inlined_call_operand.vmem [shape: bf16[200,100], index: 2, kind: input, shape index: {}]   ;;  %s8213_s3 = inlined_call_operand.vmem [shape: bf16[500,1000], index: 3, kind: input, shape index: {}]   ;;  %s8214_s4 = inlined_call_operand.vmem [shape: bf16[1000,200], index: 4, kind: input, shape index: {}]   ;;  %s8215_s5 = inlined_call_operand.vmem [shape: f32[8,1], index: 5, kind: output, shape index: {}]  }
   0x1   :  { %v27_v0 = vld [vmem:[%s8213_s3] sm:$0xff]  ;;  %v29_v1 = vld [vmem:[%s8213_s3 + $0x8] sm:$0xff]  ;;  %v31_v2 = vld [vmem:[%s8213_s3 + $0x10] sm:$0xff] }
   0x2   :  { %28 = vst [vmem:[#allocation2] sm:$0xff] %v27_v0  ;;  %v33_v3 = vld [vmem:[%s8213_s3 + $0x18] sm:$0xff]  ;;  %v35_v4 = vld [vmem:[%s8213_s3 + $0x20] sm:$0xff]  ;;  %v37_v5 = vld [vmem:[%s8213_s3 + $0x28] sm:$0xff] }
   0x3   :  { %30 = vst [vmem:[#allocation2 + $0x8] sm:$0xff] %v29_v1  ;;  %v39_v6 = vld [vmem:[%s8213_s3 + $0x30] sm:$0xff]  ;;  %v41_v7 = vld [vmem:[%s8213_s3 + $0x38] sm:$0xff]  ;;  %v43_v8 = vld [vmem:[%s8213_s3 + $0x40] sm:$0xff] }
   0x4   :  { %32 = vst [vmem:[#allocation2 + $0x10] sm:$0xff] %v31_v2  ;;  %v45_v9 = vld [vmem:[%s8213_s3 + $0x48] sm:$0xff]  ;;  %v47_v10 = vld [vmem:[%s8213_s3 + $0x50] sm:$0xff]  ;;  %v49_v11 = vld [vmem:[%s8213_s3 + $0x58] sm:$0xff] }
   0x5   :  { %34 = vst [vmem:[#allocation2 + $0x18] sm:$0xff] %v33_v3  ;;  %v51_v12 = vld [vmem:[%s8213_s3 + $0x60] sm:$0xff]  ;;  %v53_v13 = vld [vmem:[%s8213_s3 + $0x68] sm:$0xff]  ;;  %v55_v14 = vld [vmem:[%s8213_s3 + $0x70] sm:$0xff] }
   0x6   :  { %36 = vst [vmem:[#allocation2 + $0x20] sm:$0xff] %v35_v4  ;;  %v57_v15 = vld [vmem:[%s8213_s3 + $0x78] sm:$0xff]  ;;  %v59_v16 = vld [vmem:[%s8213_s3 + $0x80] sm:$0xff]  ;;  %v61_v17 = vld [vmem:[%s8213_s3 + $0x88] sm:$0xff] }
   0x7   :  { %38 = vst [vmem:[#allocation2 + $0x28] sm:$0xff] %v37_v5  ;;  %v63_v18 = vld [vmem:[%s8213_s3 + $0x90] sm:$0xff]  ;;  %v65_v19 = vld [vmem:[%s8213_s3 + $0x98] sm:$0xff]  ;;  %v67_v20 = vld [vmem:[%s8213_s3 + $0xa0] sm:$0xff] }
   0x8   :  { %40 = vst [vmem:[#allocation2 + $0x30] sm:$0xff] %v39_v6  ;;  %v69_v21 = vld [vmem:[%s8213_s3 + $0xa8] sm:$0xff]  ;;  %v71_v22 = vld [vmem:[%s8213_s3 + $0xb0] sm:$0xff]  ;;  %v73_v23 = vld [vmem:[%s8213_s3 + $0xb8] sm:$0xff] }
   0x9   :  { %42 = vst [vmem:[#allocation2 + $0x38] sm:$0xff] %v41_v7  ;;  %v75_v24 = vld [vmem:[%s8213_s3 + $0xc0] sm:$0xff]  ;;  %v77_v25 = vld [vmem:[%s8213_s3 + $0xc8] sm:$0xff]  ;;  %v79_v26 = vld [vmem:[%s8213_s3 + $0xd0] sm:$0xff] }
   0xa   :  { %44 = vst [vmem:[#allocation2 + $0x40] sm:$0xff] %v43_v8  ;;  %v81_v27 = vld [vmem:[%s8213_s3 + $0xd8] sm:$0xff]  ;;  %v83_v28 = vld [vmem:[%s8213_s3 + $0xe0] sm:$0xff]  ;;  %v85_v29 = vld [vmem:[%s8213_s3 + $0xe8] sm:$0xff] }
   0xb   :  { %46 = vst [vmem:[#allocation2 + $0x48] sm:$0xff] %v45_v9  ;;  %v87_v30 = vld [vmem:[%s8213_s3 + $0xf0] sm:$0xff]  ;;  %v89_v31 = vld [vmem:[%s8213_s3 + $0xf8] sm:$0xff]  ;;  %v91_v32 = vld [vmem:[%s8213_s3 + $0x100] sm:$0xff] }
   0xc   :  { %48 = vst [vmem:[#allocation2 + $0x50] sm:$0xff] %v47_v10  ;;  %v93_v33 = vld [vmem:[%s8213_s3 + $0x108] sm:$0xff]  ;;  %v95_v34 = vld [vmem:[%s8213_s3 + $0x110] sm:$0xff]  ;;  %v97_v35 = vld [vmem:[%s8213_s3 + $0x118] sm:$0xff] }
   0xd   :  { %50 = vst [vmem:[#allocation2 + $0x58] sm:$0xff] %v49_v11  ;;  %v99_v36 = vld [vmem:[%s8213_s3 + $0x120] sm:$0xff]  ;;  %v101_v37 = vld [vmem:[%s8213_s3 + $0x128] sm:$0xff]  ;;  %v103_v38 = vld [vmem:[%s8213_s3 + $0x130] sm:$0xff] }
   0xe   :  { %52 = vst [vmem:[#allocation2 + $0x60] sm:$0xff] %v51_v12  ;;  %v105_v39 = vld [vmem:[%s8213_s3 + $0x138] sm:$0xff]  ;;  %v107_v40 = vld [vmem:[%s8213_s3 + $0x140] sm:$0xff]  ;;  %v109_v41 = vld [vmem:[%s8213_s3 + $0x148] sm:$0xff] }
   0xf   :  { %54 = vst [vmem:[#allocation2 + $0x68] sm:$0xff] %v53_v13  ;;  %v111_v42 = vld [vmem:[%s8213_s3 + $0x150] sm:$0xff]  ;;  %v113_v43 = vld [vmem:[%s8213_s3 + $0x158] sm:$0xff]  ;;  %v115_v44 = vld [vmem:[%s8213_s3 + $0x160] sm:$0xff] }
  0x10   :  { %56 = vst [vmem:[#allocation2 + $0x70] sm:$0xff] %v55_v14  ;;  %v117_v45 = vld [vmem:[%s8213_s3 + $0x168] sm:$0xff]  ;;  %v119_v46 = vld [vmem:[%s8213_s3 + $0x170] sm:$0xff]  ;;  %v121_v47 = vld [vmem:[%s8213_s3 + $0x178] sm:$0xff] }
  0x11   :  { %58 = vst [vmem:[#allocation2 + $0x78] sm:$0xff] %v57_v15  ;;  %v123_v48 = vld [vmem:[%s8213_s3 + $0x180] sm:$0xff]  ;;  %v125_v49 = vld [vmem:[%s8213_s3 + $0x188] sm:$0xff]  ;;  %v127_v50 = vld [vmem:[%s8213_s3 + $0x190] sm:$0xff] }
  0x12   :  { %60 = vst [vmem:[#allocation2 + $0x80] sm:$0xff] %v59_v16  ;;  %v129_v51 = vld [vmem:[%s8213_s3 + $0x198] sm:$0xff]  ;;  %v131_v52 = vld [vmem:[%s8213_s3 + $0x1a0] sm:$0xff]  ;;  %v133_v53 = vld [vmem:[%s8213_s3 + $0x1a8] sm:$0xff] }
  0x13   :  { %62 = vst [vmem:[#allocation2 + $0x88] sm:$0xff] %v61_v17  ;;  %v135_v54 = vld [vmem:[%s8213_s3 + $0x1b0] sm:$0xff]  ;;  %v137_v55 = vld [vmem:[%s8213_s3 + $0x1b8] sm:$0xff]  ;;  %v139_v56 = vld [vmem:[%s8213_s3 + $0x1c0] sm:$0xff] }
  0x14   :  { %64 = vst [vmem:[#allocation2 + $0x90] sm:$0xff] %v63_v18  ;;  %v141_v57 = vld [vmem:[%s8213_s3 + $0x1c8] sm:$0xff]  ;;  %v143_v58 = vld [vmem:[%s8213_s3 + $0x1d0] sm:$0xff]  ;;  %v145_v59 = vld [vmem:[%s8213_s3 + $0x1d8] sm:$0xff] }
  0x15   :  { %66 = vst [vmem:[#allocation2 + $0x98] sm:$0xff] %v65_v19  ;;  %v147_v60 = vld [vmem:[%s8213_s3 + $0x1e0] sm:$0xff]  ;;  %v149_v61 = vld [vmem:[%s8213_s3 + $0x1e8] sm:$0xff]  ;;  %v151_v62 = vld [vmem:[%s8213_s3 + $0x1f0] sm:$0xff] }
  0x16   :  { %68 = vst [vmem:[#allocation2 + $0xa0] sm:$0xff] %v67_v20  ;;  %v153_v63 = vld [vmem:[%s8213_s3 + $0x1f8] sm:$0xff]  ;;  %v155_v0 = vld [vmem:[%s8213_s3 + $0x200] sm:$0xff]  ;;  %v157_v1 = vld [vmem:[%s8213_s3 + $0x208] sm:$0xff] }
  0x17   :  { %70 = vst [vmem:[#allocation2 + $0xa8] sm:$0xff] %v69_v21  ;;  %v159_v2 = vld [vmem:[%s8213_s3 + $0x210] sm:$0xff]  ;;  %v161_v3 = vld [vmem:[%s8213_s3 + $0x218] sm:$0xff]  ;;  %v163_v4 = vld [vmem:[%s8213_s3 + $0x220] sm:$0xff] }
  0x18   :  { %72 = vst [vmem:[#allocation2 + $0xb0] sm:$0xff] %v71_v22  ;;  %v165_v5 = vld [vmem:[%s8213_s3 + $0x228] sm:$0xff]  ;;  %v167_v6 = vld [vmem:[%s8213_s3 + $0x230] sm:$0xff]  ;;  %v169_v7 = vld [vmem:[%s8213_s3 + $0x238] sm:$0xff] }
  0x19   :  { %74 = vst [vmem:[#allocation2 + $0xb8] sm:$0xff] %v73_v23  ;;  %v171_v8 = vld [vmem:[%s8213_s3 + $0x240] sm:$0xff]  ;;  %v173_v9 = vld [vmem:[%s8213_s3 + $0x248] sm:$0xff]  ;;  %v175_v10 = vld [vmem:[%s8213_s3 + $0x250] sm:$0xff] }
  0x1a   :  { %76 = vst [vmem:[#allocation2 + $0xc0] sm:$0xff] %v75_v24  ;;  %v177_v11 = vld [vmem:[%s8213_s3 + $0x258] sm:$0xff]  ;;  %v179_v12 = vld [vmem:[%s8213_s3 + $0x260] sm:$0xff]  ;;  %v181_v13 = vld [vmem:[%s8213_s3 + $0x268] sm:$0xff] }
  0x1b   :  { %78 = vst [vmem:[#allocation2 + $0xc8] sm:$0xff] %v77_v25  ;;  %v183_v14 = vld [vmem:[%s8213_s3 + $0x270] sm:$0xff]  ;;  %v185_v15 = vld [vmem:[%s8213_s3 + $0x278] sm:$0xff]  ;;  %v187_v16 = vld [vmem:[%s8213_s3 + $0x280] sm:$0xff] }
  0x1c   :  { %80 = vst [vmem:[#allocation2 + $0xd0] sm:$0xff] %v79_v26  ;;  %v189_v17 = vld [vmem:[%s8213_s3 + $0x288] sm:$0xff]  ;;  %v191_v18 = vld [vmem:[%s8213_s3 + $0x290] sm:$0xff]  ;;  %v193_v19 = vld [vmem:[%s8213_s3 + $0x298] sm:$0xff] }
  0x1d   :  { %82 = vst [vmem:[#allocation2 + $0xd8] sm:$0xff] %v81_v27  ;;  %v195_v20 = vld [vmem:[%s8213_s3 + $0x2a0] sm:$0xff]  ;;  %v197_v21 = vld [vmem:[%s8213_s3 + $0x2a8] sm:$0xff]  ;;  %v199_v22 = vld [vmem:[%s8213_s3 + $0x2b0] sm:$0xff] }
  0x1e   :  { %84 = vst [vmem:[#allocation2 + $0xe0] sm:$0xff] %v83_v28  ;;  %v201_v23 = vld [vmem:[%s8213_s3 + $0x2b8] sm:$0xff]  ;;  %v203_v24 = vld [vmem:[%s8213_s3 + $0x2c0] sm:$0xff]  ;;  %v205_v25 = vld [vmem:[%s8213_s3 + $0x2c8] sm:$0xff] }
  0x1f   :  { %86 = vst [vmem:[#allocation2 + $0xe8] sm:$0xff] %v85_v29  ;;  %v207_v26 = vld [vmem:[%s8213_s3 + $0x2d0] sm:$0xff]  ;;  %v209_v27 = vld [vmem:[%s8213_s3 + $0x2d8] sm:$0xff]  ;;  %v211_v28 = vld [vmem:[%s8213_s3 + $0x2e0] sm:$0xff] }
  0x20   :  { %88 = vst [vmem:[#allocation2 + $0xf0] sm:$0xff] %v87_v30  ;;  %v213_v29 = vld [vmem:[%s8213_s3 + $0x2e8] sm:$0xff]  ;;  %v215_v30 = vld [vmem:[%s8213_s3 + $0x2f0] sm:$0xff] }
  0x21   :  { %90 = vst [vmem:[#allocation2 + $0xf8] sm:$0xff] %v89_v31  ;;  %v217_v31 = vld [vmem:[%s8213_s3 + $0x2f8] sm:$0xff] }
  0x22   :  { %92 = vst [vmem:[#allocation2 + $0x100] sm:$0xff] %v91_v32  ;;  %v219_v32 = vld [vmem:[%s8213_s3 + $0x300] sm:$0xff] }
  0x23   :  { %94 = vst [vmem:[#allocation2 + $0x108] sm:$0xff] %v93_v33  ;;  %v221_v33 = vld [vmem:[%s8213_s3 + $0x308] sm:$0xff] }
  0x24   :  { %96 = vst [vmem:[#allocation2 + $0x110] sm:$0xff] %v95_v34  ;;  %v223_v34 = vld [vmem:[%s8213_s3 + $0x310] sm:$0xff] }
  0x25   :  { %98 = vst [vmem:[#allocation2 + $0x118] sm:$0xff] %v97_v35  ;;  %v225_v35 = vld [vmem:[%s8213_s3 + $0x318] sm:$0xff] }
  0x26   :  { %100 = vst [vmem:[#allocation2 + $0x120] sm:$0xff] %v99_v36  ;;  %v227_v36 = vld [vmem:[%s8213_s3 + $0x320] sm:$0xff] }
  0x27   :  { %102 = vst [vmem:[#allocation2 + $0x128] sm:$0xff] %v101_v37  ;;  %v229_v37 = vld [vmem:[%s8213_s3 + $0x328] sm:$0xff] }
  0x28   :  { %104 = vst [vmem:[#allocation2 + $0x130] sm:$0xff] %v103_v38  ;;  %v231_v38 = vld [vmem:[%s8213_s3 + $0x330] sm:$0xff] }
  0x29   :  { %106 = vst [vmem:[#allocation2 + $0x138] sm:$0xff] %v105_v39  ;;  %v233_v39 = vld [vmem:[%s8213_s3 + $0x338] sm:$0xff] }
  0x2a   :  { %108 = vst [vmem:[#allocation2 + $0x140] sm:$0xff] %v107_v40  ;;  %v235_v40 = vld [vmem:[%s8213_s3 + $0x340] sm:$0xff] }
  0x2b   :  { %110 = vst [vmem:[#allocation2 + $0x148] sm:$0xff] %v109_v41  ;;  %v237_v41 = vld [vmem:[%s8213_s3 + $0x348] sm:$0xff] }
  0x2c   :  { %112 = vst [vmem:[#allocation2 + $0x150] sm:$0xff] %v111_v42  ;;  %v239_v42 = vld [vmem:[%s8213_s3 + $0x350] sm:$0xff] }
  0x2d   :  { %114 = vst [vmem:[#allocation2 + $0x158] sm:$0xff] %v113_v43  ;;  %v241_v43 = vld [vmem:[%s8213_s3 + $0x358] sm:$0xff] }
  0x2e   :  { %116 = vst [vmem:[#allocation2 + $0x160] sm:$0xff] %v115_v44  ;;  %v243_v44 = vld [vmem:[%s8213_s3 + $0x360] sm:$0xff] }
  0x2f   :  { %118 = vst [vmem:[#allocation2 + $0x168] sm:$0xff] %v117_v45  ;;  %v245_v45 = vld [vmem:[%s8213_s3 + $0x368] sm:$0xff] }
  0x30   :  { %120 = vst [vmem:[#allocation2 + $0x170] sm:$0xff] %v119_v46  ;;  %v247_v46 = vld [vmem:[%s8213_s3 + $0x370] sm:$0xff] }
  0x31   :  { %122 = vst [vmem:[#allocation2 + $0x178] sm:$0xff] %v121_v47  ;;  %v249_v47 = vld [vmem:[%s8213_s3 + $0x378] sm:$0xff] }
  0x32   :  { %124 = vst [vmem:[#allocation2 + $0x180] sm:$0xff] %v123_v48  ;;  %v251_v48 = vld [vmem:[%s8213_s3 + $0x380] sm:$0xff] }
  0x33   :  { %126 = vst [vmem:[#allocation2 + $0x188] sm:$0xff] %v125_v49  ;;  %v253_v49 = vld [vmem:[%s8213_s3 + $0x388] sm:$0xff] }
  0x34   :  { %128 = vst [vmem:[#allocation2 + $0x190] sm:$0xff] %v127_v50  ;;  %v255_v50 = vld [vmem:[%s8213_s3 + $0x390] sm:$0xff] }
  0x35   :  { %130 = vst [vmem:[#allocation2 + $0x198] sm:$0xff] %v129_v51  ;;  %v257_v51 = vld [vmem:[%s8213_s3 + $0x398] sm:$0xff] }
  0x36   :  { %132 = vst [vmem:[#allocation2 + $0x1a0] sm:$0xff] %v131_v52  ;;  %v259_v52 = vld [vmem:[%s8213_s3 + $0x3a0] sm:$0xff] }
  0x37   :  { %134 = vst [vmem:[#allocation2 + $0x1a8] sm:$0xff] %v133_v53  ;;  %v261_v53 = vld [vmem:[%s8213_s3 + $0x3a8] sm:$0xff] }
  0x38   :  { %136 = vst [vmem:[#allocation2 + $0x1b0] sm:$0xff] %v135_v54  ;;  %v263_v54 = vld [vmem:[%s8213_s3 + $0x3b0] sm:$0xff] }
  0x39   :  { %138 = vst [vmem:[#allocation2 + $0x1b8] sm:$0xff] %v137_v55  ;;  %v265_v55 = vld [vmem:[%s8213_s3 + $0x3b8] sm:$0xff] }
  0x3a   :  { %140 = vst [vmem:[#allocation2 + $0x1c0] sm:$0xff] %v139_v56  ;;  %v267_v56 = vld [vmem:[%s8213_s3 + $0x3c0] sm:$0xff] }
  0x3b   :  { %142 = vst [vmem:[#allocation2 + $0x1c8] sm:$0xff] %v141_v57  ;;  %v269_v57 = vld [vmem:[%s8213_s3 + $0x3c8] sm:$0xff] }
  0x3c   :  { %144 = vst [vmem:[#allocation2 + $0x1d0] sm:$0xff] %v143_v58  ;;  %v271_v58 = vld [vmem:[%s8213_s3 + $0x3d0] sm:$0xff] }
  0x3d   :  { %146 = vst [vmem:[#allocation2 + $0x1d8] sm:$0xff] %v145_v59  ;;  %v273_v59 = vld [vmem:[%s8213_s3 + $0x3d8] sm:$0xff] }
  0x3e   :  { %148 = vst [vmem:[#allocation2 + $0x1e0] sm:$0xff] %v147_v60  ;;  %v275_v60 = vld [vmem:[%s8213_s3 + $0x3e0] sm:$0xff] }
  0x3f   :  { %150 = vst [vmem:[#allocation2 + $0x1e8] sm:$0xff] %v149_v61  ;;  %v277_v61 = vld [vmem:[%s8213_s3 + $0x3e8] sm:$0xff] }
  0x40   :  { %152 = vst [vmem:[#allocation2 + $0x1f0] sm:$0xff] %v151_v62  ;;  %v279_v62 = vld [vmem:[%s8213_s3 + $0x3f0] sm:$0xff] }
  0x41   :  { %154 = vst [vmem:[#allocation2 + $0x1f8] sm:$0xff] %v153_v63  ;;  %v281_v63 = vld [vmem:[%s8213_s3 + $0x3f8] sm:$0xff] }
  0x42   :  { %156 = vst [vmem:[#allocation2 + $0x200] sm:$0xff] %v155_v0  ;;  %v283_v0 = vld [vmem:[%s8213_s3 + $0x400] sm:$0xff] }
  0x43   :  { %158 = vst [vmem:[#allocation2 + $0x208] sm:$0xff] %v157_v1  ;;  %v285_v1 = vld [vmem:[%s8213_s3 + $0x408] sm:$0xff] }
  0x44   :  { %160 = vst [vmem:[#allocation2 + $0x210] sm:$0xff] %v159_v2  ;;  %v287_v2 = vld [vmem:[%s8213_s3 + $0x410] sm:$0xff] }
  0x45   :  { %162 = vst [vmem:[#allocation2 + $0x218] sm:$0xff] %v161_v3  ;;  %v289_v3 = vld [vmem:[%s8213_s3 + $0x418] sm:$0xff] }
  0x46   :  { %164 = vst [vmem:[#allocation2 + $0x220] sm:$0xff] %v163_v4  ;;  %v291_v4 = vld [vmem:[%s8213_s3 + $0x420] sm:$0xff] }
  0x47   :  { %166 = vst [vmem:[#allocation2 + $0x228] sm:$0xff] %v165_v5  ;;  %v293_v5 = vld [vmem:[%s8213_s3 + $0x428] sm:$0xff] }
  0x48   :  { %168 = vst [vmem:[#allocation2 + $0x230] sm:$0xff] %v167_v6  ;;  %v295_v6 = vld [vmem:[%s8213_s3 + $0x430] sm:$0xff] }
  0x49   :  { %170 = vst [vmem:[#allocation2 + $0x238] sm:$0xff] %v169_v7  ;;  %v297_v7 = vld [vmem:[%s8213_s3 + $0x438] sm:$0xff] }
  0x4a   :  { %172 = vst [vmem:[#allocation2 + $0x240] sm:$0xff] %v171_v8  ;;  %v299_v8 = vld [vmem:[%s8213_s3 + $0x440] sm:$0xff] }
  0x4b   :  { %174 = vst [vmem:[#allocation2 + $0x248] sm:$0xff] %v173_v9  ;;  %v301_v9 = vld [vmem:[%s8213_s3 + $0x448] sm:$0xff] }
  0x4c   :  { %176 = vst [vmem:[#allocation2 + $0x250] sm:$0xff] %v175_v10  ;;  %v303_v10 = vld [vmem:[%s8213_s3 + $0x450] sm:$0xff] }
  0x4d   :  { %178 = vst [vmem:[#allocation2 + $0x258] sm:$0xff] %v177_v11  ;;  %v305_v11 = vld [vmem:[%s8213_s3 + $0x458] sm:$0xff] }
  0x4e   :  { %180 = vst [vmem:[#allocation2 + $0x260] sm:$0xff] %v179_v12  ;;  %v307_v12 = vld [vmem:[%s8213_s3 + $0x460] sm:$0xff] }
  0x4f   :  { %182 = vst [vmem:[#allocation2 + $0x268] sm:$0xff] %v181_v13  ;;  %v309_v13 = vld [vmem:[%s8213_s3 + $0x468] sm:$0xff] }
  0x50   :  { %184 = vst [vmem:[#allocation2 + $0x270] sm:$0xff] %v183_v14  ;;  %v311_v14 = vld [vmem:[%s8213_s3 + $0x470] sm:$0xff] }
  0x51   :  { %186 = vst [vmem:[#allocation2 + $0x278] sm:$0xff] %v185_v15  ;;  %v313_v15 = vld [vmem:[%s8213_s3 + $0x478] sm:$0xff] }
  0x52   :  { %188 = vst [vmem:[#allocation2 + $0x280] sm:$0xff] %v187_v16  ;;  %v315_v16 = vld [vmem:[%s8213_s3 + $0x480] sm:$0xff] }
  0x53   :  { %190 = vst [vmem:[#allocation2 + $0x288] sm:$0xff] %v189_v17  ;;  %v317_v17 = vld [vmem:[%s8213_s3 + $0x488] sm:$0xff] }
  0x54   :  { %192 = vst [vmem:[#allocation2 + $0x290] sm:$0xff] %v191_v18  ;;  %v319_v18 = vld [vmem:[%s8213_s3 + $0x490] sm:$0xff] }
  0x55   :  { %194 = vst [vmem:[#allocation2 + $0x298] sm:$0xff] %v193_v19  ;;  %v321_v19 = vld [vmem:[%s8213_s3 + $0x498] sm:$0xff] }
  0x56   :  { %196 = vst [vmem:[#allocation2 + $0x2a0] sm:$0xff] %v195_v20  ;;  %v323_v20 = vld [vmem:[%s8213_s3 + $0x4a0] sm:$0xff] }
  0x57   :  { %198 = vst [vmem:[#allocation2 + $0x2a8] sm:$0xff] %v197_v21  ;;  %v325_v21 = vld [vmem:[%s8213_s3 + $0x4a8] sm:$0xff] }
  0x58   :  { %200 = vst [vmem:[#allocation2 + $0x2b0] sm:$0xff] %v199_v22  ;;  %v327_v22 = vld [vmem:[%s8213_s3 + $0x4b0] sm:$0xff] }
  0x59   :  { %202 = vst [vmem:[#allocation2 + $0x2b8] sm:$0xff] %v201_v23  ;;  %v329_v23 = vld [vmem:[%s8213_s3 + $0x4b8] sm:$0xff] }
  0x5a   :  { %204 = vst [vmem:[#allocation2 + $0x2c0] sm:$0xff] %v203_v24  ;;  %v331_v24 = vld [vmem:[%s8213_s3 + $0x4c0] sm:$0xff] }
  0x5b   :  { %206 = vst [vmem:[#allocation2 + $0x2c8] sm:$0xff] %v205_v25  ;;  %v333_v25 = vld [vmem:[%s8213_s3 + $0x4c8] sm:$0xff] }
  0x5c   :  { %208 = vst [vmem:[#allocation2 + $0x2d0] sm:$0xff] %v207_v26  ;;  %v335_v26 = vld [vmem:[%s8213_s3 + $0x4d0] sm:$0xff] }
  0x5d   :  { %210 = vst [vmem:[#allocation2 + $0x2d8] sm:$0xff] %v209_v27  ;;  %v337_v27 = vld [vmem:[%s8213_s3 + $0x4d8] sm:$0xff] }
  0x5e   :  { %212 = vst [vmem:[#allocation2 + $0x2e0] sm:$0xff] %v211_v28  ;;  %v339_v28 = vld [vmem:[%s8213_s3 + $0x4e0] sm:$0xff] }
  0x5f   :  { %214 = vst [vmem:[#allocation2 + $0x2e8] sm:$0xff] %v213_v29  ;;  %v341_v29 = vld [vmem:[%s8213_s3 + $0x4e8] sm:$0xff] }
  0x60   :  { %216 = vst [vmem:[#allocation2 + $0x2f0] sm:$0xff] %v215_v30  ;;  %v343_v30 = vld [vmem:[%s8213_s3 + $0x4f0] sm:$0xff] }
  0x61   :  { %218 = vst [vmem:[#allocation2 + $0x2f8] sm:$0xff] %v217_v31  ;;  %v345_v31 = vld [vmem:[%s8213_s3 + $0x4f8] sm:$0xff] }
  0x62   :  { %220 = vst [vmem:[#allocation2 + $0x300] sm:$0xff] %v219_v32  ;;  %v347_v32 = vld [vmem:[%s8213_s3 + $0x500] sm:$0xff] }
  0x63   :  { %222 = vst [vmem:[#allocation2 + $0x308] sm:$0xff] %v221_v33  ;;  %v349_v33 = vld [vmem:[%s8213_s3 + $0x508] sm:$0xff] }
  0x64   :  { %224 = vst [vmem:[#allocation2 + $0x310] sm:$0xff] %v223_v34  ;;  %v351_v34 = vld [vmem:[%s8213_s3 + $0x510] sm:$0xff] }
  0x65   :  { %226 = vst [vmem:[#allocation2 + $0x318] sm:$0xff] %v225_v35  ;;  %v353_v35 = vld [vmem:[%s8213_s3 + $0x518] sm:$0xff] }
  0x66   :  { %228 = vst [vmem:[#allocation2 + $0x320] sm:$0xff] %v227_v36  ;;  %v355_v36 = vld [vmem:[%s8213_s3 + $0x520] sm:$0xff] }
  0x67   :  { %230 = vst [vmem:[#allocation2 + $0x328] sm:$0xff] %v229_v37  ;;  %v357_v37 = vld [vmem:[%s8213_s3 + $0x528] sm:$0xff] }
  0x68   :  { %232 = vst [vmem:[#allocation2 + $0x330] sm:$0xff] %v231_v38  ;;  %v359_v38 = vld [vmem:[%s8213_s3 + $0x530] sm:$0xff] }
  0x69   :  { %234 = vst [vmem:[#allocation2 + $0x338] sm:$0xff] %v233_v39  ;;  %v361_v39 = vld [vmem:[%s8213_s3 + $0x538] sm:$0xff] }
  0x6a   :  { %236 = vst [vmem:[#allocation2 + $0x340] sm:$0xff] %v235_v40  ;;  %v363_v40 = vld [vmem:[%s8213_s3 + $0x540] sm:$0xff] }
  0x6b   :  { %238 = vst [vmem:[#allocation2 + $0x348] sm:$0xff] %v237_v41  ;;  %v365_v41 = vld [vmem:[%s8213_s3 + $0x548] sm:$0xff] }
  0x6c   :  { %240 = vst [vmem:[#allocation2 + $0x350] sm:$0xff] %v239_v42  ;;  %v367_v42 = vld [vmem:[%s8213_s3 + $0x550] sm:$0xff] }
  0x6d   :  { %242 = vst [vmem:[#allocation2 + $0x358] sm:$0xff] %v241_v43  ;;  %v369_v43 = vld [vmem:[%s8213_s3 + $0x558] sm:$0xff] }
  0x6e   :  { %244 = vst [vmem:[#allocation2 + $0x360] sm:$0xff] %v243_v44  ;;  %v371_v44 = vld [vmem:[%s8213_s3 + $0x560] sm:$0xff] }
  0x6f   :  { %246 = vst [vmem:[#allocation2 + $0x368] sm:$0xff] %v245_v45  ;;  %v373_v45 = vld [vmem:[%s8213_s3 + $0x568] sm:$0xff] }
  0x70   :  { %248 = vst [vmem:[#allocation2 + $0x370] sm:$0xff] %v247_v46  ;;  %v375_v46 = vld [vmem:[%s8213_s3 + $0x570] sm:$0xff] }
  0x71   :  { %250 = vst [vmem:[#allocation2 + $0x378] sm:$0xff] %v249_v47  ;;  %v377_v47 = vld [vmem:[%s8213_s3 + $0x578] sm:$0xff] }
  0x72   :  { %252 = vst [vmem:[#allocation2 + $0x380] sm:$0xff] %v251_v48  ;;  %v379_v48 = vld [vmem:[%s8213_s3 + $0x580] sm:$0xff] }
  0x73   :  { %254 = vst [vmem:[#allocation2 + $0x388] sm:$0xff] %v253_v49  ;;  %v381_v49 = vld [vmem:[%s8213_s3 + $0x588] sm:$0xff] }
  0x74   :  { %256 = vst [vmem:[#allocation2 + $0x390] sm:$0xff] %v255_v50  ;;  %v383_v50 = vld [vmem:[%s8213_s3 + $0x590] sm:$0xff] }
  0x75   :  { %258 = vst [vmem:[#allocation2 + $0x398] sm:$0xff] %v257_v51  ;;  %v385_v51 = vld [vmem:[%s8213_s3 + $0x598] sm:$0xff] }
  0x76   :  { %260 = vst [vmem:[#allocation2 + $0x3a0] sm:$0xff] %v259_v52  ;;  %v387_v52 = vld [vmem:[%s8213_s3 + $0x5a0] sm:$0xff] }
  0x77   :  { %262 = vst [vmem:[#allocation2 + $0x3a8] sm:$0xff] %v261_v53  ;;  %v389_v53 = vld [vmem:[%s8213_s3 + $0x5a8] sm:$0xff] }
  0x78   :  { %264 = vst [vmem:[#allocation2 + $0x3b0] sm:$0xff] %v263_v54  ;;  %v391_v54 = vld [vmem:[%s8213_s3 + $0x5b0] sm:$0xff] }
  0x79   :  { %266 = vst [vmem:[#allocation2 + $0x3b8] sm:$0xff] %v265_v55  ;;  %v393_v55 = vld [vmem:[%s8213_s3 + $0x5b8] sm:$0xff] }
  0x7a   :  { %268 = vst [vmem:[#allocation2 + $0x3c0] sm:$0xff] %v267_v56  ;;  %v395_v56 = vld [vmem:[%s8213_s3 + $0x5c0] sm:$0xff] }
  0x7b   :  { %270 = vst [vmem:[#allocation2 + $0x3c8] sm:$0xff] %v269_v57  ;;  %v397_v57 = vld [vmem:[%s8213_s3 + $0x5c8] sm:$0xff] }
  0x7c   :  { %272 = vst [vmem:[#allocation2 + $0x3d0] sm:$0xff] %v271_v58  ;;  %v399_v58 = vld [vmem:[%s8213_s3 + $0x5d0] sm:$0xff] }
  0x7d   :  { %274 = vst [vmem:[#allocation2 + $0x3d8] sm:$0xff] %v273_v59  ;;  %v401_v59 = vld [vmem:[%s8213_s3 + $0x5d8] sm:$0xff] }
  0x7e   :  { %276 = vst [vmem:[#allocation2 + $0x3e0] sm:$0xff] %v275_v60  ;;  %v403_v60 = vld [vmem:[%s8213_s3 + $0x5e0] sm:$0xff] }
  0x7f   :  { %278 = vst [vmem:[#allocation2 + $0x3e8] sm:$0xff] %v277_v61  ;;  %v405_v61 = vld [vmem:[%s8213_s3 + $0x5e8] sm:$0xff] }
  0x80   :  { %280 = vst [vmem:[#allocation2 + $0x3f0] sm:$0xff] %v279_v62  ;;  %v407_v62 = vld [vmem:[%s8213_s3 + $0x5f0] sm:$0xff] }
  0x81   :  { %282 = vst [vmem:[#allocation2 + $0x3f8] sm:$0xff] %v281_v63  ;;  %v409_v63 = vld [vmem:[%s8213_s3 + $0x5f8] sm:$0xff] }
  0x82   :  { %284 = vst [vmem:[#allocation2 + $0x400] sm:$0xff] %v283_v0  ;;  %v411_v0 = vld [vmem:[%s8213_s3 + $0x600] sm:$0xff] }
  0x83   :  { %286 = vst [vmem:[#allocation2 + $0x408] sm:$0xff] %v285_v1  ;;  %v413_v1 = vld [vmem:[%s8213_s3 + $0x608] sm:$0xff] }
  0x84   :  { %288 = vst [vmem:[#allocation2 + $0x410] sm:$0xff] %v287_v2  ;;  %v415_v2 = vld [vmem:[%s8213_s3 + $0x610] sm:$0xff] }
  0x85   :  { %290 = vst [vmem:[#allocation2 + $0x418] sm:$0xff] %v289_v3  ;;  %v417_v3 = vld [vmem:[%s8213_s3 + $0x618] sm:$0xff] }
  0x86   :  { %292 = vst [vmem:[#allocation2 + $0x420] sm:$0xff] %v291_v4  ;;  %v419_v4 = vld [vmem:[%s8213_s3 + $0x620] sm:$0xff] }
  0x87   :  { %294 = vst [vmem:[#allocation2 + $0x428] sm:$0xff] %v293_v5  ;;  %v421_v5 = vld [vmem:[%s8213_s3 + $0x628] sm:$0xff] }
  0x88   :  { %296 = vst [vmem:[#allocation2 + $0x430] sm:$0xff] %v295_v6  ;;  %v423_v6 = vld [vmem:[%s8213_s3 + $0x630] sm:$0xff] }
  0x89   :  { %298 = vst [vmem:[#allocation2 + $0x438] sm:$0xff] %v297_v7  ;;  %v425_v7 = vld [vmem:[%s8213_s3 + $0x638] sm:$0xff] }
  0x8a   :  { %300 = vst [vmem:[#allocation2 + $0x440] sm:$0xff] %v299_v8  ;;  %v427_v8 = vld [vmem:[%s8213_s3 + $0x640] sm:$0xff] }
  0x8b   :  { %302 = vst [vmem:[#allocation2 + $0x448] sm:$0xff] %v301_v9  ;;  %v429_v9 = vld [vmem:[%s8213_s3 + $0x648] sm:$0xff] }
  0x8c   :  { %304 = vst [vmem:[#allocation2 + $0x450] sm:$0xff] %v303_v10  ;;  %v431_v10 = vld [vmem:[%s8213_s3 + $0x650] sm:$0xff] }
  0x8d   :  { %306 = vst [vmem:[#allocation2 + $0x458] sm:$0xff] %v305_v11  ;;  %v433_v11 = vld [vmem:[%s8213_s3 + $0x658] sm:$0xff] }
  0x8e   :  { %308 = vst [vmem:[#allocation2 + $0x460] sm:$0xff] %v307_v12  ;;  %v435_v12 = vld [vmem:[%s8213_s3 + $0x660] sm:$0xff] }
  0x8f   :  { %310 = vst [vmem:[#allocation2 + $0x468] sm:$0xff] %v309_v13  ;;  %v437_v13 = vld [vmem:[%s8213_s3 + $0x668] sm:$0xff] }
  0x90   :  { %312 = vst [vmem:[#allocation2 + $0x470] sm:$0xff] %v311_v14  ;;  %v439_v14 = vld [vmem:[%s8213_s3 + $0x670] sm:$0xff] }
  0x91   :  { %314 = vst [vmem:[#allocation2 + $0x478] sm:$0xff] %v313_v15  ;;  %v441_v15 = vld [vmem:[%s8213_s3 + $0x678] sm:$0xff] }
  0x92   :  { %316 = vst [vmem:[#allocation2 + $0x480] sm:$0xff] %v315_v16  ;;  %v443_v16 = vld [vmem:[%s8213_s3 + $0x680] sm:$0xff] }
  0x93   :  { %318 = vst [vmem:[#allocation2 + $0x488] sm:$0xff] %v317_v17  ;;  %v445_v17 = vld [vmem:[%s8213_s3 + $0x688] sm:$0xff] }
  0x94   :  { %320 = vst [vmem:[#allocation2 + $0x490] sm:$0xff] %v319_v18  ;;  %v447_v18 = vld [vmem:[%s8213_s3 + $0x690] sm:$0xff] }
  0x95   :  { %322 = vst [vmem:[#allocation2 + $0x498] sm:$0xff] %v321_v19  ;;  %v449_v19 = vld [vmem:[%s8213_s3 + $0x698] sm:$0xff] }
  0x96   :  { %324 = vst [vmem:[#allocation2 + $0x4a0] sm:$0xff] %v323_v20  ;;  %v451_v20 = vld [vmem:[%s8213_s3 + $0x6a0] sm:$0xff] }
  0x97   :  { %326 = vst [vmem:[#allocation2 + $0x4a8] sm:$0xff] %v325_v21  ;;  %v453_v21 = vld [vmem:[%s8213_s3 + $0x6a8] sm:$0xff] }
  0x98   :  { %328 = vst [vmem:[#allocation2 + $0x4b0] sm:$0xff] %v327_v22  ;;  %v455_v22 = vld [vmem:[%s8213_s3 + $0x6b0] sm:$0xff] }
  0x99   :  { %330 = vst [vmem:[#allocation2 + $0x4b8] sm:$0xff] %v329_v23  ;;  %v457_v23 = vld [vmem:[%s8213_s3 + $0x6b8] sm:$0xff] }
  0x9a   :  { %332 = vst [vmem:[#allocation2 + $0x4c0] sm:$0xff] %v331_v24  ;;  %v459_v24 = vld [vmem:[%s8213_s3 + $0x6c0] sm:$0xff] }
  0x9b   :  { %334 = vst [vmem:[#allocation2 + $0x4c8] sm:$0xff] %v333_v25  ;;  %v461_v25 = vld [vmem:[%s8213_s3 + $0x6c8] sm:$0xff] }
  0x9c   :  { %336 = vst [vmem:[#allocation2 + $0x4d0] sm:$0xff] %v335_v26  ;;  %v463_v26 = vld [vmem:[%s8213_s3 + $0x6d0] sm:$0xff] }
  0x9d   :  { %338 = vst [vmem:[#allocation2 + $0x4d8] sm:$0xff] %v337_v27  ;;  %v465_v27 = vld [vmem:[%s8213_s3 + $0x6d8] sm:$0xff] }
  0x9e   :  { %340 = vst [vmem:[#allocation2 + $0x4e0] sm:$0xff] %v339_v28  ;;  %v467_v28 = vld [vmem:[%s8213_s3 + $0x6e0] sm:$0xff] }
  0x9f   :  { %342 = vst [vmem:[#allocation2 + $0x4e8] sm:$0xff] %v341_v29  ;;  %v469_v29 = vld [vmem:[%s8213_s3 + $0x6e8] sm:$0xff] }
  0xa0   :  { %344 = vst [vmem:[#allocation2 + $0x4f0] sm:$0xff] %v343_v30  ;;  %v471_v30 = vld [vmem:[%s8213_s3 + $0x6f0] sm:$0xff] }
  0xa1   :  { %346 = vst [vmem:[#allocation2 + $0x4f8] sm:$0xff] %v345_v31  ;;  %v473_v31 = vld [vmem:[%s8213_s3 + $0x6f8] sm:$0xff] }
  0xa2   :  { %348 = vst [vmem:[#allocation2 + $0x500] sm:$0xff] %v347_v32  ;;  %v475_v32 = vld [vmem:[%s8213_s3 + $0x700] sm:$0xff] }
  0xa3   :  { %350 = vst [vmem:[#allocation2 + $0x508] sm:$0xff] %v349_v33  ;;  %v477_v33 = vld [vmem:[%s8213_s3 + $0x708] sm:$0xff] }
  0xa4   :  { %352 = vst [vmem:[#allocation2 + $0x510] sm:$0xff] %v351_v34  ;;  %v479_v34 = vld [vmem:[%s8213_s3 + $0x710] sm:$0xff] }
  0xa5   :  { %354 = vst [vmem:[#allocation2 + $0x518] sm:$0xff] %v353_v35  ;;  %v481_v35 = vld [vmem:[%s8213_s3 + $0x718] sm:$0xff] }
  0xa6   :  { %356 = vst [vmem:[#allocation2 + $0x520] sm:$0xff] %v355_v36  ;;  %v483_v36 = vld [vmem:[%s8213_s3 + $0x720] sm:$0xff] }
  0xa7   :  { %358 = vst [vmem:[#allocation2 + $0x528] sm:$0xff] %v357_v37  ;;  %v485_v37 = vld [vmem:[%s8213_s3 + $0x728] sm:$0xff] }
  0xa8   :  { %360 = vst [vmem:[#allocation2 + $0x530] sm:$0xff] %v359_v38  ;;  %v487_v38 = vld [vmem:[%s8213_s3 + $0x730] sm:$0xff] }
  0xa9   :  { %362 = vst [vmem:[#allocation2 + $0x538] sm:$0xff] %v361_v39  ;;  %v489_v39 = vld [vmem:[%s8213_s3 + $0x738] sm:$0xff] }
  0xaa   :  { %364 = vst [vmem:[#allocation2 + $0x540] sm:$0xff] %v363_v40  ;;  %v491_v40 = vld [vmem:[%s8213_s3 + $0x740] sm:$0xff] }
  0xab   :  { %366 = vst [vmem:[#allocation2 + $0x548] sm:$0xff] %v365_v41  ;;  %v493_v41 = vld [vmem:[%s8213_s3 + $0x748] sm:$0xff] }
  0xac   :  { %368 = vst [vmem:[#allocation2 + $0x550] sm:$0xff] %v367_v42  ;;  %v495_v42 = vld [vmem:[%s8213_s3 + $0x750] sm:$0xff] }
  0xad   :  { %370 = vst [vmem:[#allocation2 + $0x558] sm:$0xff] %v369_v43  ;;  %v497_v43 = vld [vmem:[%s8213_s3 + $0x758] sm:$0xff] }
  0xae   :  { %372 = vst [vmem:[#allocation2 + $0x560] sm:$0xff] %v371_v44  ;;  %v499_v44 = vld [vmem:[%s8213_s3 + $0x760] sm:$0xff] }
  0xaf   :  { %374 = vst [vmem:[#allocation2 + $0x568] sm:$0xff] %v373_v45  ;;  %v501_v45 = vld [vmem:[%s8213_s3 + $0x768] sm:$0xff] }
  0xb0   :  { %376 = vst [vmem:[#allocation2 + $0x570] sm:$0xff] %v375_v46  ;;  %v503_v46 = vld [vmem:[%s8213_s3 + $0x770] sm:$0xff] }
  0xb1   :  { %378 = vst [vmem:[#allocation2 + $0x578] sm:$0xff] %v377_v47  ;;  %v505_v47 = vld [vmem:[%s8213_s3 + $0x778] sm:$0xff] }
  0xb2   :  { %380 = vst [vmem:[#allocation2 + $0x580] sm:$0xff] %v379_v48  ;;  %v507_v48 = vld [vmem:[%s8213_s3 + $0x780] sm:$0xff] }
  0xb3   :  { %382 = vst [vmem:[#allocation2 + $0x588] sm:$0xff] %v381_v49  ;;  %v509_v49 = vld [vmem:[%s8213_s3 + $0x788] sm:$0xff] }
  0xb4   :  { %384 = vst [vmem:[#allocation2 + $0x590] sm:$0xff] %v383_v50  ;;  %v511_v50 = vld [vmem:[%s8213_s3 + $0x790] sm:$0xff] }
  0xb5   :  { %386 = vst [vmem:[#allocation2 + $0x598] sm:$0xff] %v385_v51  ;;  %v513_v51 = vld [vmem:[%s8213_s3 + $0x798] sm:$0xff] }
  0xb6   :  { %388 = vst [vmem:[#allocation2 + $0x5a0] sm:$0xff] %v387_v52  ;;  %v515_v52 = vld [vmem:[%s8213_s3 + $0x7a0] sm:$0xff] }
  0xb7   :  { %390 = vst [vmem:[#allocation2 + $0x5a8] sm:$0xff] %v389_v53  ;;  %v517_v53 = vld [vmem:[%s8213_s3 + $0x7a8] sm:$0xff] }
  0xb8   :  { %392 = vst [vmem:[#allocation2 + $0x5b0] sm:$0xff] %v391_v54  ;;  %v519_v54 = vld [vmem:[%s8213_s3 + $0x7b0] sm:$0xff] }
  0xb9   :  { %394 = vst [vmem:[#allocation2 + $0x5b8] sm:$0xff] %v393_v55  ;;  %v521_v55 = vld [vmem:[%s8213_s3 + $0x7b8] sm:$0xff] }
  0xba   :  { %396 = vst [vmem:[#allocation2 + $0x5c0] sm:$0xff] %v395_v56  ;;  %v523_v56 = vld [vmem:[%s8213_s3 + $0x7c0] sm:$0xff] }
  0xbb   :  { %398 = vst [vmem:[#allocation2 + $0x5c8] sm:$0xff] %v397_v57  ;;  %v525_v57 = vld [vmem:[%s8213_s3 + $0x7c8] sm:$0xff] }
  0xbc   :  { %400 = vst [vmem:[#allocation2 + $0x5d0] sm:$0xff] %v399_v58  ;;  %v527_v58 = vld [vmem:[%s8213_s3 + $0x7d0] sm:$0xff] }
  0xbd   :  { %402 = vst [vmem:[#allocation2 + $0x5d8] sm:$0xff] %v401_v59  ;;  %v529_v59 = vld [vmem:[%s8213_s3 + $0x7d8] sm:$0xff] }
  0xbe   :  { %404 = vst [vmem:[#allocation2 + $0x5e0] sm:$0xff] %v403_v60 }
  0xbf   :  { %406 = vst [vmem:[#allocation2 + $0x5e8] sm:$0xff] %v405_v61 }
  0xc0   :  { %408 = vst [vmem:[#allocation2 + $0x5f0] sm:$0xff] %v407_v62 }
  0xc1   :  { %410 = vst [vmem:[#allocation2 + $0x5f8] sm:$0xff] %v409_v63 }
  0xc2   :  { %412 = vst [vmem:[#allocation2 + $0x600] sm:$0xff] %v411_v0 }
  0xc3   :  { %414 = vst [vmem:[#allocation2 + $0x608] sm:$0xff] %v413_v1 }
  0xc4   :  { %416 = vst [vmem:[#allocation2 + $0x610] sm:$0xff] %v415_v2 }
  0xc5   :  { %418 = vst [vmem:[#allocation2 + $0x618] sm:$0xff] %v417_v3 }
  0xc6   :  { %420 = vst [vmem:[#allocation2 + $0x620] sm:$0xff] %v419_v4 }
  0xc7   :  { %422 = vst [vmem:[#allocation2 + $0x628] sm:$0xff] %v421_v5 }
  0xc8   :  { %424 = vst [vmem:[#allocation2 + $0x630] sm:$0xff] %v423_v6 }
  0xc9   :  { %426 = vst [vmem:[#allocation2 + $0x638] sm:$0xff] %v425_v7 }
  0xca   :  { %428 = vst [vmem:[#allocation2 + $0x640] sm:$0xff] %v427_v8 }
  0xcb   :  { %430 = vst [vmem:[#allocation2 + $0x648] sm:$0xff] %v429_v9 }
  0xcc   :  { %432 = vst [vmem:[#allocation2 + $0x650] sm:$0xff] %v431_v10 }
  0xcd   :  { %434 = vst [vmem:[#allocation2 + $0x658] sm:$0xff] %v433_v11 }
  0xce   :  { %436 = vst [vmem:[#allocation2 + $0x660] sm:$0xff] %v435_v12 }
  0xcf   :  { %438 = vst [vmem:[#allocation2 + $0x668] sm:$0xff] %v437_v13 }
  0xd0   :  { %440 = vst [vmem:[#allocation2 + $0x670] sm:$0xff] %v439_v14 }
  0xd1   :  { %442 = vst [vmem:[#allocation2 + $0x678] sm:$0xff] %v441_v15 }
  0xd2   :  { %444 = vst [vmem:[#allocation2 + $0x680] sm:$0xff] %v443_v16 }
  0xd3   :  { %446 = vst [vmem:[#allocation2 + $0x688] sm:$0xff] %v445_v17 }
  0xd4   :  { %448 = vst [vmem:[#allocation2 + $0x690] sm:$0xff] %v447_v18 }
  0xd5   :  { %450 = vst [vmem:[#allocation2 + $0x698] sm:$0xff] %v449_v19 }
  0xd6   :  { %452 = vst [vmem:[#allocation2 + $0x6a0] sm:$0xff] %v451_v20 }
  0xd7   :  { %454 = vst [vmem:[#allocation2 + $0x6a8] sm:$0xff] %v453_v21 }
  0xd8   :  { %456 = vst [vmem:[#allocation2 + $0x6b0] sm:$0xff] %v455_v22 }
  0xd9   :  { %458 = vst [vmem:[#allocation2 + $0x6b8] sm:$0xff] %v457_v23 }
  0xda   :  { %460 = vst [vmem:[#allocation2 + $0x6c0] sm:$0xff] %v459_v24 }
  0xdb   :  { %462 = vst [vmem:[#allocation2 + $0x6c8] sm:$0xff] %v461_v25 }
  0xdc   :  { %464 = vst [vmem:[#allocation2 + $0x6d0] sm:$0xff] %v463_v26 }
  0xdd   :  { %466 = vst [vmem:[#allocation2 + $0x6d8] sm:$0xff] %v465_v27 }
  0xde   :  { %468 = vst [vmem:[#allocation2 + $0x6e0] sm:$0xff] %v467_v28 }
  0xdf   :  { %470 = vst [vmem:[#allocation2 + $0x6e8] sm:$0xff] %v469_v29 }
  0xe0   :  { %472 = vst [vmem:[#allocation2 + $0x6f0] sm:$0xff] %v471_v30 }
  0xe1   :  { %474 = vst [vmem:[#allocation2 + $0x6f8] sm:$0xff] %v473_v31 }
  0xe2   :  { %476 = vst [vmem:[#allocation2 + $0x700] sm:$0xff] %v475_v32 }
  0xe3   :  { %478 = vst [vmem:[#allocation2 + $0x708] sm:$0xff] %v477_v33 }
  0xe4   :  { %480 = vst [vmem:[#allocation2 + $0x710] sm:$0xff] %v479_v34 }
  0xe5   :  { %482 = vst [vmem:[#allocation2 + $0x718] sm:$0xff] %v481_v35 }
  0xe6   :  { %484 = vst [vmem:[#allocation2 + $0x720] sm:$0xff] %v483_v36 }
  0xe7   :  { %486 = vst [vmem:[#allocation2 + $0x728] sm:$0xff] %v485_v37 }
  0xe8   :  { %488 = vst [vmem:[#allocation2 + $0x730] sm:$0xff] %v487_v38 }
  0xe9   :  { %490 = vst [vmem:[#allocation2 + $0x738] sm:$0xff] %v489_v39 }
  0xea   :  { %492 = vst [vmem:[#allocation2 + $0x740] sm:$0xff] %v491_v40 }
  0xeb   :  { %494 = vst [vmem:[#allocation2 + $0x748] sm:$0xff] %v493_v41 }
  0xec   :  { %496 = vst [vmem:[#allocation2 + $0x750] sm:$0xff] %v495_v42 }
  0xed   :  { %498 = vst [vmem:[#allocation2 + $0x758] sm:$0xff] %v497_v43 }
  0xee   :  { %500 = vst [vmem:[#allocation2 + $0x760] sm:$0xff] %v499_v44 }
  0xef   :  { %502 = vst [vmem:[#allocation2 + $0x768] sm:$0xff] %v501_v45 }
  0xf0   :  { %504 = vst [vmem:[#allocation2 + $0x770] sm:$0xff] %v503_v46 }
  0xf1   :  { %506 = vst [vmem:[#allocation2 + $0x778] sm:$0xff] %v505_v47 }
  0xf2   :  { %508 = vst [vmem:[#allocation2 + $0x780] sm:$0xff] %v507_v48 }
  0xf3   :  { %510 = vst [vmem:[#allocation2 + $0x788] sm:$0xff] %v509_v49 }
  0xf4   :  { %512 = vst [vmem:[#allocation2 + $0x790] sm:$0xff] %v511_v50 }
  0xf5   :  { %514 = vst [vmem:[#allocation2 + $0x798] sm:$0xff] %v513_v51 }
  0xf6   :  { %516 = vst [vmem:[#allocation2 + $0x7a0] sm:$0xff] %v515_v52 }
  0xf7   :  { %518 = vst [vmem:[#allocation2 + $0x7a8] sm:$0xff] %v517_v53 }
  0xf8   :  { %520 = vst [vmem:[#allocation2 + $0x7b0] sm:$0xff] %v519_v54 }
  0xf9   :  { %522 = vst [vmem:[#allocation2 + $0x7b8] sm:$0xff] %v521_v55 }
  0xfa   :  { %524 = vst [vmem:[#allocation2 + $0x7c0] sm:$0xff] %v523_v56 }
  0xfb   :  { %526 = vst [vmem:[#allocation2 + $0x7c8] sm:$0xff] %v525_v57 }
  0xfc   :  { %528 = vst [vmem:[#allocation2 + $0x7d0] sm:$0xff] %v527_v58 }
  0xfd   :  { %530 = vst [vmem:[#allocation2 + $0x7d8] sm:$0xff] %v529_v59 }
  0xfe   :  { %536 = vsyncadd [#allocation4], 32256  ;;  %v548_v60 = vld [vmem:[%s8214_s4] sm:$0xff]  ;;  %v550_v61 = vld [vmem:[%s8214_s4 + $0x8] sm:$0xff]  ;;  %vm817_vm0 = vcmask 72704  }
  0xff   :  { %549 = vst [vmem:[#allocation3] sm:$0xff] %v548_v60  ;;  %v552_v62 = vld [vmem:[%s8214_s4 + $0x10] sm:$0xff]  ;;  %v554_v63 = vld [vmem:[%s8214_s4 + $0x18] sm:$0xff]  ;;  %v556_v0 = vld [vmem:[%s8214_s4 + $0x20] sm:$0xff] }
 0x100   :  { %551 = vst [vmem:[#allocation3 + $0x8] sm:$0xff] %v550_v61  ;;  %v558_v1 = vld [vmem:[%s8214_s4 + $0x28] sm:$0xff]  ;;  %v560_v2 = vld [vmem:[%s8214_s4 + $0x30] sm:$0xff]  ;;  %v562_v3 = vld [vmem:[%s8214_s4 + $0x38] sm:$0xff] }
 0x101   :  { %553 = vst [vmem:[#allocation3 + $0x10] sm:$0xff] %v552_v62  ;;  %v564_v4 = vld [vmem:[%s8214_s4 + $0x40] sm:$0xff]  ;;  %v566_v5 = vld [vmem:[%s8214_s4 + $0x48] sm:$0xff]  ;;  %v568_v6 = vld [vmem:[%s8214_s4 + $0x50] sm:$0xff] }
 0x102   :  { %555 = vst [vmem:[#allocation3 + $0x18] sm:$0xff] %v554_v63  ;;  %v570_v7 = vld [vmem:[%s8214_s4 + $0x58] sm:$0xff]  ;;  %v572_v8 = vld [vmem:[%s8214_s4 + $0x60] sm:$0xff]  ;;  %v574_v9 = vld [vmem:[%s8214_s4 + $0x68] sm:$0xff] }
 0x103   :  { %557 = vst [vmem:[#allocation3 + $0x20] sm:$0xff] %v556_v0  ;;  %v576_v10 = vld [vmem:[%s8214_s4 + $0x70] sm:$0xff]  ;;  %v578_v11 = vld [vmem:[%s8214_s4 + $0x78] sm:$0xff]  ;;  %v580_v12 = vld [vmem:[%s8214_s4 + $0x80] sm:$0xff] }
 0x104   :  { %559 = vst [vmem:[#allocation3 + $0x28] sm:$0xff] %v558_v1  ;;  %v582_v13 = vld [vmem:[%s8214_s4 + $0x88] sm:$0xff]  ;;  %v584_v14 = vld [vmem:[%s8214_s4 + $0x90] sm:$0xff]  ;;  %v586_v15 = vld [vmem:[%s8214_s4 + $0x98] sm:$0xff] }
 0x105   :  { %561 = vst [vmem:[#allocation3 + $0x30] sm:$0xff] %v560_v2  ;;  %v588_v16 = vld [vmem:[%s8214_s4 + $0xa0] sm:$0xff]  ;;  %v590_v17 = vld [vmem:[%s8214_s4 + $0xa8] sm:$0xff]  ;;  %v592_v18 = vld [vmem:[%s8214_s4 + $0xb0] sm:$0xff] }
 0x106   :  { %563 = vst [vmem:[#allocation3 + $0x38] sm:$0xff] %v562_v3  ;;  %v594_v19 = vld [vmem:[%s8214_s4 + $0xb8] sm:$0xff]  ;;  %v596_v20 = vld [vmem:[%s8214_s4 + $0xc0] sm:$0xff]  ;;  %v598_v21 = vld [vmem:[%s8214_s4 + $0xc8] sm:$0xff] }
 0x107   :  { %565 = vst [vmem:[#allocation3 + $0x40] sm:$0xff] %v564_v4  ;;  %v600_v22 = vld [vmem:[%s8214_s4 + $0xd0] sm:$0xff]  ;;  %v602_v23 = vld [vmem:[%s8214_s4 + $0xd8] sm:$0xff]  ;;  %v604_v24 = vld [vmem:[%s8214_s4 + $0xe0] sm:$0xff] }
 0x108   :  { %567 = vst [vmem:[#allocation3 + $0x48] sm:$0xff] %v566_v5  ;;  %v606_v25 = vld [vmem:[%s8214_s4 + $0xe8] sm:$0xff]  ;;  %v608_v26 = vld [vmem:[%s8214_s4 + $0xf0] sm:$0xff]  ;;  %v610_v27 = vld [vmem:[%s8214_s4 + $0xf8] sm:$0xff] }
 0x109   :  { %569 = vst [vmem:[#allocation3 + $0x50] sm:$0xff] %v568_v6  ;;  %v612_v28 = vld [vmem:[%s8214_s4 + $0x100] sm:$0xff]  ;;  %v614_v29 = vld [vmem:[%s8214_s4 + $0x108] sm:$0xff]  ;;  %v616_v30 = vld [vmem:[%s8214_s4 + $0x110] sm:$0xff] }
 0x10a   :  { %571 = vst [vmem:[#allocation3 + $0x58] sm:$0xff] %v570_v7  ;;  %v618_v31 = vld [vmem:[%s8214_s4 + $0x118] sm:$0xff]  ;;  %v620_v32 = vld [vmem:[%s8214_s4 + $0x120] sm:$0xff]  ;;  %v622_v33 = vld [vmem:[%s8214_s4 + $0x128] sm:$0xff] }
 0x10b   :  { %573 = vst [vmem:[#allocation3 + $0x60] sm:$0xff] %v572_v8  ;;  %v624_v34 = vld [vmem:[%s8214_s4 + $0x130] sm:$0xff]  ;;  %v626_v35 = vld [vmem:[%s8214_s4 + $0x138] sm:$0xff]  ;;  %v628_v36 = vld [vmem:[%s8214_s4 + $0x140] sm:$0xff] }
 0x10c   :  { %575 = vst [vmem:[#allocation3 + $0x68] sm:$0xff] %v574_v9  ;;  %v630_v37 = vld [vmem:[%s8214_s4 + $0x148] sm:$0xff]  ;;  %v632_v38 = vld [vmem:[%s8214_s4 + $0x150] sm:$0xff]  ;;  %v634_v39 = vld [vmem:[%s8214_s4 + $0x158] sm:$0xff] }
 0x10d   :  { %577 = vst [vmem:[#allocation3 + $0x70] sm:$0xff] %v576_v10  ;;  %v636_v40 = vld [vmem:[%s8214_s4 + $0x160] sm:$0xff]  ;;  %v638_v41 = vld [vmem:[%s8214_s4 + $0x168] sm:$0xff]  ;;  %v640_v42 = vld [vmem:[%s8214_s4 + $0x170] sm:$0xff] }
 0x10e   :  { %579 = vst [vmem:[#allocation3 + $0x78] sm:$0xff] %v578_v11  ;;  %v642_v43 = vld [vmem:[%s8214_s4 + $0x178] sm:$0xff]  ;;  %v644_v44 = vld [vmem:[%s8214_s4 + $0x180] sm:$0xff]  ;;  %v646_v45 = vld [vmem:[%s8214_s4 + $0x188] sm:$0xff] }
 0x10f   :  { %581 = vst [vmem:[#allocation3 + $0x80] sm:$0xff] %v580_v12  ;;  %v648_v46 = vld [vmem:[%s8214_s4 + $0x190] sm:$0xff]  ;;  %v650_v47 = vld [vmem:[%s8214_s4 + $0x198] sm:$0xff]  ;;  %v652_v48 = vld [vmem:[%s8214_s4 + $0x1a0] sm:$0xff] }
 0x110   :  { %583 = vst [vmem:[#allocation3 + $0x88] sm:$0xff] %v582_v13  ;;  %v654_v49 = vld [vmem:[%s8214_s4 + $0x1a8] sm:$0xff]  ;;  %v656_v50 = vld [vmem:[%s8214_s4 + $0x1b0] sm:$0xff]  ;;  %v658_v51 = vld [vmem:[%s8214_s4 + $0x1b8] sm:$0xff] }
 0x111   :  { %585 = vst [vmem:[#allocation3 + $0x90] sm:$0xff] %v584_v14  ;;  %v660_v52 = vld [vmem:[%s8214_s4 + $0x1c0] sm:$0xff]  ;;  %v662_v53 = vld [vmem:[%s8214_s4 + $0x1c8] sm:$0xff]  ;;  %v664_v54 = vld [vmem:[%s8214_s4 + $0x1d0] sm:$0xff] }
 0x112   :  { %587 = vst [vmem:[#allocation3 + $0x98] sm:$0xff] %v586_v15  ;;  %v666_v55 = vld [vmem:[%s8214_s4 + $0x1d8] sm:$0xff]  ;;  %v668_v56 = vld [vmem:[%s8214_s4 + $0x1e0] sm:$0xff]  ;;  %v670_v57 = vld [vmem:[%s8214_s4 + $0x1e8] sm:$0xff] }
 0x113   :  { %589 = vst [vmem:[#allocation3 + $0xa0] sm:$0xff] %v588_v16  ;;  %v672_v58 = vld [vmem:[%s8214_s4 + $0x1f0] sm:$0xff]  ;;  %v674_v59 = vld [vmem:[%s8214_s4 + $0x1f8] sm:$0xff]  ;;  %v676_v60 = vld [vmem:[%s8214_s4 + $0x200] sm:$0xff] }
 0x114   :  { %591 = vst [vmem:[#allocation3 + $0xa8] sm:$0xff] %v590_v17  ;;  %v678_v61 = vld [vmem:[%s8214_s4 + $0x208] sm:$0xff]  ;;  %v680_v62 = vld [vmem:[%s8214_s4 + $0x210] sm:$0xff]  ;;  %v682_v63 = vld [vmem:[%s8214_s4 + $0x218] sm:$0xff] }
 0x115   :  { %593 = vst [vmem:[#allocation3 + $0xb0] sm:$0xff] %v592_v18  ;;  %v684_v0 = vld [vmem:[%s8214_s4 + $0x220] sm:$0xff]  ;;  %v686_v1 = vld [vmem:[%s8214_s4 + $0x228] sm:$0xff]  ;;  %v688_v2 = vld [vmem:[%s8214_s4 + $0x230] sm:$0xff] }
 0x116   :  { %595 = vst [vmem:[#allocation3 + $0xb8] sm:$0xff] %v594_v19  ;;  %v690_v3 = vld [vmem:[%s8214_s4 + $0x238] sm:$0xff]  ;;  %v692_v4 = vld [vmem:[%s8214_s4 + $0x240] sm:$0xff]  ;;  %v694_v5 = vld [vmem:[%s8214_s4 + $0x248] sm:$0xff] }
 0x117   :  { %597 = vst [vmem:[#allocation3 + $0xc0] sm:$0xff] %v596_v20  ;;  %v696_v6 = vld [vmem:[%s8214_s4 + $0x250] sm:$0xff]  ;;  %v698_v7 = vld [vmem:[%s8214_s4 + $0x258] sm:$0xff]  ;;  %v700_v8 = vld [vmem:[%s8214_s4 + $0x260] sm:$0xff] }
 0x118   :  { %599 = vst [vmem:[#allocation3 + $0xc8] sm:$0xff] %v598_v21  ;;  %v702_v9 = vld [vmem:[%s8214_s4 + $0x268] sm:$0xff]  ;;  %v704_v10 = vld [vmem:[%s8214_s4 + $0x270] sm:$0xff]  ;;  %v706_v11 = vld [vmem:[%s8214_s4 + $0x278] sm:$0xff] }
 0x119   :  { %601 = vst [vmem:[#allocation3 + $0xd0] sm:$0xff] %v600_v22  ;;  %v708_v12 = vld [vmem:[%s8214_s4 + $0x280] sm:$0xff]  ;;  %v710_v13 = vld [vmem:[%s8214_s4 + $0x288] sm:$0xff]  ;;  %v712_v14 = vld [vmem:[%s8214_s4 + $0x290] sm:$0xff] }
 0x11a   :  { %603 = vst [vmem:[#allocation3 + $0xd8] sm:$0xff] %v602_v23  ;;  %v714_v15 = vld [vmem:[%s8214_s4 + $0x298] sm:$0xff]  ;;  %v716_v16 = vld [vmem:[%s8214_s4 + $0x2a0] sm:$0xff]  ;;  %v718_v17 = vld [vmem:[%s8214_s4 + $0x2a8] sm:$0xff] }
 0x11b   :  { %605 = vst [vmem:[#allocation3 + $0xe0] sm:$0xff] %v604_v24  ;;  %v720_v18 = vld [vmem:[%s8214_s4 + $0x2b0] sm:$0xff]  ;;  %v722_v19 = vld [vmem:[%s8214_s4 + $0x2b8] sm:$0xff]  ;;  %v724_v20 = vld [vmem:[%s8214_s4 + $0x2c0] sm:$0xff] }
 0x11c   :  { %607 = vst [vmem:[#allocation3 + $0xe8] sm:$0xff] %v606_v25  ;;  %v726_v21 = vld [vmem:[%s8214_s4 + $0x2c8] sm:$0xff]  ;;  %v728_v22 = vld [vmem:[%s8214_s4 + $0x2d0] sm:$0xff]  ;;  %v730_v23 = vld [vmem:[%s8214_s4 + $0x2d8] sm:$0xff] }
 0x11d   :  { %609 = vst [vmem:[#allocation3 + $0xf0] sm:$0xff] %v608_v26  ;;  %v732_v24 = vld [vmem:[%s8214_s4 + $0x2e0] sm:$0xff]  ;;  %v734_v25 = vld [vmem:[%s8214_s4 + $0x2e8] sm:$0xff]  ;;  %v736_v26 = vld [vmem:[%s8214_s4 + $0x2f0] sm:$0xff] }
 0x11e   :  { %611 = vst [vmem:[#allocation3 + $0xf8] sm:$0xff] %v610_v27  ;;  %v738_v27 = vld [vmem:[%s8214_s4 + $0x2f8] sm:$0xff] }
 0x11f   :  { %613 = vst [vmem:[#allocation3 + $0x100] sm:$0xff] %v612_v28  ;;  %v740_v28 = vld [vmem:[%s8214_s4 + $0x300] sm:$0xff] }
 0x120   :  { %615 = vst [vmem:[#allocation3 + $0x108] sm:$0xff] %v614_v29  ;;  %v742_v29 = vld [vmem:[%s8214_s4 + $0x308] sm:$0xff] }
 0x121   :  { %617 = vst [vmem:[#allocation3 + $0x110] sm:$0xff] %v616_v30  ;;  %v744_v30 = vld [vmem:[%s8214_s4 + $0x310] sm:$0xff] }
 0x122   :  { %619 = vst [vmem:[#allocation3 + $0x118] sm:$0xff] %v618_v31  ;;  %v746_v31 = vld [vmem:[%s8214_s4 + $0x318] sm:$0xff] }
 0x123   :  { %621 = vst [vmem:[#allocation3 + $0x120] sm:$0xff] %v620_v32  ;;  %v748_v32 = vld [vmem:[%s8214_s4 + $0x320] sm:$0xff] }
 0x124   :  { %623 = vst [vmem:[#allocation3 + $0x128] sm:$0xff] %v622_v33  ;;  %v750_v33 = vld [vmem:[%s8214_s4 + $0x328] sm:$0xff] }
 0x125   :  { %625 = vst [vmem:[#allocation3 + $0x130] sm:$0xff] %v624_v34  ;;  %v752_v34 = vld [vmem:[%s8214_s4 + $0x330] sm:$0xff] }
 0x126   :  { %627 = vst [vmem:[#allocation3 + $0x138] sm:$0xff] %v626_v35  ;;  %v754_v35 = vld [vmem:[%s8214_s4 + $0x338] sm:$0xff] }
 0x127   :  { %629 = vst [vmem:[#allocation3 + $0x140] sm:$0xff] %v628_v36  ;;  %v756_v36 = vld [vmem:[%s8214_s4 + $0x340] sm:$0xff] }
 0x128   :  { %631 = vst [vmem:[#allocation3 + $0x148] sm:$0xff] %v630_v37  ;;  %v758_v37 = vld [vmem:[%s8214_s4 + $0x348] sm:$0xff] }
 0x129   :  { %633 = vst [vmem:[#allocation3 + $0x150] sm:$0xff] %v632_v38  ;;  %v760_v38 = vld [vmem:[%s8214_s4 + $0x350] sm:$0xff] }
 0x12a   :  { %635 = vst [vmem:[#allocation3 + $0x158] sm:$0xff] %v634_v39  ;;  %v762_v39 = vld [vmem:[%s8214_s4 + $0x358] sm:$0xff] }
 0x12b   :  { %637 = vst [vmem:[#allocation3 + $0x160] sm:$0xff] %v636_v40  ;;  %v764_v40 = vld [vmem:[%s8214_s4 + $0x360] sm:$0xff] }
 0x12c   :  { %639 = vst [vmem:[#allocation3 + $0x168] sm:$0xff] %v638_v41  ;;  %v766_v41 = vld [vmem:[%s8214_s4 + $0x368] sm:$0xff] }
 0x12d   :  { %641 = vst [vmem:[#allocation3 + $0x170] sm:$0xff] %v640_v42  ;;  %v768_v42 = vld [vmem:[%s8214_s4 + $0x370] sm:$0xff] }
 0x12e   :  { %643 = vst [vmem:[#allocation3 + $0x178] sm:$0xff] %v642_v43  ;;  %v770_v43 = vld [vmem:[%s8214_s4 + $0x378] sm:$0xff] }
 0x12f   :  { %645 = vst [vmem:[#allocation3 + $0x180] sm:$0xff] %v644_v44  ;;  %v772_v44 = vld [vmem:[%s8214_s4 + $0x380] sm:$0xff] }
 0x130   :  { %647 = vst [vmem:[#allocation3 + $0x188] sm:$0xff] %v646_v45  ;;  %v774_v45 = vld [vmem:[%s8214_s4 + $0x388] sm:$0xff] }
 0x131   :  { %649 = vst [vmem:[#allocation3 + $0x190] sm:$0xff] %v648_v46  ;;  %v776_v46 = vld [vmem:[%s8214_s4 + $0x390] sm:$0xff] }
 0x132   :  { %651 = vst [vmem:[#allocation3 + $0x198] sm:$0xff] %v650_v47  ;;  %v778_v47 = vld [vmem:[%s8214_s4 + $0x398] sm:$0xff] }
 0x133   :  { %653 = vst [vmem:[#allocation3 + $0x1a0] sm:$0xff] %v652_v48  ;;  %v780_v48 = vld [vmem:[%s8214_s4 + $0x3a0] sm:$0xff] }
 0x134   :  { %655 = vst [vmem:[#allocation3 + $0x1a8] sm:$0xff] %v654_v49  ;;  %v782_v49 = vld [vmem:[%s8214_s4 + $0x3a8] sm:$0xff] }
 0x135   :  { %657 = vst [vmem:[#allocation3 + $0x1b0] sm:$0xff] %v656_v50  ;;  %v784_v50 = vld [vmem:[%s8214_s4 + $0x3b0] sm:$0xff] }
 0x136   :  { %659 = vst [vmem:[#allocation3 + $0x1b8] sm:$0xff] %v658_v51  ;;  %v786_v51 = vld [vmem:[%s8214_s4 + $0x3b8] sm:$0xff] }
 0x137   :  { %661 = vst [vmem:[#allocation3 + $0x1c0] sm:$0xff] %v660_v52  ;;  %v788_v52 = vld [vmem:[%s8214_s4 + $0x3c0] sm:$0xff] }
 0x138   :  { %663 = vst [vmem:[#allocation3 + $0x1c8] sm:$0xff] %v662_v53  ;;  %v790_v53 = vld [vmem:[%s8214_s4 + $0x3c8] sm:$0xff] }
 0x139   :  { %665 = vst [vmem:[#allocation3 + $0x1d0] sm:$0xff] %v664_v54  ;;  %v792_v54 = vld [vmem:[%s8214_s4 + $0x3d0] sm:$0xff] }
 0x13a   :  { %667 = vst [vmem:[#allocation3 + $0x1d8] sm:$0xff] %v666_v55  ;;  %v794_v55 = vld [vmem:[%s8214_s4 + $0x3d8] sm:$0xff] }
 0x13b   :  { %669 = vst [vmem:[#allocation3 + $0x1e0] sm:$0xff] %v668_v56  ;;  %v796_v56 = vld [vmem:[%s8214_s4 + $0x3e0] sm:$0xff] }
 0x13c   :  { %671 = vst [vmem:[#allocation3 + $0x1e8] sm:$0xff] %v670_v57  ;;  %v804_v57 = vld [vmem:[%s8210_s0] sm:$0xff] }
 0x13d   :  { %673 = vst [vmem:[#allocation3 + $0x1f0] sm:$0xff] %v672_v58 }
 0x13e   :  { %675 = vst [vmem:[#allocation3 + $0x1f8] sm:$0xff] %v674_v59 }
 0x13f   :  { %677 = vst [vmem:[#allocation3 + $0x200] sm:$0xff] %v676_v60 }
 0x140   :  { %679 = vst [vmem:[#allocation3 + $0x208] sm:$0xff] %v678_v61 }
 0x141   :  { %681 = vst [vmem:[#allocation3 + $0x210] sm:$0xff] %v680_v62 }
 0x142   :  { %683 = vst [vmem:[#allocation3 + $0x218] sm:$0xff] %v682_v63 }
 0x143   :  { %685 = vst [vmem:[#allocation3 + $0x220] sm:$0xff] %v684_v0 }
 0x144   :  { %687 = vst [vmem:[#allocation3 + $0x228] sm:$0xff] %v686_v1 }
 0x145   :  { %689 = vst [vmem:[#allocation3 + $0x230] sm:$0xff] %v688_v2 }
 0x146   :  { %691 = vst [vmem:[#allocation3 + $0x238] sm:$0xff] %v690_v3 }
 0x147   :  { %693 = vst [vmem:[#allocation3 + $0x240] sm:$0xff] %v692_v4 }
 0x148   :  { %695 = vst [vmem:[#allocation3 + $0x248] sm:$0xff] %v694_v5 }
 0x149   :  { %697 = vst [vmem:[#allocation3 + $0x250] sm:$0xff] %v696_v6 }
 0x14a   :  { %699 = vst [vmem:[#allocation3 + $0x258] sm:$0xff] %v698_v7 }
 0x14b   :  { %701 = vst [vmem:[#allocation3 + $0x260] sm:$0xff] %v700_v8 }
 0x14c   :  { %703 = vst [vmem:[#allocation3 + $0x268] sm:$0xff] %v702_v9 }
 0x14d   :  { %705 = vst [vmem:[#allocation3 + $0x270] sm:$0xff] %v704_v10 }
 0x14e   :  { %707 = vst [vmem:[#allocation3 + $0x278] sm:$0xff] %v706_v11 }
 0x14f   :  { %709 = vst [vmem:[#allocation3 + $0x280] sm:$0xff] %v708_v12 }
 0x150   :  { %711 = vst [vmem:[#allocation3 + $0x288] sm:$0xff] %v710_v13 }
 0x151   :  { %713 = vst [vmem:[#allocation3 + $0x290] sm:$0xff] %v712_v14 }
 0x152   :  { %715 = vst [vmem:[#allocation3 + $0x298] sm:$0xff] %v714_v15 }
 0x153   :  { %717 = vst [vmem:[#allocation3 + $0x2a0] sm:$0xff] %v716_v16 }
 0x154   :  { %719 = vst [vmem:[#allocation3 + $0x2a8] sm:$0xff] %v718_v17 }
 0x155   :  { %721 = vst [vmem:[#allocation3 + $0x2b0] sm:$0xff] %v720_v18 }
 0x156   :  { %723 = vst [vmem:[#allocation3 + $0x2b8] sm:$0xff] %v722_v19 }
 0x157   :  { %725 = vst [vmem:[#allocation3 + $0x2c0] sm:$0xff] %v724_v20 }
 0x158   :  { %727 = vst [vmem:[#allocation3 + $0x2c8] sm:$0xff] %v726_v21 }
 0x159   :  { %729 = vst [vmem:[#allocation3 + $0x2d0] sm:$0xff] %v728_v22 }
 0x15a   :  { %731 = vst [vmem:[#allocation3 + $0x2d8] sm:$0xff] %v730_v23 }
 0x15b   :  { %733 = vst [vmem:[#allocation3 + $0x2e0] sm:$0xff] %v732_v24 }
 0x15c   :  { %735 = vst [vmem:[#allocation3 + $0x2e8] sm:$0xff] %v734_v25 }
 0x15d   :  { %737 = vst [vmem:[#allocation3 + $0x2f0] sm:$0xff] %v736_v26 }
 0x15e   :  { %739 = vst [vmem:[#allocation3 + $0x2f8] sm:$0xff] %v738_v27 }
 0x15f   :  { %741 = vst [vmem:[#allocation3 + $0x300] sm:$0xff] %v740_v28 }
 0x160   :  { %743 = vst [vmem:[#allocation3 + $0x308] sm:$0xff] %v742_v29 }
 0x161   :  { %745 = vst [vmem:[#allocation3 + $0x310] sm:$0xff] %v744_v30 }
 0x162   :  { %747 = vst [vmem:[#allocation3 + $0x318] sm:$0xff] %v746_v31 }
 0x163   :  { %749 = vst [vmem:[#allocation3 + $0x320] sm:$0xff] %v748_v32 }
 0x164   :  { %751 = vst [vmem:[#allocation3 + $0x328] sm:$0xff] %v750_v33 }
 0x165   :  { %753 = vst [vmem:[#allocation3 + $0x330] sm:$0xff] %v752_v34 }
 0x166   :  { %755 = vst [vmem:[#allocation3 + $0x338] sm:$0xff] %v754_v35 }
 0x167   :  { %757 = vst [vmem:[#allocation3 + $0x340] sm:$0xff] %v756_v36 }
 0x168   :  { %759 = vst [vmem:[#allocation3 + $0x348] sm:$0xff] %v758_v37 }
 0x169   :  { %761 = vst [vmem:[#allocation3 + $0x350] sm:$0xff] %v760_v38 }
 0x16a   :  { %763 = vst [vmem:[#allocation3 + $0x358] sm:$0xff] %v762_v39 }
 0x16b   :  { %765 = vst [vmem:[#allocation3 + $0x360] sm:$0xff] %v764_v40 }
 0x16c   :  { %767 = vst [vmem:[#allocation3 + $0x368] sm:$0xff] %v766_v41 }
 0x16d   :  { %769 = vst [vmem:[#allocation3 + $0x370] sm:$0xff] %v768_v42 }
 0x16e   :  { %771 = vst [vmem:[#allocation3 + $0x378] sm:$0xff] %v770_v43 }
 0x16f   :  { %773 = vst [vmem:[#allocation3 + $0x380] sm:$0xff] %v772_v44 }
 0x170   :  { %775 = vst [vmem:[#allocation3 + $0x388] sm:$0xff] %v774_v45 }
 0x171   :  { %777 = vst [vmem:[#allocation3 + $0x390] sm:$0xff] %v776_v46 }
 0x172   :  { %779 = vst [vmem:[#allocation3 + $0x398] sm:$0xff] %v778_v47 }
 0x173   :  { %781 = vst [vmem:[#allocation3 + $0x3a0] sm:$0xff] %v780_v48 }
 0x174   :  { %783 = vst [vmem:[#allocation3 + $0x3a8] sm:$0xff] %v782_v49 }
 0x175   :  { %785 = vst [vmem:[#allocation3 + $0x3b0] sm:$0xff] %v784_v50 }
 0x176   :  { %787 = vst [vmem:[#allocation3 + $0x3b8] sm:$0xff] %v786_v51 }
 0x177   :  { %789 = vst [vmem:[#allocation3 + $0x3c0] sm:$0xff] %v788_v52 }
 0x178   :  { %791 = vst [vmem:[#allocation3 + $0x3c8] sm:$0xff] %v790_v53 }
 0x179   :  { %793 = vst [vmem:[#allocation3 + $0x3d0] sm:$0xff] %v792_v54 }
 0x17a   :  { %795 = vst [vmem:[#allocation3 + $0x3d8] sm:$0xff] %v794_v55 }
 0x17b   :  { %797 = vst [vmem:[#allocation3 + $0x3e0] sm:$0xff] %v796_v56 }
 0x17c   :  { %803 = vsyncadd [#allocation4 + $0x1], 16000  ;;  %v6626_v58 = vmov 0   ;;  %v6627_v59 = vmov 2   ;;  %v818_v60 = vsel %vm817_vm0, %v804_v57, 0.0  ;;  %v826_v61 = vmul.f32 %v804_v57, %v804_v57  ;;  %v7802_v34 = vld [vmem:[%s8211_s1] sm:$0xff] }
 0x17d   :  { %6577 = vset.pattern.permute.xlu0 %v6626_v58  ;;  %6579 = vset.pattern.permute.xlu1 %v6627_v59  ;;  %v819_v62 = vrot.slane %v818_v60, 4  ;;  %v6628_v19 = vmov 4   ;;  %v6629_v27 = vmov 1   ;;  %v6630_v28 = vmov 3   ;;  %v7807_v35 = vld [vmem:[%s8211_s1 + $0x8] sm:$0xff]  ;;  %v7812_v36 = vld [vmem:[%s8211_s1 + $0x10] sm:$0xff] }
 0x17e   :  { %v827_v63 = vsel %vm817_vm0, %v826_v61, 0.0  ;;  %6581 = vset.pattern.permute.xlu2 %v6628_v19  ;;  %v6631_v29 = vmov 5   ;;  %v6632_v30 = vmov 6   ;;  %v6633_v31 = vmov 8   ;;  %v7817_v37 = vld [vmem:[%s8211_s1 + $0x18] sm:$0xff] }
 0x17f   :  { %v820_v0 = vadd.f32 %v819_v62, %v818_v60  ;;  %v828_v1 = vrot.slane %v827_v63, 4  ;;  %v6634_v32 = vmov 7   ;;  %v856_v38 = vperm.slane %v7802_v34, 0 }
 0x180   :  { %v857_v39 = vperm.slane %v7807_v35, 0  ;;  %v858_v40 = vperm.slane %v7812_v36, 0  ;;  %v859_v41 = vperm.slane %v7817_v37, 0  ;;  %v884_v43 = vperm.slane %v7802_v34, 2 }
 0x181   :  { %v821_v2 = vrot.slane %v820_v0, 2  ;;  %v829_v3 = vadd.f32 %v828_v1, %v827_v63  ;;  %v885_v44 = vperm.slane %v7807_v35, 2  ;;  %v886_v45 = vperm.slane %v7812_v36, 2 }
 0x182   :  { %v887_v46 = vperm.slane %v7817_v37, 2  ;;  %v916_v48 = vperm.slane %v7802_v34, 4  ;;  %v917_v49 = vperm.slane %v7807_v35, 4  ;;  %v918_v50 = vperm.slane %v7812_v36, 4 }
 0x183   :  { %v822_v4 = vadd.f32 %v821_v2, %v820_v0  ;;  %v830_v5 = vrot.slane %v829_v3, 2  ;;  %v919_v51 = vperm.slane %v7817_v37, 4  ;;  %v868_v52 = vperm.slane %v7802_v34, 1 }
 0x184   :  { %v869_v53 = vperm.slane %v7807_v35, 1  ;;  %v870_v54 = vperm.slane %v7812_v36, 1  ;;  %v871_v55 = vperm.slane %v7817_v37, 1  ;;  %v932_v56 = vperm.slane %v7802_v34, 5 }
 0x185   :  { %v823_v6 = vrot.slane %v822_v4, 1  ;;  %v831_v7 = vadd.f32 %v830_v5, %v829_v3  ;;  %v934_v58 = vperm.slane %v7812_v36, 5  ;;  %v935_v59 = vperm.slane %v7817_v37, 5 }
 0x186   :  { %v900_v60 = vperm.slane %v7802_v34, 3  ;;  %v901_v61 = vperm.slane %v7807_v35, 3  ;;  %v902_v62 = vperm.slane %v7812_v36, 3  ;;  %v903_v63 = vperm.slane %v7817_v37, 3 }
 0x187   :  { %v824_v8 = vadd.f32 %v823_v6, %v822_v4  ;;  %v832_v9 = vrot.slane %v831_v7, 1  ;;  %v948_v5 = vperm.slane %v7802_v34, 6  ;;  %v949_v6 = vperm.slane %v7807_v35, 6 }
 0x188   :  { %vm1022_vm4 = vcmask 949248  }
 0x189   :  { %v825_v10 = vmul.f32 0.125, %v824_v8  ;;  %v833_v11 = vadd.f32 %v832_v9, %v831_v7  ;;  %v950_v7 = vperm.slane %v7812_v36, 6  ;;  %v951_v8 = vperm.slane %v7817_v37, 6 }
 0x18b   :  { %v834_v12 = vmul.f32 0.125, %v833_v11  ;;  %v835_v13 = vmul.f32 %v825_v10, %v825_v10  ;;  %v838_v23 = vsub.f32 %v804_v57, %v825_v10  ;;  %v933_v57 = vperm.slane %v7807_v35, 5 }
 0x18d   :  { %v836_v14 = vsub.f32 %v834_v12, %v835_v13  ;;  %v964_v13 = vperm.slane %v7802_v34, 7 }
 0x18f   :  { %v837_v15 = vmax.f32 %v836_v14, 0.0  ;;  %v965_v14 = vperm.slane %v7807_v35, 7 }
 0x191   :  { %v839_v16 = vadd.f32 1e-05, %v837_v15  ;;  %v966_v15 = vperm.slane %v7812_v36, 7  ;;  %v7859_v36 = vld [vmem:[%s8211_s1 + $0x48] sm:$0xff] }
 0x193   :  { %6586 = vrsqrt.f32 %v839_v16  ;;  %vm846_vm1 = vweird.f32 %v839_v16 }
 0x199   :  { %v6587_v17 = vpop.eup %6586 }
 0x19a   :  { %v841_v18 = vmul.f32 %v6587_v17, %v839_v16  ;;  %vm847_vm2 = vweird.f32 %v6587_v17  ;;  %v967_v16 = vperm.slane %v7817_v37, 7  ;;  %v7864_v37 = vld [vmem:[%s8211_s1 + $0x50] sm:$0xff] }
 0x19b   :  { %vm848_vm3 = vmor %vm846_vm1, %vm847_vm2 }
 0x19c   :  { %v842_v20 = vmul.f32 %v6587_v17, %v841_v18 }
 0x19e   :  { %v843_v21 = vmul.f32 0.5, %v842_v20 }
 0x1a0   :  { %v844_v22 = vsub.f32 1.5, %v843_v21 }
 0x1a2   :  { %v845_v24 = vmul.f32 %v6587_v17, %v844_v22 }
 0x1a4   :  { %v849_v25 = vsel %vm848_vm3, %v6587_v17, %v845_v24 }
 0x1a5   :  { %v850_v26 = vmul.f32 %v849_v25, %v838_v23 }
 0x1a7   :  { %853 = vperm.xlu0 %6577, %v850_v26   ;;  %881 = vperm.xlu1 %6579, %v850_v26  }
 0x1a8   :  { %913 = vperm.xlu2 %6581, %v850_v26  }
 0x1af   :  { %6578 = vset.pattern.permute.xlu0 %v6629_v27  ;;  %6580 = vset.pattern.permute.xlu1 %v6630_v28 }
 0x1b0   :  { %865 = vperm.xlu0 %6578, %v850_v26   ;;  %897 = vperm.xlu1 %6580, %v850_v26  }
 0x1b1   :  { %6582 = vset.pattern.permute.xlu2 %v6631_v29 }
 0x1b2   :  { %929 = vperm.xlu2 %6582, %v850_v26  }
 0x1b8   :  { %6583 = vset.pattern.permute.xlu1 %v6632_v30  ;;  %6585 = vset.pattern.permute.xlu0 %v6633_v31  ;;  %v7854_v31 = vld [vmem:[%s8211_s1 + $0x40] sm:$0xff] }
 0x1b9   :  { %945 = vperm.xlu1 %6583, %v850_v26   ;;  %977 = vperm.xlu0 %6585, %v850_v26  }
 0x1ba   :  { %6584 = vset.pattern.permute.xlu2 %v6634_v32 }
 0x1bb   :  { %961 = vperm.xlu2 %6584, %v850_v26  }
 0x202   :  { %v914_v33 = vpop.permute.xlu2 %913 }
 0x203   :  { %v920_v1 = vmul.f32 %v916_v48, %v914_v33  ;;  %v921_v2 = vmul.f32 %v917_v49, %v914_v33  ;;  %v922_v3 = vmul.f32 %v918_v50, %v914_v33  ;;  %v923_v4 = vmul.f32 %v919_v51, %v914_v33 }
 0x204   :  { %v980_v48 = vperm.slane %v7854_v31, 0  ;;  %v981_v49 = vperm.slane %v7859_v36, 0  ;;  %v982_v50 = vperm.slane %v7864_v37, 0 }
 0x20c   :  { %v930_v0 = vpop.permute.xlu2 %929 }
 0x20d   :  { %v936_v9 = vmul.f32 %v932_v56, %v930_v0  ;;  %v937_v10 = vmul.f32 %v933_v57, %v930_v0  ;;  %v938_v11 = vmul.f32 %v934_v58, %v930_v0  ;;  %v939_v12 = vmul.f32 %v935_v59, %v930_v0 }
 0x219   :  { %v854_v42 = vpop.permute.xlu0 %853  ;;  %v882_v47 = vpop.permute.xlu1 %881 }
 0x21a   :  { %v860_v17 = vmul.f32 %v856_v38, %v854_v42  ;;  %v861_v18 = vmul.f32 %v857_v39, %v854_v42  ;;  %v862_v19 = vmul.f32 %v858_v40, %v854_v42  ;;  %v863_v20 = vmul.f32 %v859_v41, %v854_v42  ;;  %v7869_v38 = vld [vmem:[%s8211_s1 + $0x58] sm:$0xff] }
 0x21b   :  { %v888_v27 = vmul.f32 %v884_v43, %v882_v47  ;;  %v889_v28 = vmul.f32 %v885_v44, %v882_v47  ;;  %v890_v29 = vmul.f32 %v886_v45, %v882_v47  ;;  %v891_v30 = vmul.f32 %v887_v46, %v882_v47  ;;  %v962_v47 = vpop.permute.xlu2 %961 }
 0x21c   :  { %v983_v51 = vperm.slane %v7869_v38, 0  ;;  %v968_v56 = vmul.f32 %v964_v13, %v962_v47  ;;  %v969_v57 = vmul.f32 %v965_v14, %v962_v47  ;;  %v970_v58 = vmul.f32 %v966_v15, %v962_v47 }
 0x21d   :  { %v971_v59 = vmul.f32 %v967_v16, %v962_v47 }
 0x222   :  { %v866_v21 = vpop.permute.xlu0 %865  ;;  %v898_v22 = vpop.permute.xlu1 %897 }
 0x223   :  { %v872_v23 = vmul.f32 %v868_v52, %v866_v21  ;;  %v873_v24 = vmul.f32 %v869_v53, %v866_v21  ;;  %v874_v25 = vmul.f32 %v870_v54, %v866_v21  ;;  %v875_v26 = vmul.f32 %v871_v55, %v866_v21 }
 0x224   :  { %v904_v39 = vmul.f32 %v900_v60, %v898_v22  ;;  %v905_v40 = vmul.f32 %v901_v61, %v898_v22  ;;  %v906_v41 = vmul.f32 %v902_v62, %v898_v22  ;;  %v907_v42 = vmul.f32 %v903_v63, %v898_v22 }
 0x225   :  { %v876_v32 = vadd.f32 %v872_v23, %v860_v17  ;;  %v877_v33 = vadd.f32 %v873_v24, %v861_v18  ;;  %v878_v34 = vadd.f32 %v874_v25, %v862_v19  ;;  %v879_v35 = vadd.f32 %v875_v26, %v863_v20 }
 0x227   :  { %v892_v43 = vadd.f32 %v888_v27, %v876_v32  ;;  %v893_v44 = vadd.f32 %v889_v28, %v877_v33  ;;  %v894_v45 = vadd.f32 %v890_v29, %v878_v34  ;;  %v895_v46 = vadd.f32 %v891_v30, %v879_v35 }
 0x229   :  { %v908_v52 = vadd.f32 %v904_v39, %v892_v43  ;;  %v909_v53 = vadd.f32 %v905_v40, %v893_v44  ;;  %v910_v54 = vadd.f32 %v906_v41, %v894_v45  ;;  %v911_v55 = vadd.f32 %v907_v42, %v895_v46 }
 0x22b   :  { %v946_v60 = vpop.permute.xlu1 %945  ;;  %v924_v61 = vadd.f32 %v920_v1, %v908_v52  ;;  %v925_v62 = vadd.f32 %v921_v2, %v909_v53  ;;  %v926_v63 = vadd.f32 %v922_v3, %v910_v54  ;;  %v927_v0 = vadd.f32 %v923_v4, %v911_v55  ;;  %v978_v17 = vpop.permute.xlu0 %977 }
 0x22c   :  { %v952_v18 = vmul.f32 %v948_v5, %v946_v60  ;;  %v953_v19 = vmul.f32 %v949_v6, %v946_v60  ;;  %v954_v20 = vmul.f32 %v950_v7, %v946_v60  ;;  %v955_v21 = vmul.f32 %v951_v8, %v946_v60 }
 0x22d   :  { %v940_v22 = vadd.f32 %v936_v9, %v924_v61  ;;  %v941_v23 = vadd.f32 %v937_v10, %v925_v62  ;;  %v942_v24 = vadd.f32 %v938_v11, %v926_v63  ;;  %v943_v25 = vadd.f32 %v939_v12, %v927_v0 }
 0x22e   :  { %v984_v26 = vmul.f32 %v980_v48, %v978_v17  ;;  %v985_v27 = vmul.f32 %v981_v49, %v978_v17  ;;  %v986_v13 = vmul.f32 %v982_v50, %v978_v17  ;;  %v987_v14 = vmul.f32 %v983_v51, %v978_v17 }
 0x22f   :  { %v956_v15 = vadd.f32 %v952_v18, %v940_v22  ;;  %v957_v16 = vadd.f32 %v953_v19, %v941_v23  ;;  %v958_v28 = vadd.f32 %v954_v20, %v942_v24  ;;  %v959_v1 = vadd.f32 %v955_v21, %v943_v25 }
 0x230   :  { %v992_v2 = vperm.slane %v7854_v31, 1  ;;  %v993_v3 = vperm.slane %v7859_v36, 1  ;;  %v994_v4 = vperm.slane %v7864_v37, 1  ;;  %v995_v5 = vperm.slane %v7869_v38, 1 }
 0x231   :  { %v972_v6 = vadd.f32 %v968_v56, %v956_v15  ;;  %v973_v7 = vadd.f32 %v969_v57, %v957_v16  ;;  %v974_v8 = vadd.f32 %v970_v58, %v958_v28  ;;  %v975_v9 = vadd.f32 %v971_v59, %v959_v1 }
 0x233   :  { %v988_v10 = vadd.f32 %v984_v26, %v972_v6  ;;  %v989_v11 = vadd.f32 %v985_v27, %v973_v7  ;;  %v990_v12 = vadd.f32 %v986_v13, %v974_v8  ;;  %v991_v29 = vadd.f32 %v987_v14, %v975_v9 }
 0x235   :  { %v996_v30 = vadd.f32 %v992_v2, %v988_v10  ;;  %v997_v32 = vadd.f32 %v993_v3, %v989_v11  ;;  %v998_v33 = vadd.f32 %v994_v4, %v990_v12  ;;  %v999_v34 = vadd.f32 %v995_v5, %v991_v29 }
 0x237   :  { %v7879_v35 = vmax.f32 %v996_v30, 0.0  ;;  %v7881_v39 = vmax.f32 %v997_v32, 0.0  ;;  %v7883_v40 = vmax.f32 %v998_v33, 0.0  ;;  %v7885_v41 = vmax.f32 %v999_v34, 0.0 }
 0x239   :  { %v1004_v42 = vrot.slane %v7879_v35, 4  ;;  %v1010_v43 = vrot.slane %v7881_v39, 4  ;;  %v1016_v44 = vrot.slane %v7883_v40, 4  ;;  %v1023_v45 = vsel %vm1022_vm4, %v7885_v41, 0.0 }
 0x23a   :  { %v1024_v46 = vrot.slane %v1023_v45, 4  ;;  %v1034_v47 = vmul.f32 %v7879_v35, %v7879_v35  ;;  %v1035_v48 = vmul.f32 %v7881_v39, %v7881_v39  ;;  %v1036_v49 = vmul.f32 %v7883_v40, %v7883_v40 }
 0x23b   :  { %v1005_v50 = vadd.f32 %v1004_v42, %v7879_v35  ;;  %v1011_v51 = vadd.f32 %v1010_v43, %v7881_v39  ;;  %v1017_v52 = vadd.f32 %v1016_v44, %v7883_v40  ;;  %v1037_v53 = vmul.f32 %v7885_v41, %v7885_v41 }
 0x23c   :  { %v1025_v54 = vadd.f32 %v1024_v46, %v1023_v45  ;;  %v1038_v55 = vrot.slane %v1034_v47, 4  ;;  %v1044_v56 = vrot.slane %v1035_v48, 4  ;;  %v1050_v57 = vrot.slane %v1036_v49, 4  ;;  %v7921_v46 = vld [vmem:[%s8211_s1 + $0x60] sm:$0xff] }
 0x23d   :  { %v1006_v58 = vrot.slane %v1005_v50, 2  ;;  %v1012_v59 = vrot.slane %v1011_v51, 2  ;;  %v1018_v60 = vrot.slane %v1017_v52, 2  ;;  %v1056_v61 = vsel %vm1022_vm4, %v1037_v53, 0.0 }
 0x23e   :  { %v1026_v62 = vrot.slane %v1025_v54, 2  ;;  %v1039_v63 = vadd.f32 %v1038_v55, %v1034_v47  ;;  %v1045_v0 = vadd.f32 %v1044_v56, %v1035_v48  ;;  %v1051_v17 = vadd.f32 %v1050_v57, %v1036_v49  ;;  %v7926_v47 = vld [vmem:[%s8211_s1 + $0x68] sm:$0xff]  ;;  %v7931_v48 = vld [vmem:[%s8211_s1 + $0x70] sm:$0xff] }
 0x23f   :  { %v1007_v18 = vadd.f32 %v1006_v58, %v1005_v50  ;;  %v1013_v19 = vadd.f32 %v1012_v59, %v1011_v51  ;;  %v1019_v20 = vadd.f32 %v1018_v60, %v1017_v52  ;;  %v1057_v21 = vrot.slane %v1056_v61, 4  ;;  %v7936_v52 = vld [vmem:[%s8211_s1 + $0x78] sm:$0xff] }
 0x240   :  { %v1027_v22 = vadd.f32 %v1026_v62, %v1025_v54  ;;  %v1040_v23 = vrot.slane %v1039_v63, 2  ;;  %v1046_v24 = vrot.slane %v1045_v0, 2  ;;  %v1052_v25 = vrot.slane %v1051_v17, 2 }
 0x241   :  { %v1008_v26 = vrot.slane %v1007_v18, 1  ;;  %v1014_v27 = vrot.slane %v1013_v19, 1  ;;  %v1020_v13 = vrot.slane %v1019_v20, 1  ;;  %v1058_v14 = vadd.f32 %v1057_v21, %v1056_v61 }
 0x242   :  { %v1028_v15 = vrot.slane %v1027_v22, 1  ;;  %v1041_v16 = vadd.f32 %v1040_v23, %v1039_v63  ;;  %v1047_v28 = vadd.f32 %v1046_v24, %v1045_v0  ;;  %v1053_v1 = vadd.f32 %v1052_v25, %v1051_v17 }
 0x243   :  { %v1009_v2 = vadd.f32 %v1008_v26, %v1007_v18  ;;  %v1015_v3 = vadd.f32 %v1014_v27, %v1013_v19  ;;  %v1021_v4 = vadd.f32 %v1020_v13, %v1019_v20  ;;  %v1059_v5 = vrot.slane %v1058_v14, 2 }
 0x244   :  { %v1029_v6 = vadd.f32 %v1028_v15, %v1027_v22  ;;  %v1042_v7 = vrot.slane %v1041_v16, 1  ;;  %v1048_v8 = vrot.slane %v1047_v28, 1  ;;  %v1054_v9 = vrot.slane %v1053_v1, 1 }
 0x245   :  { %v7904_v10 = vmul.f32 0.125, %v1009_v2  ;;  %v7906_v11 = vmul.f32 0.125, %v1015_v3  ;;  %v7908_v12 = vmul.f32 0.125, %v1021_v4  ;;  %v1060_v29 = vadd.f32 %v1059_v5, %v1058_v14 }
 0x246   :  { %v7910_v30 = vmul.f32 0.125, %v1029_v6  ;;  %v1043_v32 = vadd.f32 %v1042_v7, %v1041_v16  ;;  %v1049_v33 = vadd.f32 %v1048_v8, %v1047_v28  ;;  %v1055_v34 = vadd.f32 %v1054_v9, %v1053_v1 }
 0x247   :  { %v1061_v42 = vrot.slane %v1060_v29, 1  ;;  %v1067_v43 = vmul.f32 %v7904_v10, %v7904_v10  ;;  %v1068_v44 = vmul.f32 %v7906_v11, %v7906_v11  ;;  %v1069_v45 = vmul.f32 %v7908_v12, %v7908_v12 }
 0x248   :  { %v1063_v49 = vmul.f32 0.125, %v1043_v32  ;;  %v1064_v50 = vmul.f32 0.125, %v1049_v33  ;;  %v1065_v51 = vmul.f32 0.125, %v1055_v34  ;;  %v1070_v54 = vmul.f32 %v7910_v30, %v7910_v30 }
 0x249   :  { %v1062_v53 = vadd.f32 %v1061_v42, %v1060_v29  ;;  %v1079_v2 = vsub.f32 %v7879_v35, %v7904_v10  ;;  %v1080_v5 = vsub.f32 %v7881_v39, %v7906_v11  ;;  %v1081_v35 = vsub.f32 %v7883_v40, %v7908_v12 }
 0x24a   :  { %v1071_v55 = vsub.f32 %v1063_v49, %v1067_v43  ;;  %v1072_v56 = vsub.f32 %v1064_v50, %v1068_v44  ;;  %v1073_v57 = vsub.f32 %v1065_v51, %v1069_v45  ;;  %v1082_v42 = vsub.f32 %v7885_v41, %v7910_v30 }
 0x24b   :  { %v1066_v58 = vmul.f32 0.125, %v1062_v53 }
 0x24c   :  { %v1075_v59 = vmax.f32 %v1071_v55, 0.0  ;;  %v1076_v60 = vmax.f32 %v1072_v56, 0.0  ;;  %v1077_v61 = vmax.f32 %v1073_v57, 0.0 }
 0x24d   :  { %v1074_v62 = vsub.f32 %v1066_v58, %v1070_v54 }
 0x24e   :  { %v1083_v63 = vadd.f32 1e-05, %v1075_v59  ;;  %v1084_v0 = vadd.f32 1e-05, %v1076_v60  ;;  %v1085_v17 = vadd.f32 1e-05, %v1077_v61 }
 0x24f   :  { %v1078_v18 = vmax.f32 %v1074_v62, 0.0 }
 0x250   :  { %6588 = vrsqrt.f32 %v1083_v63  ;;  %vm1093_vm7 = vweird.f32 %v1083_v63  ;;  %vm1103_vm10 = vweird.f32 %v1084_v0  ;;  %vm1113_vm13 = vweird.f32 %v1085_v17 }
 0x251   :  { %v1086_v19 = vadd.f32 1e-05, %v1078_v18  ;;  %6590 = vrsqrt.f32 %v1084_v0 }
 0x252   :  { %6592 = vrsqrt.f32 %v1085_v17 }
 0x253   :  { %6594 = vrsqrt.f32 %v1086_v19  ;;  %vm1123_vm15 = vweird.f32 %v1086_v19 }
 0x256   :  { %v6589_v20 = vpop.eup %6588 }
 0x257   :  { %v6591_v21 = vpop.eup %6590  ;;  %v1088_v22 = vmul.f32 %v6589_v20, %v1083_v63  ;;  %vm1094_vm5 = vweird.f32 %v6589_v20 }
 0x258   :  { %v6593_v23 = vpop.eup %6592  ;;  %v1098_v24 = vmul.f32 %v6591_v21, %v1084_v0  ;;  %vm1104_vm6 = vweird.f32 %v6591_v21  ;;  %vm1095_vm9 = vmor %vm1093_vm7, %vm1094_vm5 }
 0x259   :  { %v6595_v25 = vpop.eup %6594  ;;  %v1089_v26 = vmul.f32 %v6589_v20, %v1088_v22  ;;  %v1108_v27 = vmul.f32 %v6593_v23, %v1085_v17  ;;  %vm1114_vm8 = vweird.f32 %v6593_v23  ;;  %vm1105_vm12 = vmor %vm1103_vm10, %vm1104_vm6 }
 0x25a   :  { %v1099_v13 = vmul.f32 %v6591_v21, %v1098_v24  ;;  %v1118_v14 = vmul.f32 %v6595_v25, %v1086_v19  ;;  %vm1124_vm11 = vweird.f32 %v6595_v25  ;;  %vm1115_vm14 = vmor %vm1113_vm13, %vm1114_vm8 }
 0x25b   :  { %v1090_v15 = vmul.f32 0.5, %v1089_v26  ;;  %v1109_v16 = vmul.f32 %v6593_v23, %v1108_v27  ;;  %vm1125_vm0 = vmor %vm1123_vm15, %vm1124_vm11 }
 0x25c   :  { %v1100_v28 = vmul.f32 0.5, %v1099_v13  ;;  %v1119_v1 = vmul.f32 %v6595_v25, %v1118_v14 }
 0x25d   :  { %v1091_v3 = vsub.f32 1.5, %v1090_v15  ;;  %v1110_v4 = vmul.f32 0.5, %v1109_v16 }
 0x25e   :  { %v1101_v6 = vsub.f32 1.5, %v1100_v28  ;;  %v1120_v7 = vmul.f32 0.5, %v1119_v1 }
 0x25f   :  { %v1092_v8 = vmul.f32 %v6589_v20, %v1091_v3  ;;  %v1111_v9 = vsub.f32 1.5, %v1110_v4 }
 0x260   :  { %v1102_v29 = vmul.f32 %v6591_v21, %v1101_v6  ;;  %v1121_v32 = vsub.f32 1.5, %v1120_v7 }
 0x261   :  { %v1096_v10 = vsel %vm1095_vm9, %v6589_v20, %v1092_v8  ;;  %v1112_v33 = vmul.f32 %v6593_v23, %v1111_v9 }
 0x262   :  { %v1106_v39 = vsel %vm1105_vm12, %v6591_v21, %v1102_v29  ;;  %v1122_v11 = vmul.f32 %v6595_v25, %v1121_v32  ;;  %v1127_v34 = vmul.f32 %v1096_v10, %v1079_v2 }
 0x263   :  { %v1116_v43 = vsel %vm1115_vm14, %v6593_v23, %v1112_v33  ;;  %v1128_v44 = vmul.f32 %v1106_v39, %v1080_v5 }
 0x264   :  { %v1126_v45 = vsel %vm1125_vm0, %v6595_v25, %v1122_v11  ;;  %v1129_v49 = vmul.f32 %v1116_v43, %v1081_v35  ;;  %v7948_v50 = vpack.c.bf16 %v1127_v34, %v1127_v34 }
 0x265   :  { %v1130_v40 = vmul.f32 %v1126_v45, %v1082_v42  ;;  %v7950_v12 = vpack.c.bf16 %v1128_v44, %v1128_v44 }
 0x266   :  { %v7952_v51 = vpack.c.bf16 %v1129_v49, %v1129_v49 }
 0x267   :  { %v7954_v53 = vpack.c.bf16 %v1130_v40, %v1130_v40 }
 0x268   :  { %6622 = dma.done.wait [#allocation4], 32256 }
 0x269   :  { %6623 = vsyncadd [#allocation4], 4294935040  ;;  %vm2662_vm1 = vcmask 1041408   ;;  %v4860_v54 = vld [vmem:[#allocation2 + $0x1c0] sm:$0xf] }
 0x26a   :  { %v6244_v55 = vld [vmem:[#allocation2 + $0x1dc] sm:$0xf0] }
 0x26b   :  { %v5116_v41 = vld [vmem:[#allocation2 + $0x3c0] sm:$0xf]  ;;  %v4861_v30 = vor.u32 %v6244_v55, %v4860_v54 }
 0x26c   :  { %v6308_v56 = vld [vmem:[#allocation2 + $0x3dc] sm:$0xf0] }
 0x26d   :  { %v5372_v57 = vld [vmem:[#allocation2 + $0x5c0] sm:$0xf]  ;;  %v5117_v59 = vor.u32 %v6308_v56, %v5116_v41  ;;  %2687 = vmatpush.bf16.msra.mxu0 %v4861_v30 }
 0x26e   :  { %v6372_v58 = vld [vmem:[#allocation2 + $0x5dc] sm:$0xf0] }
 0x26f   :  { %v5373_v60 = vor.u32 %v6372_v58, %v5372_v57  ;;  %v7956_v61 = vld [vmem:[#allocation2 + $0x7c0] sm:$0x33]  ;;  %2700 = vmatpush.bf16.msra.mxu1 %v5117_v59 }
 0x270   :  { %v4828_v62 = vld [vmem:[#allocation2 + $0x180] sm:$0xf]  ;;  %v2147_v0 = vunpack.c.l.b16 %v7956_v61 }
 0x271   :  { %v6236_v63 = vld [vmem:[#allocation2 + $0x19c] sm:$0xf0]  ;;  %2713 = vmatpush.bf16.msra.mxu2 %v5373_v60 }
 0x272   :  { %v4829_v17 = vor.u32 %v6236_v63, %v4828_v62  ;;  %v5084_v18 = vld [vmem:[#allocation2 + $0x380] sm:$0xf]  ;;  %v2403_v25 = vpack.c.b16 %v2147_v0, %v2147_v0 }
 0x273   :  { %v6300_v19 = vld [vmem:[#allocation2 + $0x39c] sm:$0xf0] }
 0x274   :  { %v5340_v20 = vld [vmem:[#allocation2 + $0x580] sm:$0xf]  ;;  %v5085_v21 = vor.u32 %v6300_v19, %v5084_v18  ;;  %v2664_v1 = vsel %vm2662_vm1, %v2403_v25, 0  ;;  %2688 = vmatpush.bf16.msra.mxu0 %v4829_v17 }
 0x275   :  { %v6364_v22 = vld [vmem:[#allocation2 + $0x59c] sm:$0xf0]  ;;  %2726 = vmatpush.bf16.msra.mxu3 %v2664_v1 }
 0x276   :  { %v5596_v23 = vld [vmem:[#allocation2 + $0x780] sm:$0xf]  ;;  %v5341_v26 = vor.u32 %v6364_v22, %v5340_v20  ;;  %2701 = vmatpush.bf16.msra.mxu1 %v5085_v21 }
 0x277   :  { %v6428_v24 = vld [vmem:[#allocation2 + $0x79c] sm:$0xf0] }
 0x278   :  { %v4796_v27 = vld [vmem:[#allocation2 + $0x140] sm:$0xf]  ;;  %v5597_v3 = vor.u32 %v6428_v24, %v5596_v23  ;;  %2714 = vmatpush.bf16.msra.mxu2 %v5341_v26 }
 0x279   :  { %v6228_v13 = vld [vmem:[#allocation2 + $0x15c] sm:$0xf0] }
 0x27a   :  { %v5052_v14 = vld [vmem:[#allocation2 + $0x340] sm:$0xf]  ;;  %v4797_v2 = vor.u32 %v6228_v13, %v4796_v27  ;;  %2727 = vmatpush.bf16.msra.mxu3 %v5597_v3 }
 0x27b   :  { %v6292_v15 = vld [vmem:[#allocation2 + $0x35c] sm:$0xf0] }
 0x27c   :  { %v5308_v16 = vld [vmem:[#allocation2 + $0x540] sm:$0xf]  ;;  %v5053_v4 = vor.u32 %v6292_v15, %v5052_v14  ;;  %2689 = vmatpush.bf16.msra.mxu0 %v4797_v2 }
 0x27d   :  { %v6356_v28 = vld [vmem:[#allocation2 + $0x55c] sm:$0xf0] }
 0x27e   :  { %v5564_v5 = vld [vmem:[#allocation2 + $0x740] sm:$0xf]  ;;  %v5309_v8 = vor.u32 %v6356_v28, %v5308_v16  ;;  %2702 = vmatpush.bf16.msra.mxu1 %v5053_v4 }
 0x27f   :  { %v4764_v6 = vld [vmem:[#allocation2 + $0x100] sm:$0xf] }
 0x280   :  { %v6220_v7 = vld [vmem:[#allocation2 + $0x11c] sm:$0xf0]  ;;  %2715 = vmatpush.bf16.msra.mxu2 %v5309_v8 }
 0x281   :  { %v6420_v9 = vld [vmem:[#allocation2 + $0x75c] sm:$0xf0]  ;;  %v4765_v33 = vor.u32 %v6220_v7, %v4764_v6 }
 0x282   :  { %v5020_v29 = vld [vmem:[#allocation2 + $0x300] sm:$0xf]  ;;  %v5565_v39 = vor.u32 %v6420_v9, %v5564_v5 }
 0x283   :  { %v6284_v32 = vld [vmem:[#allocation2 + $0x31c] sm:$0xf0]  ;;  %2690 = vmatpush.bf16.msra.mxu0 %v4765_v33  ;;  %v6304_v33 = vld [vmem:[#allocation2 + $0x3c4] sm:$0xf] }
 0x284   :  { %v5276_v35 = vld [vmem:[#allocation2 + $0x500] sm:$0xf]  ;;  %v5021_v11 = vor.u32 %v6284_v32, %v5020_v29  ;;  %2728 = vmatpush.bf16.msra.mxu3 %v5565_v39  ;;  %v2148_v32 = vunpack.c.h.b16 %v7956_v61 }
 0x285   :  { %v6348_v10 = vld [vmem:[#allocation2 + $0x51c] sm:$0xf0] }
 0x286   :  { %v5532_v34 = vld [vmem:[#allocation2 + $0x700] sm:$0xf]  ;;  %v5277_v44 = vor.u32 %v6348_v10, %v5276_v35  ;;  %2703 = vmatpush.bf16.msra.mxu1 %v5021_v11  ;;  %v6240_v35 = vld [vmem:[#allocation2 + $0x1c4] sm:$0xf] }
 0x287   :  { %v4732_v42 = vld [vmem:[#allocation2 + $0xc0] sm:$0xf]  ;;  %v4862_v10 = vld [vmem:[#allocation2 + $0x1e0] sm:$0xf0] }
 0x288   :  { %v6212_v43 = vld [vmem:[#allocation2 + $0xdc] sm:$0xf0]  ;;  %2716 = vmatpush.bf16.msra.mxu2 %v5277_v44  ;;  %v5118_v11 = vld [vmem:[#allocation2 + $0x3e0] sm:$0xf0] }
 0x289   :  { %v6412_v45 = vld [vmem:[#allocation2 + $0x71c] sm:$0xf0]  ;;  %v4733_v41 = vor.u32 %v6212_v43, %v4732_v42  ;;  %v5374_v42 = vld [vmem:[#allocation2 + $0x5e0] sm:$0xf0] }
 0x28a   :  { %v4988_v49 = vld [vmem:[#allocation2 + $0x2c0] sm:$0xf]  ;;  %v5533_v30 = vor.u32 %v6412_v45, %v5532_v34  ;;  %v6368_v34 = vld [vmem:[#allocation2 + $0x5c4] sm:$0xf] }
 0x28b   :  { %v6276_v40 = vld [vmem:[#allocation2 + $0x2dc] sm:$0xf0]  ;;  %2691 = vmatpush.bf16.msra.mxu0 %v4733_v41  ;;  %v5121_v41 = vor.u32 %v6304_v33, %v5118_v11  ;;  %v5377_v61 = vor.u32 %v6368_v34, %v5374_v42  ;;  %v4734_v33 = vld [vmem:[#allocation2 + $0xe0] sm:$0xf0] }
 0x28c   :  { %v5244_v54 = vld [vmem:[#allocation2 + $0x4c0] sm:$0xf]  ;;  %v4989_v56 = vor.u32 %v6276_v40, %v4988_v49  ;;  %2729 = vmatpush.bf16.msra.mxu3 %v5533_v30  ;;  %v4865_v49 = vor.u32 %v6240_v35, %v4862_v10  ;;  %v6232_v30 = vld [vmem:[#allocation2 + $0x184] sm:$0xf] }
 0x28d   :  { %v6340_v55 = vld [vmem:[#allocation2 + $0x4dc] sm:$0xf0]  ;;  %v6208_v10 = vld [vmem:[#allocation2 + $0xc4] sm:$0xf] }
 0x28e   :  { %v5500_v57 = vld [vmem:[#allocation2 + $0x6c0] sm:$0xf]  ;;  %v5245_v60 = vor.u32 %v6340_v55, %v5244_v54  ;;  %2704 = vmatpush.bf16.msra.mxu1 %v4989_v56  ;;  %v2404_v55 = vpack.c.b16 %v2148_v32, %v2148_v32  ;;  %v4830_v56 = vld [vmem:[#allocation2 + $0x1a0] sm:$0xf0] }
 0x28f   :  { %v4700_v58 = vld [vmem:[#allocation2 + $0x80] sm:$0xf]  ;;  %v4990_v11 = vld [vmem:[#allocation2 + $0x2e0] sm:$0xf0] }
 0x290   :  { %v6204_v59 = vld [vmem:[#allocation2 + $0x9c] sm:$0xf0]  ;;  %2717 = vmatpush.bf16.msra.mxu2 %v5245_v60  ;;  %v5342_v60 = vld [vmem:[#allocation2 + $0x5a0] sm:$0xf0] }
 0x291   :  { %v6404_v62 = vld [vmem:[#allocation2 + $0x6dc] sm:$0xf0]  ;;  %v4701_v19 = vor.u32 %v6204_v59, %v4700_v58  ;;  %v5086_v58 = vld [vmem:[#allocation2 + $0x3a0] sm:$0xf0] }
 0x292   :  { %v4956_v63 = vld [vmem:[#allocation2 + $0x280] sm:$0xf]  ;;  %v5501_v20 = vor.u32 %v6404_v62, %v5500_v57  ;;  %v6296_v57 = vld [vmem:[#allocation2 + $0x384] sm:$0xf] }
 0x293   :  { %v6268_v0 = vld [vmem:[#allocation2 + $0x29c] sm:$0xf0]  ;;  %2692 = vmatpush.bf16.msra.mxu0 %v4701_v19  ;;  %v6360_v59 = vld [vmem:[#allocation2 + $0x584] sm:$0xf]  ;;  %v5089_v19 = vor.u32 %v6296_v57, %v5086_v58 }
 0x294   :  { %v5212_v17 = vld [vmem:[#allocation2 + $0x480] sm:$0xf]  ;;  %v4957_v21 = vor.u32 %v6268_v0, %v4956_v63  ;;  %2730 = vmatpush.bf16.msra.mxu3 %v5501_v20  ;;  %v2667_v63 = vsel %vm2662_vm1, %v2404_v55, 0  ;;  %v4833_v0 = vor.u32 %v6232_v30, %v4830_v56  ;;  %v5345_v20 = vor.u32 %v6360_v59, %v5342_v60  ;;  %v6336_v34 = vld [vmem:[#allocation2 + $0x4c4] sm:$0xf] }
 0x295   :  { %v6332_v18 = vld [vmem:[#allocation2 + $0x49c] sm:$0xf0]  ;;  %v5246_v42 = vld [vmem:[#allocation2 + $0x4e0] sm:$0xf0] }
 0x296   :  { %v5468_v22 = vld [vmem:[#allocation2 + $0x680] sm:$0xf]  ;;  %v5213_v25 = vor.u32 %v6332_v18, %v5212_v17  ;;  %2705 = vmatpush.bf16.msra.mxu1 %v4957_v21  ;;  %v6424_v17 = vld [vmem:[#allocation2 + $0x784] sm:$0xf] }
 0x297   :  { %v4668_v23 = vld [vmem:[#allocation2 + $0x40] sm:$0xf]  ;;  %v5598_v18 = vld [vmem:[#allocation2 + $0x7a0] sm:$0xf0] }
 0x298   :  { %v6196_v24 = vld [vmem:[#allocation2 + $0x5c] sm:$0xf0]  ;;  %2718 = vmatpush.bf16.msra.mxu2 %v5213_v25  ;;  %v6224_v21 = vld [vmem:[#allocation2 + $0x144] sm:$0xf] }
 0x299   :  { %v6396_v26 = vld [vmem:[#allocation2 + $0x69c] sm:$0xf0]  ;;  %v4669_v16 = vor.u32 %v6196_v24, %v4668_v23  ;;  %v6288_v23 = vld [vmem:[#allocation2 + $0x344] sm:$0xf] }
 0x29a   :  { %v4924_v27 = vld [vmem:[#allocation2 + $0x240] sm:$0xf]  ;;  %v5469_v2 = vor.u32 %v6396_v26, %v5468_v22  ;;  %v4798_v22 = vld [vmem:[#allocation2 + $0x160] sm:$0xf0] }
 0x29b   :  { %v6260_v13 = vld [vmem:[#allocation2 + $0x25c] sm:$0xf0]  ;;  %2693 = vmatpush.bf16.msra.mxu0 %v4669_v16  ;;  %v5054_v24 = vld [vmem:[#allocation2 + $0x360] sm:$0xf0] }
 0x29c   :  { %v5180_v14 = vld [vmem:[#allocation2 + $0x440] sm:$0xf]  ;;  %v4925_v3 = vor.u32 %v6260_v13, %v4924_v27  ;;  %2731 = vmatpush.bf16.msra.mxu3 %v5469_v2  ;;  %v6352_v25 = vld [vmem:[#allocation2 + $0x544] sm:$0xf]  ;;  %v5601_v27 = vor.u32 %v6424_v17, %v5598_v18  ;;  %v4801_v13 = vor.u32 %v6224_v21, %v4798_v22  ;;  %v5057_v16 = vor.u32 %v6288_v23, %v5054_v24  ;;  %v7967_v23 = vld [vmem:[#allocation2 + $0x7c8] sm:$0x33] }
 0x29d   :  { %v6324_v15 = vld [vmem:[#allocation2 + $0x45c] sm:$0xf0]  ;;  %v5310_v26 = vld [vmem:[#allocation2 + $0x560] sm:$0xf0] }
 0x29e   :  { %v5436_v28 = vld [vmem:[#allocation2 + $0x640] sm:$0xf]  ;;  %v5181_v7 = vor.u32 %v6324_v15, %v5180_v14  ;;  %2706 = vmatpush.bf16.msra.mxu1 %v4925_v3  ;;  %v6416_v14 = vld [vmem:[#allocation2 + $0x744] sm:$0xf] }
 0x29f   :  { %v6388_v1 = vld [vmem:[#allocation2 + $0x65c] sm:$0xf0]  ;;  %v5566_v15 = vld [vmem:[#allocation2 + $0x760] sm:$0xf0] }
 0x2a0   :  { %v4636_v4 = vld [vmem:[#allocation2] sm:$0xf]  ;;  %v5437_v43 = vor.u32 %v6388_v1, %v5436_v28  ;;  %2719 = vmatpush.bf16.msra.mxu2 %v5181_v7  ;;  %v5313_v28 = vor.u32 %v6352_v25, %v5310_v26  ;;  %v6216_v1 = vld [vmem:[#allocation2 + $0x104] sm:$0xf]  ;;  %v5569_v7 = vor.u32 %v6416_v14, %v5566_v15 }
 0x2a1   :  { %v6188_v5 = vld [vmem:[#allocation2 + $0x1c] sm:$0xf0]  ;;  %v4766_v2 = vld [vmem:[#allocation2 + $0x120] sm:$0xf0] }
 0x2a2   :  { %v4892_v6 = vld [vmem:[#allocation2 + $0x200] sm:$0xf]  ;;  %v4637_v39 = vor.u32 %v6188_v5, %v4636_v4  ;;  %2732 = vmatpush.bf16.msra.mxu3 %v5437_v43  ;;  %v6280_v3 = vld [vmem:[#allocation2 + $0x304] sm:$0xf] }
 0x2a3   :  { %v6252_v8 = vld [vmem:[#allocation2 + $0x21c] sm:$0xf0]  ;;  %v5022_v4 = vld [vmem:[#allocation2 + $0x320] sm:$0xf0] }
 0x2a4   :  { %v5148_v9 = vld [vmem:[#allocation2 + $0x400] sm:$0xf]  ;;  %v4893_v44 = vor.u32 %v6252_v8, %v4892_v6  ;;  %2694 = vmatpush.bf16.msra.mxu0 %v4637_v39  ;;  %v6344_v5 = vld [vmem:[#allocation2 + $0x504] sm:$0xf]  ;;  %v4769_v8 = vor.u32 %v6216_v1, %v4766_v2  ;;  %v5025_v32 = vor.u32 %v6280_v3, %v5022_v4  ;;  %v4868_v4 = vld [vmem:[#allocation2 + $0x1c8] sm:$0xf] }
 0x2a5   :  { %v6316_v29 = vld [vmem:[#allocation2 + $0x41c] sm:$0xf0]  ;;  %v5278_v6 = vld [vmem:[#allocation2 + $0x520] sm:$0xf0] }
 0x2a6   :  { %v5149_v45 = vor.u32 %v6316_v29, %v5148_v9  ;;  %v5404_v40 = vld [vmem:[#allocation2 + $0x600] sm:$0xf]  ;;  %2707 = vmatpush.bf16.msra.mxu1 %v4893_v44  ;;  %v6408_v9 = vld [vmem:[#allocation2 + $0x704] sm:$0xf]  ;;  %v5281_v35 = vor.u32 %v6344_v5, %v5278_v6  ;;  %v4737_v44 = vor.u32 %v6208_v10, %v4734_v33  ;;  %v2149_v5 = vunpack.c.l.b16 %v7967_v23  ;;  %v6245_v6 = vld [vmem:[#allocation2 + $0x1e4] sm:$0xf0] }
 0x2a7   :  { %v6380_v54 = vld [vmem:[#allocation2 + $0x61c] sm:$0xf0]  ;;  %2695 = vmatmul.bf16.vlgmr.msra.gmra.mxu0 %v7948_v50  ;;  %v5534_v29 = vld [vmem:[#allocation2 + $0x720] sm:$0xf0] }
 0x2a8   :  { %v5405_v62 = vor.u32 %v6380_v54, %v5404_v40  ;;  %2720 = vmatpush.bf16.msra.mxu2 %v5149_v45  ;;  %2739 = vmatpush.bf16.msrb.mxu0 %v4865_v49  ;;  %v6272_v39 = vld [vmem:[#allocation2 + $0x2c4] sm:$0xf]  ;;  %v5537_v43 = vor.u32 %v6408_v9, %v5534_v29  ;;  %v5249_v54 = vor.u32 %v6336_v34, %v5246_v42 }
 0x2a9   :  { %2708 = vmatmul.bf16.vlgmr.msra.gmra.mxu1 %v7950_v12  ;;  %v6400_v45 = vld [vmem:[#allocation2 + $0x6c4] sm:$0xf]  ;;  %v4993_v40 = vor.u32 %v6272_v39, %v4990_v11  ;;  %v4869_v34 = vor.u32 %v6245_v6, %v4868_v4  ;;  %v5540_v4 = vld [vmem:[#allocation2 + $0x708] sm:$0xf] }
 0x2aa   :  { %2752 = vmatpush.bf16.msrb.mxu1 %v5121_v41  ;;  %2733 = vmatpush.bf16.msra.mxu3 %v5405_v62  ;;  %v5502_v49 = vld [vmem:[#allocation2 + $0x6e0] sm:$0xf0]  ;;  %v4740_v6 = vld [vmem:[#allocation2 + $0xc8] sm:$0xf] }
 0x2ab   :  { %2721 = vmatmul.bf16.vlgmr.msra.gmra.mxu2 %v7952_v51  ;;  %v6200_v55 = vld [vmem:[#allocation2 + $0x84] sm:$0xf]  ;;  %v5505_v58 = vor.u32 %v6400_v45, %v5502_v49  ;;  %v6237_v49 = vld [vmem:[#allocation2 + $0x1a4] sm:$0xf0] }
 0x2ac   :  { %2765 = vmatpush.bf16.msrb.mxu2 %v5377_v61  ;;  %2740 = vmatpush.bf16.msrb.mxu0 %v4833_v0  ;;  %v4702_v41 = vld [vmem:[#allocation2 + $0xa0] sm:$0xf0] }
 0x2ad   :  { %5626 = vmatmul.msk.bf16.vlgmr.msra.gmra.mxu3 %vm1022_vm4, %v7954_v53  ;;  %v6264_v61 = vld [vmem:[#allocation2 + $0x284] sm:$0xf]  ;;  %v4705_v59 = vor.u32 %v6200_v55, %v4702_v41  ;;  %v5348_v41 = vld [vmem:[#allocation2 + $0x588] sm:$0xf] }
 0x2ae   :  { %2778 = vmatpush.bf16.msrb.mxu3 %v2667_v63  ;;  %2753 = vmatpush.bf16.msrb.mxu1 %v5089_v19  ;;  %v4958_v30 = vld [vmem:[#allocation2 + $0x2a0] sm:$0xf0] }
 0x2af   :  { %v6328_v56 = vld [vmem:[#allocation2 + $0x484] sm:$0xf]  ;;  %v4961_v63 = vor.u32 %v6264_v61, %v4958_v30  ;;  %v6365_v61 = vld [vmem:[#allocation2 + $0x5a4] sm:$0xf0] }
 0x2b0   :  { %2766 = vmatpush.bf16.msrb.mxu2 %v5345_v20  ;;  %2741 = vmatpush.bf16.msrb.mxu0 %v4801_v13  ;;  %v5214_v57 = vld [vmem:[#allocation2 + $0x4a0] sm:$0xf0]  ;;  %v5604_v30 = vld [vmem:[#allocation2 + $0x788] sm:$0xf] }
 0x2b1   :  { %v6392_v60 = vld [vmem:[#allocation2 + $0x684] sm:$0xf]  ;;  %v5217_v0 = vor.u32 %v6328_v56, %v5214_v57 }
 0x2b2   :  { %2779 = vmatpush.bf16.msrb.mxu3 %v5601_v27  ;;  %2754 = vmatpush.bf16.msrb.mxu1 %v5057_v16  ;;  %v5470_v62 = vld [vmem:[#allocation2 + $0x6a0] sm:$0xf0] }
 0x2b3   :  { %v6192_v17 = vld [vmem:[#allocation2 + $0x44] sm:$0xf]  ;;  %v5473_v24 = vor.u32 %v6392_v60, %v5470_v62  ;;  %v4804_v60 = vld [vmem:[#allocation2 + $0x148] sm:$0xf]  ;;  %v5349_v62 = vor.u32 %v6365_v61, %v5348_v41 }
 0x2b4   :  { %2767 = vmatpush.bf16.msrb.mxu2 %v5313_v28  ;;  %2742 = vmatpush.bf16.msrb.mxu0 %v4769_v8  ;;  %v4670_v18 = vld [vmem:[#allocation2 + $0x60] sm:$0xf0]  ;;  %v6309_v8 = vld [vmem:[#allocation2 + $0x3e4] sm:$0xf0] }
 0x2b5   :  { %v6256_v19 = vld [vmem:[#allocation2 + $0x244] sm:$0xf]  ;;  %v4673_v25 = vor.u32 %v6192_v17, %v4670_v18  ;;  %v6293_v17 = vld [vmem:[#allocation2 + $0x364] sm:$0xf0] }
 0x2b6   :  { %2780 = vmatpush.bf16.msrb.mxu3 %v5569_v7  ;;  %2755 = vmatpush.bf16.msrb.mxu1 %v5025_v32  ;;  %v4926_v20 = vld [vmem:[#allocation2 + $0x260] sm:$0xf0]  ;;  %v5124_v7 = vld [vmem:[#allocation2 + $0x3c8] sm:$0xf] }
 0x2b7   :  { %v6320_v21 = vld [vmem:[#allocation2 + $0x444] sm:$0xf]  ;;  %v4929_v14 = vor.u32 %v6256_v19, %v4926_v20  ;;  %v5380_v32 = vld [vmem:[#allocation2 + $0x5c8] sm:$0xf]  ;;  %v5125_v42 = vor.u32 %v6309_v8, %v5124_v7 }
 0x2b8   :  { %2768 = vmatpush.bf16.msrb.mxu2 %v5281_v35  ;;  %2743 = vmatpush.bf16.msrb.mxu0 %v4737_v44  ;;  %v5182_v22 = vld [vmem:[#allocation2 + $0x460] sm:$0xf0]  ;;  %v6373_v35 = vld [vmem:[#allocation2 + $0x5e4] sm:$0xf0] }
 0x2b9   :  { %v6384_v26 = vld [vmem:[#allocation2 + $0x644] sm:$0xf]  ;;  %v5185_v15 = vor.u32 %v6320_v21, %v5182_v22  ;;  %v4836_v44 = vld [vmem:[#allocation2 + $0x188] sm:$0xf]  ;;  %v5381_v45 = vor.u32 %v6373_v35, %v5380_v32 }
 0x2ba   :  { %2781 = vmatpush.bf16.msrb.mxu3 %v5537_v43  ;;  %2756 = vmatpush.bf16.msrb.mxu1 %v4993_v40  ;;  %v5438_v27 = vld [vmem:[#allocation2 + $0x660] sm:$0xf0]  ;;  %v2405_v43 = vpack.c.b16 %v2149_v5, %v2149_v5  ;;  %v5092_v40 = vld [vmem:[#allocation2 + $0x388] sm:$0xf]  ;;  %v4837_v57 = vor.u32 %v6237_v49, %v4836_v44 }
 0x2bb   :  { %v6184_v13 = vld [vmem:[#allocation2 + $0x4] sm:$0xf]  ;;  %v5441_v9 = vor.u32 %v6384_v26, %v5438_v27  ;;  %v5316_v18 = vld [vmem:[#allocation2 + $0x548] sm:$0xf] }
 0x2bc   :  { %2769 = vmatpush.bf16.msrb.mxu2 %v5249_v54  ;;  %2744 = vmatpush.bf16.msrb.mxu0 %v4705_v59  ;;  %v4638_v16 = vld [vmem:[#allocation2 + $0x20] sm:$0xf0]  ;;  %v6301_v54 = vld [vmem:[#allocation2 + $0x3a4] sm:$0xf0]  ;;  %v2670_v56 = vsel %vm2662_vm1, %v2405_v43, 0 }
 0x2bd   :  { %v6248_v28 = vld [vmem:[#allocation2 + $0x204] sm:$0xf]  ;;  %v4641_v29 = vor.u32 %v6184_v13, %v4638_v16  ;;  %v6429_v59 = vld [vmem:[#allocation2 + $0x7a4] sm:$0xf0] }
 0x2be   :  { %2782 = vmatpush.bf16.msrb.mxu3 %v5505_v58  ;;  %2757 = vmatpush.bf16.msrb.mxu1 %v4961_v63  ;;  %v4894_v1 = vld [vmem:[#allocation2 + $0x220] sm:$0xf0]  ;;  %v5093_v58 = vor.u32 %v6301_v54, %v5092_v40  ;;  %v6229_v63 = vld [vmem:[#allocation2 + $0x164] sm:$0xf0]  ;;  %v5605_v20 = vor.u32 %v6429_v59, %v5604_v30 }
 0x2bf   :  { %v6312_v2 = vld [vmem:[#allocation2 + $0x404] sm:$0xf]  ;;  %v4897_v10 = vor.u32 %v6248_v28, %v4894_v1  ;;  %v6357_v19 = vld [vmem:[#allocation2 + $0x564] sm:$0xf0]  ;;  %v4805_v21 = vor.u32 %v6229_v63, %v4804_v60 }
 0x2c0   :  { %2770 = vmatpush.bf16.msrb.mxu2 %v5217_v0  ;;  %v5150_v3 = vld [vmem:[#allocation2 + $0x420] sm:$0xf0]  ;;  %2745 = vmatpush.bf16.msrb.mxu0 %v4673_v25  ;;  %v5060_v0 = vld [vmem:[#allocation2 + $0x348] sm:$0xf]  ;;  %v5317_v27 = vor.u32 %v6357_v19, %v5316_v18 }
 0x2c1   :  { %v5153_v33 = vor.u32 %v6312_v2, %v5150_v3  ;;  %v6376_v39 = vld [vmem:[#allocation2 + $0x604] sm:$0xf]  ;;  %v5061_v22 = vor.u32 %v6293_v17, %v5060_v0  ;;  %v6421_v25 = vld [vmem:[#allocation2 + $0x764] sm:$0xf0] }
 0x2c2   :  { %2783 = vmatpush.bf16.msrb.mxu3 %v5473_v24  ;;  %2758 = vmatpush.bf16.msrb.mxu1 %v4929_v14  ;;  %v5406_v11 = vld [vmem:[#allocation2 + $0x620] sm:$0xf0]  ;;  %v5572_v24 = vld [vmem:[#allocation2 + $0x748] sm:$0xf] }
 0x2c3   :  { %v5409_v55 = vor.u32 %v6376_v39, %v5406_v11  ;;  %v4772_v26 = vld [vmem:[#allocation2 + $0x108] sm:$0xf]  ;;  %v5573_v1 = vor.u32 %v6421_v25, %v5572_v24 }
 0x2c4   :  { %2771 = vmatpush.bf16.msrb.mxu2 %v5185_v15  ;;  %2746 = vmatpush.bf16.msrb.mxu0 %v4641_v29  ;;  %v6221_v13 = vld [vmem:[#allocation2 + $0x124] sm:$0xf0] }
 0x2c5   :  { %v5028_v14 = vld [vmem:[#allocation2 + $0x308] sm:$0xf]  ;;  %v4773_v2 = vor.u32 %v6221_v13, %v4772_v26 }
 0x2c6   :  { %2784 = vmatpush.bf16.msrb.mxu3 %v5441_v9  ;;  %2759 = vmatpush.bf16.msrb.mxu1 %v4897_v10  ;;  %v6285_v15 = vld [vmem:[#allocation2 + $0x324] sm:$0xf0] }
 0x2c7   :  { %2747 = vmatmul.bf16.vlgmr.msrb.gmra.mxu0 %v7948_v50  ;;  %v5284_v16 = vld [vmem:[#allocation2 + $0x508] sm:$0xf]  ;;  %v5029_v3 = vor.u32 %v6285_v15, %v5028_v14  ;;  %v2150_v15 = vunpack.c.h.b16 %v7967_v23 }
 0x2c8   :  { %2772 = vmatpush.bf16.msrb.mxu2 %v5153_v33  ;;  %2791 = vmatpush.bf16.msra.mxu0 %v4869_v34  ;;  %v6349_v28 = vld [vmem:[#allocation2 + $0x524] sm:$0xf0] }
 0x2c9   :  { %2760 = vmatmul.bf16.vlgmr.msrb.gmra.mxu1 %v7950_v12  ;;  %v6413_v5 = vld [vmem:[#allocation2 + $0x724] sm:$0xf0]  ;;  %v5285_v7 = vor.u32 %v6349_v28, %v5284_v16  ;;  %v6241_v16 = vld [vmem:[#allocation2 + $0x1cc] sm:$0xf] }
 0x2ca   :  { %2804 = vmatpush.bf16.msra.mxu1 %v5125_v42  ;;  %2785 = vmatpush.bf16.msrb.mxu3 %v5409_v55  ;;  %v6213_v8 = vld [vmem:[#allocation2 + $0xe4] sm:$0xf0]  ;;  %v5541_v10 = vor.u32 %v6413_v5, %v5540_v4  ;;  %v4870_v28 = vld [vmem:[#allocation2 + $0x1e8] sm:$0xf0] }
 0x2cb   :  { %2773 = vmatmul.bf16.vlgmr.msrb.gmra.mxu2 %v7952_v51  ;;  %v4996_v9 = vld [vmem:[#allocation2 + $0x2c8] sm:$0xf]  ;;  %v4741_v33 = vor.u32 %v6213_v8, %v4740_v6  ;;  %v6369_v4 = vld [vmem:[#allocation2 + $0x5cc] sm:$0xf] }
 0x2cc   :  { %2817 = vmatpush.bf16.msra.mxu2 %v5381_v45  ;;  %2792 = vmatpush.bf16.msra.mxu0 %v4837_v57  ;;  %v6277_v29 = vld [vmem:[#allocation2 + $0x2e4] sm:$0xf0]  ;;  %v5382_v5 = vld [vmem:[#allocation2 + $0x5e8] sm:$0xf0] }
 0x2cd   :  { %5627 = vmatmul.msk.bf16.vlgmr.msrb.gmra.mxu3 %vm1022_vm4, %v7954_v53  ;;  %v5252_v32 = vld [vmem:[#allocation2 + $0x4c8] sm:$0xf]  ;;  %v4997_v39 = vor.u32 %v6277_v29, %v4996_v9  ;;  %v5385_v23 = vor.u32 %v6369_v4, %v5382_v5  ;;  %v6337_v4 = vld [vmem:[#allocation2 + $0x4cc] sm:$0xf] }
 0x2ce   :  { %2830 = vmatpush.bf16.msra.mxu3 %v2670_v56  ;;  %2805 = vmatpush.bf16.msra.mxu1 %v5093_v58  ;;  %v6341_v35 = vld [vmem:[#allocation2 + $0x4e4] sm:$0xf0]  ;;  %v5254_v5 = vld [vmem:[#allocation2 + $0x4e8] sm:$0xf0] }
 0x2cf   :  { %v5508_v11 = vld [vmem:[#allocation2 + $0x6c8] sm:$0xf]  ;;  %v5253_v43 = vor.u32 %v6341_v35, %v5252_v32  ;;  %v4873_v32 = vor.u32 %v6241_v16, %v4870_v28  ;;  %v2406_v35 = vpack.c.b16 %v2150_v15, %v2150_v15  ;;  %v6209_v28 = vld [vmem:[#allocation2 + $0xcc] sm:$0xf] }
 0x2d0   :  { %2818 = vmatpush.bf16.msra.mxu2 %v5349_v62  ;;  %2793 = vmatpush.bf16.msra.mxu0 %v4805_v21  ;;  %v6405_v34 = vld [vmem:[#allocation2 + $0x6e4] sm:$0xf0] }
 0x2d1   :  { %v4708_v42 = vld [vmem:[#allocation2 + $0x88] sm:$0xf]  ;;  %v5509_v55 = vor.u32 %v6405_v34, %v5508_v11  ;;  %v6297_v11 = vld [vmem:[#allocation2 + $0x38c] sm:$0xf] }
 0x2d2   :  { %2831 = vmatpush.bf16.msra.mxu3 %v5605_v20  ;;  %2806 = vmatpush.bf16.msra.mxu1 %v5061_v22  ;;  %v6205_v44 = vld [vmem:[#allocation2 + $0xa4] sm:$0xf0] }
 0x2d3   :  { %v4964_v45 = vld [vmem:[#allocation2 + $0x288] sm:$0xf]  ;;  %v4709_v41 = vor.u32 %v6205_v44, %v4708_v42  ;;  %v5094_v42 = vld [vmem:[#allocation2 + $0x3a8] sm:$0xf0] }
 0x2d4   :  { %2819 = vmatpush.bf16.msra.mxu2 %v5317_v27  ;;  %2794 = vmatpush.bf16.msra.mxu0 %v4773_v2  ;;  %v6269_v49 = vld [vmem:[#allocation2 + $0x2a4] sm:$0xf0]  ;;  %v5350_v44 = vld [vmem:[#allocation2 + $0x5a8] sm:$0xf0] }
 0x2d5   :  { %v5220_v40 = vld [vmem:[#allocation2 + $0x488] sm:$0xf]  ;;  %v4965_v61 = vor.u32 %v6269_v49, %v4964_v45  ;;  %v2673_v45 = vsel %vm2662_vm1, %v2406_v35, 0  ;;  %v6201_v35 = vld [vmem:[#allocation2 + $0x8c] sm:$0xf] }
 0x2d6   :  { %2832 = vmatpush.bf16.msra.mxu3 %v5573_v1  ;;  %2807 = vmatpush.bf16.msra.mxu1 %v5029_v3  ;;  %v6333_v54 = vld [vmem:[#allocation2 + $0x4a4] sm:$0xf0]  ;;  %v6305_v1 = vld [vmem:[#allocation2 + $0x3cc] sm:$0xf] }
 0x2d7   :  { %v5476_v30 = vld [vmem:[#allocation2 + $0x688] sm:$0xf]  ;;  %v5221_v58 = vor.u32 %v6333_v54, %v5220_v40  ;;  %v5126_v3 = vld [vmem:[#allocation2 + $0x3e8] sm:$0xf0] }
 0x2d8   :  { %2820 = vmatpush.bf16.msra.mxu2 %v5285_v7  ;;  %2795 = vmatpush.bf16.msra.mxu0 %v4741_v33  ;;  %v6397_v56 = vld [vmem:[#allocation2 + $0x6a4] sm:$0xf0]  ;;  %v6233_v33 = vld [vmem:[#allocation2 + $0x18c] sm:$0xf] }
 0x2d9   :  { %v4676_v57 = vld [vmem:[#allocation2 + $0x48] sm:$0xf]  ;;  %v5477_v17 = vor.u32 %v6397_v56, %v5476_v30  ;;  %v6425_v40 = vld [vmem:[#allocation2 + $0x78c] sm:$0xf] }
 0x2da   :  { %2833 = vmatpush.bf16.msra.mxu3 %v5541_v10  ;;  %2808 = vmatpush.bf16.msra.mxu1 %v4997_v39  ;;  %v6197_v59 = vld [vmem:[#allocation2 + $0x64] sm:$0xf0]  ;;  %v5129_v10 = vor.u32 %v6305_v1, %v5126_v3  ;;  %v4838_v39 = vld [vmem:[#allocation2 + $0x1a8] sm:$0xf0] }
 0x2db   :  { %v4932_v60 = vld [vmem:[#allocation2 + $0x248] sm:$0xf]  ;;  %v4677_v20 = vor.u32 %v6197_v59, %v4676_v57  ;;  %v4841_v49 = vor.u32 %v6233_v33, %v4838_v39  ;;  %v5606_v54 = vld [vmem:[#allocation2 + $0x7a8] sm:$0xf0] }
 0x2dc   :  { %2821 = vmatpush.bf16.msra.mxu2 %v5253_v43  ;;  %v6261_v62 = vld [vmem:[#allocation2 + $0x264] sm:$0xf0]  ;;  %2796 = vmatpush.bf16.msra.mxu0 %v4709_v41  ;;  %v6361_v43 = vld [vmem:[#allocation2 + $0x58c] sm:$0xf] }
 0x2dd   :  { %v5188_v63 = vld [vmem:[#allocation2 + $0x448] sm:$0xf]  ;;  %v4933_v21 = vor.u32 %v6261_v62, %v4932_v60  ;;  %v5353_v41 = vor.u32 %v6361_v43, %v5350_v44  ;;  %v4806_v30 = vld [vmem:[#allocation2 + $0x168] sm:$0xf0]  ;;  %v5609_v60 = vor.u32 %v6425_v40, %v5606_v54 }
 0x2de   :  { %v6325_v0 = vld [vmem:[#allocation2 + $0x464] sm:$0xf0]  ;;  %2834 = vmatpush.bf16.msra.mxu3 %v5509_v55  ;;  %2809 = vmatpush.bf16.msra.mxu1 %v4965_v61  ;;  %v5097_v55 = vor.u32 %v6297_v11, %v5094_v42  ;;  %v6225_v61 = vld [vmem:[#allocation2 + $0x14c] sm:$0xf] }
 0x2df   :  { %v5444_v18 = vld [vmem:[#allocation2 + $0x648] sm:$0xf]  ;;  %v5189_v26 = vor.u32 %v6325_v0, %v5188_v63  ;;  %v6289_v56 = vld [vmem:[#allocation2 + $0x34c] sm:$0xf]  ;;  %v4809_v62 = vor.u32 %v6225_v61, %v4806_v30 }
 0x2e0   :  { %v6389_v19 = vld [vmem:[#allocation2 + $0x664] sm:$0xf0]  ;;  %2822 = vmatpush.bf16.msra.mxu2 %v5221_v58  ;;  %2797 = vmatpush.bf16.msra.mxu0 %v4677_v20  ;;  %v5062_v57 = vld [vmem:[#allocation2 + $0x368] sm:$0xf0] }
 0x2e1   :  { %v4644_v22 = vld [vmem:[#allocation2 + $0x8] sm:$0xf]  ;;  %v5445_v2 = vor.u32 %v6389_v19, %v5444_v18  ;;  %v6353_v58 = vld [vmem:[#allocation2 + $0x54c] sm:$0xf] }
 0x2e2   :  { %v6189_v24 = vld [vmem:[#allocation2 + $0x24] sm:$0xf0]  ;;  %2835 = vmatpush.bf16.msra.mxu3 %v5477_v17  ;;  %2810 = vmatpush.bf16.msra.mxu1 %v4933_v21  ;;  %v5318_v59 = vld [vmem:[#allocation2 + $0x568] sm:$0xf0]  ;;  %v5065_v17 = vor.u32 %v6289_v56, %v5062_v57  ;;  %v7983_v56 = vld [vmem:[#allocation2 + $0x7d0] sm:$0x33] }
 0x2e3   :  { %v4900_v25 = vld [vmem:[#allocation2 + $0x208] sm:$0xf]  ;;  %v4645_v6 = vor.u32 %v6189_v24, %v4644_v22  ;;  %v6417_v63 = vld [vmem:[#allocation2 + $0x74c] sm:$0xf]  ;;  %v5321_v18 = vor.u32 %v6353_v58, %v5318_v59 }
 0x2e4   :  { %v6253_v27 = vld [vmem:[#allocation2 + $0x224] sm:$0xf0]  ;;  %2823 = vmatpush.bf16.msra.mxu2 %v5189_v26  ;;  %v5574_v0 = vld [vmem:[#allocation2 + $0x768] sm:$0xf0] }
 0x2e5   :  { %v5156_v13 = vld [vmem:[#allocation2 + $0x408] sm:$0xf]  ;;  %v4901_v7 = vor.u32 %v6253_v27, %v4900_v25  ;;  %2798 = vmatpush.bf16.msra.mxu0 %v4645_v6  ;;  %v6217_v19 = vld [vmem:[#allocation2 + $0x10c] sm:$0xf]  ;;  %v5577_v26 = vor.u32 %v6417_v63, %v5574_v0 }
 0x2e6   :  { %v6317_v14 = vld [vmem:[#allocation2 + $0x424] sm:$0xf0]  ;;  %2836 = vmatpush.bf16.msra.mxu3 %v5445_v2  ;;  %v4774_v20 = vld [vmem:[#allocation2 + $0x128] sm:$0xf0] }
 0x2e7   :  { %v5412_v8 = vld [vmem:[#allocation2 + $0x608] sm:$0xf]  ;;  %v5157_v29 = vor.u32 %v6317_v14, %v5156_v13  ;;  %2811 = vmatpush.bf16.msra.mxu1 %v4901_v7  ;;  %v6281_v21 = vld [vmem:[#allocation2 + $0x30c] sm:$0xf]  ;;  %v4777_v27 = vor.u32 %v6217_v19, %v4774_v20 }
 0x2e8   :  { %v6381_v9 = vld [vmem:[#allocation2 + $0x624] sm:$0xf0]  ;;  %2799 = vmatmul.bf16.vlgmr.msra.gmra.mxu0 %v7948_v50  ;;  %v5030_v22 = vld [vmem:[#allocation2 + $0x328] sm:$0xf0] }
 0x2e9   :  { %v5413_v34 = vor.u32 %v6381_v9, %v5412_v8  ;;  %2824 = vmatpush.bf16.msra.mxu2 %v5157_v29  ;;  %2843 = vmatpush.bf16.msrb.mxu0 %v4873_v32  ;;  %v6345_v24 = vld [vmem:[#allocation2 + $0x50c] sm:$0xf]  ;;  %v5033_v15 = vor.u32 %v6281_v21, %v5030_v22  ;;  %v5257_v32 = vor.u32 %v6337_v4, %v5254_v5  ;;  %v2151_v21 = vunpack.c.l.b16 %v7983_v56 }
 0x2ea   :  { %2812 = vmatmul.bf16.vlgmr.msra.gmra.mxu1 %v7950_v12  ;;  %v5286_v25 = vld [vmem:[#allocation2 + $0x528] sm:$0xf0] }
 0x2eb   :  { %2856 = vmatpush.bf16.msrb.mxu1 %v5129_v10  ;;  %2837 = vmatpush.bf16.msra.mxu3 %v5413_v34  ;;  %v6409_v13 = vld [vmem:[#allocation2 + $0x70c] sm:$0xf]  ;;  %v5289_v16 = vor.u32 %v6345_v24, %v5286_v25  ;;  %v4876_v24 = vld [vmem:[#allocation2 + $0x1d0] sm:$0xf]  ;;  %v2407_v4 = vpack.c.b16 %v2151_v21, %v2151_v21 }
 0x2ec   :  { %2825 = vmatmul.bf16.vlgmr.msra.gmra.mxu2 %v7952_v51  ;;  %v5542_v14 = vld [vmem:[#allocation2 + $0x728] sm:$0xf0]  ;;  %v6246_v25 = vld [vmem:[#allocation2 + $0x1ec] sm:$0xf0] }
 0x2ed   :  { %2869 = vmatpush.bf16.msrb.mxu2 %v5385_v23  ;;  %2844 = vmatpush.bf16.msrb.mxu0 %v4841_v49  ;;  %v4742_v1 = vld [vmem:[#allocation2 + $0xe8] sm:$0xf0]  ;;  %v5545_v6 = vor.u32 %v6409_v13, %v5542_v14  ;;  %v6310_v13 = vld [vmem:[#allocation2 + $0x3ec] sm:$0xf0]  ;;  %v4877_v5 = vor.u32 %v6246_v25, %v4876_v24 }
 0x2ee   :  { %5628 = vmatmul.msk.bf16.vlgmr.msra.gmra.mxu3 %vm1022_vm4, %v7954_v53  ;;  %v6273_v2 = vld [vmem:[#allocation2 + $0x2cc] sm:$0xf]  ;;  %v4745_v7 = vor.u32 %v6209_v28, %v4742_v1  ;;  %v5388_v14 = vld [vmem:[#allocation2 + $0x5d0] sm:$0xf] }
 0x2ef   :  { %2882 = vmatpush.bf16.msrb.mxu3 %v2673_v45  ;;  %2857 = vmatpush.bf16.msrb.mxu1 %v5097_v55  ;;  %v4998_v3 = vld [vmem:[#allocation2 + $0x2e8] sm:$0xf0]  ;;  %v6414_v21 = vld [vmem:[#allocation2 + $0x72c] sm:$0xf0] }
 0x2f0   :  { %v6401_v8 = vld [vmem:[#allocation2 + $0x6cc] sm:$0xf]  ;;  %v5001_v29 = vor.u32 %v6273_v2, %v4998_v3  ;;  %v4748_v25 = vld [vmem:[#allocation2 + $0xd0] sm:$0xf] }
 0x2f1   :  { %2870 = vmatpush.bf16.msrb.mxu2 %v5353_v41  ;;  %2845 = vmatpush.bf16.msrb.mxu0 %v4809_v62  ;;  %v5510_v9 = vld [vmem:[#allocation2 + $0x6e8] sm:$0xf0] }
 0x2f2   :  { %v4710_v10 = vld [vmem:[#allocation2 + $0xa8] sm:$0xf0]  ;;  %v5513_v34 = vor.u32 %v6401_v8, %v5510_v9 }
 0x2f3   :  { %2883 = vmatpush.bf16.msrb.mxu3 %v5609_v60  ;;  %2858 = vmatpush.bf16.msrb.mxu1 %v5065_v17  ;;  %v6265_v23 = vld [vmem:[#allocation2 + $0x28c] sm:$0xf]  ;;  %v4713_v42 = vor.u32 %v6201_v35, %v4710_v10  ;;  %v6302_v35 = vld [vmem:[#allocation2 + $0x3ac] sm:$0xf0] }
 0x2f4   :  { %v4966_v33 = vld [vmem:[#allocation2 + $0x2a8] sm:$0xf0]  ;;  %v5356_v10 = vld [vmem:[#allocation2 + $0x590] sm:$0xf] }
 0x2f5   :  { %2871 = vmatpush.bf16.msrb.mxu2 %v5321_v18  ;;  %2846 = vmatpush.bf16.msrb.mxu0 %v4777_v27  ;;  %v6329_v39 = vld [vmem:[#allocation2 + $0x48c] sm:$0xf]  ;;  %v4969_v49 = vor.u32 %v6265_v23, %v4966_v33  ;;  %v5132_v27 = vld [vmem:[#allocation2 + $0x3d0] sm:$0xf]  ;;  %v2676_v33 = vsel %vm2662_vm1, %v2407_v4, 0 }
 0x2f6   :  { %v5222_v11 = vld [vmem:[#allocation2 + $0x4a8] sm:$0xf0]  ;;  %v6366_v23 = vld [vmem:[#allocation2 + $0x5ac] sm:$0xf0] }
 0x2f7   :  { %2884 = vmatpush.bf16.msrb.mxu3 %v5577_v26  ;;  %2859 = vmatpush.bf16.msrb.mxu1 %v5033_v15  ;;  %v6393_v43 = vld [vmem:[#allocation2 + $0x68c] sm:$0xf]  ;;  %v5225_v40 = vor.u32 %v6329_v39, %v5222_v11  ;;  %v5612_v39 = vld [vmem:[#allocation2 + $0x790] sm:$0xf] }
 0x2f8   :  { %v5478_v44 = vld [vmem:[#allocation2 + $0x6a8] sm:$0xf0]  ;;  %v6430_v11 = vld [vmem:[#allocation2 + $0x7ac] sm:$0xf0] }
 0x2f9   :  { %2872 = vmatpush.bf16.msrb.mxu2 %v5289_v16  ;;  %2847 = vmatpush.bf16.msrb.mxu0 %v4745_v7  ;;  %v6193_v45 = vld [vmem:[#allocation2 + $0x4c] sm:$0xf]  ;;  %v5481_v57 = vor.u32 %v6393_v43, %v5478_v44  ;;  %v6374_v16 = vld [vmem:[#allocation2 + $0x5ec] sm:$0xf0]  ;;  %v5357_v44 = vor.u32 %v6366_v23, %v5356_v10 }
 0x2fa   :  { %v4678_v54 = vld [vmem:[#allocation2 + $0x68] sm:$0xf0]  ;;  %v4844_v7 = vld [vmem:[#allocation2 + $0x190] sm:$0xf]  ;;  %v5389_v8 = vor.u32 %v6374_v16, %v5388_v14 }
 0x2fb   :  { %2885 = vmatpush.bf16.msrb.mxu3 %v5545_v6  ;;  %2860 = vmatpush.bf16.msrb.mxu1 %v5001_v29  ;;  %v6257_v55 = vld [vmem:[#allocation2 + $0x24c] sm:$0xf]  ;;  %v4681_v59 = vor.u32 %v6193_v45, %v4678_v54  ;;  %v5133_v6 = vor.u32 %v6310_v13, %v5132_v27  ;;  %v6238_v29 = vld [vmem:[#allocation2 + $0x1ac] sm:$0xf0]  ;;  %v5613_v54 = vor.u32 %v6430_v11, %v5612_v39 }
 0x2fc   :  { %v4934_v41 = vld [vmem:[#allocation2 + $0x268] sm:$0xf0]  ;;  %v4812_v43 = vld [vmem:[#allocation2 + $0x150] sm:$0xf] }
 0x2fd   :  { %2873 = vmatpush.bf16.msrb.mxu2 %v5257_v32  ;;  %v6321_v61 = vld [vmem:[#allocation2 + $0x44c] sm:$0xf]  ;;  %2848 = vmatpush.bf16.msrb.mxu0 %v4713_v42  ;;  %v4937_v0 = vor.u32 %v6257_v55, %v4934_v41  ;;  %v5100_v32 = vld [vmem:[#allocation2 + $0x390] sm:$0xf] }
 0x2fe   :  { %v5190_v30 = vld [vmem:[#allocation2 + $0x468] sm:$0xf0]  ;;  %v5101_v42 = vor.u32 %v6302_v35, %v5100_v32  ;;  %v6230_v45 = vld [vmem:[#allocation2 + $0x16c] sm:$0xf0] }
 0x2ff   :  { %2886 = vmatpush.bf16.msrb.mxu3 %v5513_v34  ;;  %v6385_v58 = vld [vmem:[#allocation2 + $0x64c] sm:$0xf]  ;;  %2861 = vmatpush.bf16.msrb.mxu1 %v4969_v49  ;;  %v5193_v17 = vor.u32 %v6321_v61, %v5190_v30  ;;  %v4845_v34 = vor.u32 %v6238_v29, %v4844_v7  ;;  %v5068_v49 = vld [vmem:[#allocation2 + $0x350] sm:$0xf] }
 0x300   :  { %v5446_v60 = vld [vmem:[#allocation2 + $0x668] sm:$0xf0]  ;;  %v5324_v55 = vld [vmem:[#allocation2 + $0x550] sm:$0xf] }
 0x301   :  { %v6185_v62 = vld [vmem:[#allocation2 + $0xc] sm:$0xf]  ;;  %2874 = vmatpush.bf16.msrb.mxu2 %v5225_v40  ;;  %v5449_v26 = vor.u32 %v6385_v58, %v5446_v60  ;;  %2849 = vmatpush.bf16.msrb.mxu0 %v4681_v59  ;;  %v6294_v40 = vld [vmem:[#allocation2 + $0x36c] sm:$0xf0] }
 0x302   :  { %v4646_v63 = vld [vmem:[#allocation2 + $0x28] sm:$0xf0]  ;;  %v6358_v41 = vld [vmem:[#allocation2 + $0x56c] sm:$0xf0]  ;;  %v5069_v58 = vor.u32 %v6294_v40, %v5068_v49 }
 0x303   :  { %v6249_v18 = vld [vmem:[#allocation2 + $0x20c] sm:$0xf]  ;;  %2887 = vmatpush.bf16.msrb.mxu3 %v5481_v57  ;;  %v4649_v15 = vor.u32 %v6185_v62, %v4646_v63  ;;  %2862 = vmatpush.bf16.msrb.mxu1 %v4937_v0  ;;  %v5580_v61 = vld [vmem:[#allocation2 + $0x750] sm:$0xf]  ;;  %v4813_v57 = vor.u32 %v6230_v45, %v4812_v43  ;;  %v5325_v60 = vor.u32 %v6358_v41, %v5324_v55 }
 0x304   :  { %v4902_v19 = vld [vmem:[#allocation2 + $0x228] sm:$0xf0]  ;;  %v6422_v30 = vld [vmem:[#allocation2 + $0x76c] sm:$0xf0] }
 0x305   :  { %v6313_v20 = vld [vmem:[#allocation2 + $0x40c] sm:$0xf]  ;;  %2875 = vmatpush.bf16.msrb.mxu2 %v5193_v17  ;;  %v4905_v2 = vor.u32 %v6249_v18, %v4902_v19  ;;  %2850 = vmatpush.bf16.msrb.mxu0 %v4649_v15  ;;  %v4780_v59 = vld [vmem:[#allocation2 + $0x110] sm:$0xf]  ;;  %v5581_v17 = vor.u32 %v6422_v30, %v5580_v61 }
 0x306   :  { %v5158_v22 = vld [vmem:[#allocation2 + $0x428] sm:$0xf0]  ;;  %v6222_v62 = vld [vmem:[#allocation2 + $0x12c] sm:$0xf0] }
 0x307   :  { %v6377_v28 = vld [vmem:[#allocation2 + $0x60c] sm:$0xf]  ;;  %v5161_v3 = vor.u32 %v6313_v20, %v5158_v22  ;;  %2888 = vmatpush.bf16.msrb.mxu3 %v5449_v26  ;;  %2863 = vmatpush.bf16.msrb.mxu1 %v4905_v2  ;;  %v5036_v63 = vld [vmem:[#allocation2 + $0x310] sm:$0xf]  ;;  %v4781_v22 = vor.u32 %v6222_v62, %v4780_v59 }
 0x308   :  { %v5414_v1 = vld [vmem:[#allocation2 + $0x628] sm:$0xf0]  ;;  %2851 = vmatmul.bf16.vlgmr.msrb.gmra.mxu0 %v7948_v50  ;;  %v6286_v0 = vld [vmem:[#allocation2 + $0x32c] sm:$0xf0] }
 0x309   :  { %v5417_v9 = vor.u32 %v6377_v28, %v5414_v1  ;;  %2876 = vmatpush.bf16.msrb.mxu2 %v5161_v3  ;;  %2895 = vmatpush.bf16.msra.mxu0 %v4877_v5  ;;  %v5292_v18 = vld [vmem:[#allocation2 + $0x510] sm:$0xf]  ;;  %v5037_v24 = vor.u32 %v6286_v0, %v5036_v63  ;;  %v2152_v0 = vunpack.c.h.b16 %v7983_v56 }
 0x30a   :  { %2864 = vmatmul.bf16.vlgmr.msrb.gmra.mxu1 %v7950_v12  ;;  %v6350_v19 = vld [vmem:[#allocation2 + $0x52c] sm:$0xf0] }
 0x30b   :  { %2908 = vmatpush.bf16.msra.mxu1 %v5133_v6  ;;  %2889 = vmatpush.bf16.msrb.mxu3 %v5417_v9  ;;  %v5548_v20 = vld [vmem:[#allocation2 + $0x710] sm:$0xf]  ;;  %v5293_v26 = vor.u32 %v6350_v19, %v5292_v18  ;;  %v6242_v18 = vld [vmem:[#allocation2 + $0x1d4] sm:$0xf] }
 0x30c   :  { %2877 = vmatmul.bf16.vlgmr.msrb.gmra.mxu2 %v7952_v51  ;;  %v6214_v27 = vld [vmem:[#allocation2 + $0xec] sm:$0xf0]  ;;  %v5549_v15 = vor.u32 %v6414_v21, %v5548_v20  ;;  %v4878_v19 = vld [vmem:[#allocation2 + $0x1f0] sm:$0xf0] }
 0x30d   :  { %2921 = vmatpush.bf16.msra.mxu2 %v5389_v8  ;;  %2896 = vmatpush.bf16.msra.mxu0 %v4845_v34  ;;  %v5004_v13 = vld [vmem:[#allocation2 + $0x2d0] sm:$0xf]  ;;  %v4749_v3 = vor.u32 %v6214_v27, %v4748_v25  ;;  %v6306_v20 = vld [vmem:[#allocation2 + $0x3d4] sm:$0xf] }
 0x30e   :  { %5629 = vmatmul.msk.bf16.vlgmr.msrb.gmra.mxu3 %vm1022_vm4, %v7954_v53  ;;  %v6278_v14 = vld [vmem:[#allocation2 + $0x2ec] sm:$0xf0]  ;;  %v5134_v21 = vld [vmem:[#allocation2 + $0x3f0] sm:$0xf0] }
 0x30f   :  { %2934 = vmatpush.bf16.msra.mxu3 %v2676_v33  ;;  %2909 = vmatpush.bf16.msra.mxu1 %v5101_v42  ;;  %v5260_v16 = vld [vmem:[#allocation2 + $0x4d0] sm:$0xf]  ;;  %v5005_v4 = vor.u32 %v6278_v14, %v5004_v13  ;;  %v5137_v56 = vor.u32 %v6306_v20, %v5134_v21  ;;  %v6210_v21 = vld [vmem:[#allocation2 + $0xd4] sm:$0xf] }
 0x310   :  { %v6342_v28 = vld [vmem:[#allocation2 + $0x4ec] sm:$0xf0] }
 0x311   :  { %2922 = vmatpush.bf16.msra.mxu2 %v5357_v44  ;;  %2897 = vmatpush.bf16.msra.mxu0 %v4813_v57  ;;  %v5516_v1 = vld [vmem:[#allocation2 + $0x6d0] sm:$0xf]  ;;  %v5261_v6 = vor.u32 %v6342_v28, %v5260_v16  ;;  %v2408_v16 = vpack.c.b16 %v2152_v0, %v2152_v0  ;;  %v5550_v0 = vld [vmem:[#allocation2 + $0x730] sm:$0xf0] }
 0x312   :  { %v6406_v2 = vld [vmem:[#allocation2 + $0x6ec] sm:$0xf0] }
 0x313   :  { %2935 = vmatpush.bf16.msra.mxu3 %v5613_v54  ;;  %2910 = vmatpush.bf16.msra.mxu1 %v5069_v58  ;;  %v4716_v5 = vld [vmem:[#allocation2 + $0x90] sm:$0xf]  ;;  %v5517_v29 = vor.u32 %v6406_v2, %v5516_v1  ;;  %v6234_v1 = vld [vmem:[#allocation2 + $0x194] sm:$0xf] }
 0x314   :  { %v6206_v7 = vld [vmem:[#allocation2 + $0xac] sm:$0xf0]  ;;  %v4846_v2 = vld [vmem:[#allocation2 + $0x1b0] sm:$0xf0] }
 0x315   :  { %2923 = vmatpush.bf16.msra.mxu2 %v5325_v60  ;;  %2898 = vmatpush.bf16.msra.mxu0 %v4781_v22  ;;  %v4972_v8 = vld [vmem:[#allocation2 + $0x290] sm:$0xf]  ;;  %v4717_v33 = vor.u32 %v6206_v7, %v4716_v5  ;;  %v6370_v22 = vld [vmem:[#allocation2 + $0x5d4] sm:$0xf] }
 0x316   :  { %v6270_v9 = vld [vmem:[#allocation2 + $0x2ac] sm:$0xf0]  ;;  %v5102_v5 = vld [vmem:[#allocation2 + $0x3b0] sm:$0xf0] }
 0x317   :  { %2936 = vmatpush.bf16.msra.mxu3 %v5581_v17  ;;  %2911 = vmatpush.bf16.msra.mxu1 %v5037_v24  ;;  %v5228_v32 = vld [vmem:[#allocation2 + $0x490] sm:$0xf]  ;;  %v4973_v39 = vor.u32 %v6270_v9, %v4972_v8  ;;  %v5390_v24 = vld [vmem:[#allocation2 + $0x5f0] sm:$0xf0]  ;;  %v2679_v8 = vsel %vm2662_vm1, %v2408_v16, 0  ;;  %v4849_v9 = vor.u32 %v6234_v1, %v4846_v2 }
 0x318   :  { %v6334_v35 = vld [vmem:[#allocation2 + $0x4ac] sm:$0xf0]  ;;  %v5393_v28 = vor.u32 %v6370_v22, %v5390_v24  ;;  %v5358_v7 = vld [vmem:[#allocation2 + $0x5b0] sm:$0xf0] }
 0x319   :  { %2924 = vmatpush.bf16.msra.mxu2 %v5293_v26  ;;  %v5484_v10 = vld [vmem:[#allocation2 + $0x690] sm:$0xf]  ;;  %2899 = vmatpush.bf16.msra.mxu0 %v4749_v3  ;;  %v5229_v34 = vor.u32 %v6334_v35, %v5228_v32  ;;  %v6298_v3 = vld [vmem:[#allocation2 + $0x394] sm:$0xf] }
 0x31a   :  { %v6398_v23 = vld [vmem:[#allocation2 + $0x6ac] sm:$0xf0]  ;;  %v5614_v32 = vld [vmem:[#allocation2 + $0x7b0] sm:$0xf0]  ;;  %v5105_v35 = vor.u32 %v6298_v3, %v5102_v5 }
 0x31b   :  { %2937 = vmatpush.bf16.msra.mxu3 %v5549_v15  ;;  %2912 = vmatpush.bf16.msra.mxu1 %v5005_v4  ;;  %v4684_v11 = vld [vmem:[#allocation2 + $0x50] sm:$0xf]  ;;  %v5485_v45 = vor.u32 %v6398_v23, %v5484_v10  ;;  %v4881_v15 = vor.u32 %v6242_v18, %v4878_v19  ;;  %v6226_v23 = vld [vmem:[#allocation2 + $0x154] sm:$0xf] }
 0x31c   :  { %v6198_v42 = vld [vmem:[#allocation2 + $0x6c] sm:$0xf0]  ;;  %v4750_v22 = vld [vmem:[#allocation2 + $0xf0] sm:$0xf0] }
 0x31d   :  { %2925 = vmatpush.bf16.msra.mxu2 %v5261_v6  ;;  %v4940_v43 = vld [vmem:[#allocation2 + $0x250] sm:$0xf]  ;;  %2900 = vmatpush.bf16.msra.mxu0 %v4717_v33  ;;  %v4685_v41 = vor.u32 %v6198_v42, %v4684_v11  ;;  %v6362_v6 = vld [vmem:[#allocation2 + $0x594] sm:$0xf]  ;;  %v4753_v16 = vor.u32 %v6210_v21, %v4750_v22 }
 0x31e   :  { %v6262_v44 = vld [vmem:[#allocation2 + $0x26c] sm:$0xf0]  ;;  %v5361_v10 = vor.u32 %v6362_v6, %v5358_v7  ;;  %v4814_v33 = vld [vmem:[#allocation2 + $0x170] sm:$0xf0] }
 0x31f   :  { %2938 = vmatpush.bf16.msra.mxu3 %v5517_v29  ;;  %v5196_v49 = vld [vmem:[#allocation2 + $0x450] sm:$0xf]  ;;  %2913 = vmatpush.bf16.msra.mxu1 %v4973_v39  ;;  %v4941_v61 = vor.u32 %v6262_v44, %v4940_v43  ;;  %v6426_v29 = vld [vmem:[#allocation2 + $0x794] sm:$0xf]  ;;  %v4817_v44 = vor.u32 %v6226_v23, %v4814_v33 }
 0x320   :  { %v6326_v40 = vld [vmem:[#allocation2 + $0x46c] sm:$0xf0]  ;;  %v6290_v39 = vld [vmem:[#allocation2 + $0x354] sm:$0xf]  ;;  %v5617_v43 = vor.u32 %v6426_v29, %v5614_v32 }
 0x321   :  { %v5452_v54 = vld [vmem:[#allocation2 + $0x650] sm:$0xf]  ;;  %2926 = vmatpush.bf16.msra.mxu2 %v5229_v34  ;;  %v5197_v59 = vor.u32 %v6326_v40, %v5196_v49  ;;  %2901 = vmatpush.bf16.msra.mxu0 %v4685_v41  ;;  %v5070_v11 = vld [vmem:[#allocation2 + $0x370] sm:$0xf0] }
 0x322   :  { %v6390_v55 = vld [vmem:[#allocation2 + $0x66c] sm:$0xf0]  ;;  %v6354_v34 = vld [vmem:[#allocation2 + $0x554] sm:$0xf] }
 0x323   :  { %v4652_v30 = vld [vmem:[#allocation2 + $0x10] sm:$0xf]  ;;  %2939 = vmatpush.bf16.msra.mxu3 %v5485_v45  ;;  %v5453_v17 = vor.u32 %v6390_v55, %v5452_v54  ;;  %2914 = vmatpush.bf16.msra.mxu1 %v4941_v61  ;;  %v5326_v42 = vld [vmem:[#allocation2 + $0x570] sm:$0xf0]  ;;  %v5073_v54 = vor.u32 %v6290_v39, %v5070_v11 }
 0x324   :  { %v6190_v57 = vld [vmem:[#allocation2 + $0x2c] sm:$0xf0]  ;;  %v6418_v45 = vld [vmem:[#allocation2 + $0x754] sm:$0xf]  ;;  %v5329_v55 = vor.u32 %v6354_v34, %v5326_v42  ;;  %v2696_v19 = vpop.f32.mrf.mxu0 }
 0x325   :  { %v4908_v58 = vld [vmem:[#allocation2 + $0x210] sm:$0xf]  ;;  %v4653_v25 = vor.u32 %v6190_v57, %v4652_v30  ;;  %2927 = vmatpush.bf16.msra.mxu2 %v5197_v59  ;;  %v5582_v49 = vld [vmem:[#allocation2 + $0x770] sm:$0xf0]  ;;  %v1391_v59 = vperm.slane %v7854_v31, 2 }
 0x326   :  { %v6254_v60 = vld [vmem:[#allocation2 + $0x22c] sm:$0xf0]  ;;  %v6218_v40 = vld [vmem:[#allocation2 + $0x114] sm:$0xf]  ;;  %v2709_v20 = vpop.f32.mrf.mxu1 }
 0x327   :  { %v5164_v62 = vld [vmem:[#allocation2 + $0x410] sm:$0xf]  ;;  %v4909_v26 = vor.u32 %v6254_v60, %v4908_v58  ;;  %2940 = vmatpush.bf16.msra.mxu3 %v5453_v17  ;;  %2902 = vmatpush.bf16.msra.mxu0 %v4653_v25  ;;  %v4782_v41 = vld [vmem:[#allocation2 + $0x130] sm:$0xf0]  ;;  %v5585_v60 = vor.u32 %v6418_v45, %v5582_v49  ;;  %v2697_v25 = vadd.f32 %v2696_v19, %v1391_v59 }
 0x328   :  { %v6318_v63 = vld [vmem:[#allocation2 + $0x42c] sm:$0xf0]  ;;  %v6282_v61 = vld [vmem:[#allocation2 + $0x314] sm:$0xf] }
 0x329   :  { %v5420_v27 = vld [vmem:[#allocation2 + $0x610] sm:$0xf]  ;;  %v5165_v14 = vor.u32 %v6318_v63, %v5164_v62  ;;  %2915 = vmatpush.bf16.msra.mxu1 %v4909_v26  ;;  %v5038_v30 = vld [vmem:[#allocation2 + $0x330] sm:$0xf0]  ;;  %v4785_v62 = vor.u32 %v6218_v40, %v4782_v41 }
 0x32a   :  { %v6382_v13 = vld [vmem:[#allocation2 + $0x62c] sm:$0xf0]  ;;  %2903 = vmatmul.bf16.vlgmr.msra.gmra.mxu0 %v7948_v50  ;;  %v6346_v57 = vld [vmem:[#allocation2 + $0x514] sm:$0xf]  ;;  %v5041_v17 = vor.u32 %v6282_v61, %v5038_v30 }
 0x32b   :  { %v5421_v4 = vor.u32 %v6382_v13, %v5420_v27  ;;  %2928 = vmatpush.bf16.msra.mxu2 %v5165_v14  ;;  %2947 = vmatpush.bf16.msrb.mxu0 %v4881_v15  ;;  %v5294_v58 = vld [vmem:[#allocation2 + $0x530] sm:$0xf0]  ;;  %v2710_v15 = vadd.f32 %v2709_v20, %v2697_v25  ;;  %v4884_v20 = vld [vmem:[#allocation2 + $0x1d8] sm:$0xf] }
 0x32c   :  { %2916 = vmatmul.bf16.vlgmr.msra.gmra.mxu1 %v7950_v12  ;;  %v6410_v63 = vld [vmem:[#allocation2 + $0x714] sm:$0xf]  ;;  %v5297_v18 = vor.u32 %v6346_v57, %v5294_v58  ;;  %v5140_v25 = vld [vmem:[#allocation2 + $0x3d8] sm:$0xf] }
 0x32d   :  { %2960 = vmatpush.bf16.msrb.mxu1 %v5137_v56  ;;  %2941 = vmatpush.bf16.msra.mxu3 %v5421_v4  ;;  %v6274_v24 = vld [vmem:[#allocation2 + $0x2d4] sm:$0xf]  ;;  %v5553_v14 = vor.u32 %v6410_v63, %v5550_v0 }
 0x32e   :  { %2929 = vmatmul.bf16.vlgmr.msra.gmra.mxu2 %v7952_v51  ;;  %v5006_v26 = vld [vmem:[#allocation2 + $0x2f0] sm:$0xf0]  ;;  %v2722_v29 = vpop.f32.mrf.mxu2  ;;  %v2711_v45 = vpop.f32.mrf.mxu1 }
 0x32f   :  { %2973 = vmatpush.bf16.msrb.mxu2 %v5393_v28  ;;  %2948 = vmatpush.bf16.msrb.mxu0 %v4849_v9  ;;  %v6338_v27 = vld [vmem:[#allocation2 + $0x4d4] sm:$0xf]  ;;  %v5009_v1 = vor.u32 %v6274_v24, %v5006_v26  ;;  %v2723_v33 = vadd.f32 %v2722_v29, %v2710_v15  ;;  %v6247_v24 = vld [vmem:[#allocation2 + $0x1f4] sm:$0xf0] }
 0x330   :  { %5630 = vmatmul.msk.bf16.vlgmr.msra.gmra.mxu3 %vm1022_vm4, %v7954_v53  ;;  %v5262_v13 = vld [vmem:[#allocation2 + $0x4f0] sm:$0xf0]  ;;  %v4852_v29 = vld [vmem:[#allocation2 + $0x198] sm:$0xf] }
 0x331   :  { %2986 = vmatpush.bf16.msrb.mxu3 %v2679_v8  ;;  %2961 = vmatpush.bf16.msrb.mxu1 %v5105_v35  ;;  %v6402_v56 = vld [vmem:[#allocation2 + $0x6d4] sm:$0xf]  ;;  %v5265_v2 = vor.u32 %v6338_v27, %v5262_v13  ;;  %v6311_v27 = vld [vmem:[#allocation2 + $0x3f4] sm:$0xf0] }
 0x332   :  { %v5518_v28 = vld [vmem:[#allocation2 + $0x6f0] sm:$0xf0]  ;;  %v5396_v13 = vld [vmem:[#allocation2 + $0x5d8] sm:$0xf] }
 0x333   :  { %2974 = vmatpush.bf16.msrb.mxu2 %v5361_v10  ;;  %2949 = vmatpush.bf16.msrb.mxu0 %v4817_v44  ;;  %v6202_v3 = vld [vmem:[#allocation2 + $0x94] sm:$0xf]  ;;  %v5521_v9 = vor.u32 %v6402_v56, %v5518_v28  ;;  %v2698_v44 = vpop.f32.mrf.mxu0  ;;  %v5620_v45 = vld [vmem:[#allocation2 + $0x798] sm:$0xf] }
 0x334   :  { %v4718_v4 = vld [vmem:[#allocation2 + $0xb0] sm:$0xf0] }
 0x335   :  { %2987 = vmatpush.bf16.msrb.mxu3 %v5617_v43  ;;  %2962 = vmatpush.bf16.msrb.mxu1 %v5073_v54  ;;  %v6266_v5 = vld [vmem:[#allocation2 + $0x294] sm:$0xf]  ;;  %v4721_v32 = vor.u32 %v6202_v3, %v4718_v4  ;;  %v8000_v54 = vld [vmem:[#allocation2 + $0x7d8] sm:$0x33] }
 0x336   :  { %v4974_v6 = vld [vmem:[#allocation2 + $0x2b0] sm:$0xf0]  ;;  %v2153_v21 = vunpack.c.l.b16 %v8000_v54 }
 0x337   :  { %2975 = vmatpush.bf16.msrb.mxu2 %v5329_v55  ;;  %2950 = vmatpush.bf16.msrb.mxu0 %v4785_v62  ;;  %v6330_v7 = vld [vmem:[#allocation2 + $0x494] sm:$0xf]  ;;  %v4977_v39 = vor.u32 %v6266_v5, %v4974_v6  ;;  %v2735_v55 = vpop.f32.mrf.mxu3 }
 0x338   :  { %v5230_v8 = vld [vmem:[#allocation2 + $0x4b0] sm:$0xf0]  ;;  %v2736_v58 = vadd.f32 %v2735_v55, %v2723_v33  ;;  %v2409_v5 = vpack.c.b16 %v2153_v21, %v2153_v21  ;;  %v6303_v33 = vld [vmem:[#allocation2 + $0x3b4] sm:$0xf0] }
 0x339   :  { %2988 = vmatpush.bf16.msrb.mxu3 %v5585_v60  ;;  %2963 = vmatpush.bf16.msrb.mxu1 %v5041_v17  ;;  %v6394_v35 = vld [vmem:[#allocation2 + $0x694] sm:$0xf]  ;;  %v5233_v11 = vor.u32 %v6330_v7, %v5230_v8  ;;  %v4885_v8 = vor.u32 %v6247_v24, %v4884_v20  ;;  %v6423_v20 = vld [vmem:[#allocation2 + $0x774] sm:$0xf0] }
 0x33a   :  { %v5486_v10 = vld [vmem:[#allocation2 + $0x6b0] sm:$0xf0]  ;;  %v8003_v22 = vmax.f32 %v2736_v58, 0.0  ;;  %v2682_v44 = vsel %vm2662_vm1, %v2409_v5, 0  ;;  %v6231_v58 = vld [vmem:[#allocation2 + $0x174] sm:$0xf0] }
 0x33b   :  { %2976 = vmatpush.bf16.msrb.mxu2 %v5297_v18  ;;  %2951 = vmatpush.bf16.msrb.mxu0 %v4753_v16  ;;  %v6194_v23 = vld [vmem:[#allocation2 + $0x54] sm:$0xf]  ;;  %v5489_v41 = vor.u32 %v6394_v35, %v5486_v10  ;;  %v6239_v10 = vld [vmem:[#allocation2 + $0x1b4] sm:$0xf0] }
 0x33c   :  { %v4686_v34 = vld [vmem:[#allocation2 + $0x70] sm:$0xf0]  ;;  %v3111_v15 = vrot.slane %v8003_v22, 4  ;;  %v3169_v16 = vmul.f32 %v8003_v22, %v8003_v22  ;;  %v5556_v5 = vld [vmem:[#allocation2 + $0x718] sm:$0xf] }
 0x33d   :  { %2989 = vmatpush.bf16.msrb.mxu3 %v5553_v14  ;;  %2964 = vmatpush.bf16.msrb.mxu1 %v5009_v1  ;;  %v6258_v42 = vld [vmem:[#allocation2 + $0x254] sm:$0xf]  ;;  %v4689_v59 = vor.u32 %v6194_v23, %v4686_v34  ;;  %v6375_v14 = vld [vmem:[#allocation2 + $0x5f4] sm:$0xf0] }
 0x33e   :  { %v4942_v43 = vld [vmem:[#allocation2 + $0x270] sm:$0xf0]  ;;  %v3112_v6 = vadd.f32 %v3111_v15, %v8003_v22  ;;  %v3177_v7 = vrot.slane %v3169_v16, 4  ;;  %v5108_v23 = vld [vmem:[#allocation2 + $0x398] sm:$0xf] }
 0x33f   :  { %2977 = vmatpush.bf16.msrb.mxu2 %v5265_v2  ;;  %v6322_v49 = vld [vmem:[#allocation2 + $0x454] sm:$0xf]  ;;  %2952 = vmatpush.bf16.msrb.mxu0 %v4721_v32  ;;  %v4945_v0 = vor.u32 %v6258_v42, %v4942_v43  ;;  %v2724_v2 = vpop.f32.mrf.mxu2  ;;  %v5397_v32 = vor.u32 %v6375_v14, %v5396_v13  ;;  %v5364_v42 = vld [vmem:[#allocation2 + $0x598] sm:$0xf] }
 0x340   :  { %v5198_v40 = vld [vmem:[#allocation2 + $0x470] sm:$0xf0]  ;;  %v3178_v34 = vadd.f32 %v3177_v7, %v3169_v16  ;;  %v6367_v43 = vld [vmem:[#allocation2 + $0x5b4] sm:$0xf0] }
 0x341   :  { %2990 = vmatpush.bf16.msrb.mxu3 %v5521_v9  ;;  %v6386_v61 = vld [vmem:[#allocation2 + $0x654] sm:$0xf]  ;;  %2965 = vmatpush.bf16.msrb.mxu1 %v4977_v39  ;;  %v5201_v17 = vor.u32 %v6322_v49, %v5198_v40  ;;  %v5141_v9 = vor.u32 %v6311_v27, %v5140_v25  ;;  %v2737_v39 = vpop.f32.mrf.mxu3  ;;  %v6431_v49 = vld [vmem:[#allocation2 + $0x7b4] sm:$0xf0] }
 0x342   :  { %v5454_v30 = vld [vmem:[#allocation2 + $0x670] sm:$0xf0]  ;;  %v3179_v55 = vrot.slane %v3178_v34, 2  ;;  %v4788_v27 = vld [vmem:[#allocation2 + $0x118] sm:$0xf] }
 0x343   :  { %v6186_v57 = vld [vmem:[#allocation2 + $0x14] sm:$0xf]  ;;  %2978 = vmatpush.bf16.msrb.mxu2 %v5233_v11  ;;  %v5457_v26 = vor.u32 %v6386_v61, %v5454_v30  ;;  %2953 = vmatpush.bf16.msrb.mxu0 %v4689_v59  ;;  %v3113_v11 = vrot.slane %v3112_v6, 2  ;;  %v5109_v61 = vor.u32 %v6303_v33, %v5108_v23  ;;  %v4820_v30 = vld [vmem:[#allocation2 + $0x158] sm:$0xf] }
 0x344   :  { %v4654_v60 = vld [vmem:[#allocation2 + $0x30] sm:$0xf0]  ;;  %v5076_v59 = vld [vmem:[#allocation2 + $0x358] sm:$0xf]  ;;  %v4821_v25 = vor.u32 %v6231_v58, %v4820_v30 }
 0x345   :  { %v6250_v62 = vld [vmem:[#allocation2 + $0x214] sm:$0xf]  ;;  %2991 = vmatpush.bf16.msrb.mxu3 %v5489_v41  ;;  %v4657_v56 = vor.u32 %v6186_v57, %v4654_v60  ;;  %2966 = vmatpush.bf16.msrb.mxu1 %v4945_v0  ;;  %v3114_v40 = vadd.f32 %v3113_v11, %v3112_v6  ;;  %v4853_v41 = vor.u32 %v6239_v10, %v4852_v29  ;;  %v6295_v60 = vld [vmem:[#allocation2 + $0x374] sm:$0xf0] }
 0x346   :  { %v4910_v63 = vld [vmem:[#allocation2 + $0x230] sm:$0xf0]  ;;  %v5365_v57 = vor.u32 %v6367_v43, %v5364_v42  ;;  %v5621_v0 = vor.u32 %v6431_v49, %v5620_v45  ;;  %v6223_v13 = vld [vmem:[#allocation2 + $0x134] sm:$0xf0]  ;;  %v2761_v43 = vpop.f32.mrf.mxu1 }
 0x347   :  { %v6314_v18 = vld [vmem:[#allocation2 + $0x414] sm:$0xf]  ;;  %2979 = vmatpush.bf16.msrb.mxu2 %v5201_v17  ;;  %v4913_v3 = vor.u32 %v6250_v62, %v4910_v63  ;;  %2954 = vmatpush.bf16.msrb.mxu0 %v4657_v56  ;;  %v3115_v62 = vrot.slane %v3114_v40, 1  ;;  %v3180_v63 = vadd.f32 %v3179_v55, %v3178_v34  ;;  %v5332_v17 = vld [vmem:[#allocation2 + $0x558] sm:$0xf]  ;;  %v1392_v56 = vperm.slane %v7859_v36, 2 }
 0x348   :  { %v5166_v19 = vld [vmem:[#allocation2 + $0x430] sm:$0xf0]  ;;  %v5044_v15 = vld [vmem:[#allocation2 + $0x318] sm:$0xf] }
 0x349   :  { %v6378_v28 = vld [vmem:[#allocation2 + $0x614] sm:$0xf]  ;;  %v5169_v4 = vor.u32 %v6314_v18, %v5166_v19  ;;  %2992 = vmatpush.bf16.msrb.mxu3 %v5457_v26  ;;  %2967 = vmatpush.bf16.msrb.mxu1 %v4913_v3  ;;  %v6359_v18 = vld [vmem:[#allocation2 + $0x574] sm:$0xf0]  ;;  %v3116_v21 = vadd.f32 %v3115_v62, %v3114_v40  ;;  %v3181_v24 = vrot.slane %v3180_v63, 1  ;;  %v5077_v26 = vor.u32 %v6295_v60, %v5076_v59 }
 0x34a   :  { %v5422_v1 = vld [vmem:[#allocation2 + $0x630] sm:$0xf0]  ;;  %2955 = vmatmul.bf16.vlgmr.msrb.gmra.mxu0 %v7948_v50  ;;  %v5588_v19 = vld [vmem:[#allocation2 + $0x758] sm:$0xf]  ;;  %v5333_v14 = vor.u32 %v6359_v18, %v5332_v17 }
 0x34b   :  { %v5425_v35 = vor.u32 %v6378_v28, %v5422_v1  ;;  %2980 = vmatpush.bf16.msrb.mxu2 %v5169_v4  ;;  %2999 = vmatpush.bf16.msra.mxu0 %v4885_v8  ;;  %v6287_v16 = vld [vmem:[#allocation2 + $0x334] sm:$0xf0]  ;;  %v8016_v28 = vmul.f32 0.125, %v3116_v21  ;;  %v3182_v1 = vadd.f32 %v3181_v24, %v3180_v63  ;;  %v5589_v2 = vor.u32 %v6423_v20, %v5588_v19 }
 0x34c   :  { %2968 = vmatmul.bf16.vlgmr.msrb.gmra.mxu1 %v7950_v12  ;;  %v5300_v3 = vld [vmem:[#allocation2 + $0x518] sm:$0xf]  ;;  %v5045_v29 = vor.u32 %v6287_v16, %v5044_v15 }
 0x34d   :  { %3012 = vmatpush.bf16.msra.mxu1 %v5141_v9  ;;  %2993 = vmatpush.bf16.msrb.mxu3 %v5425_v35  ;;  %v6351_v4 = vld [vmem:[#allocation2 + $0x534] sm:$0xf0]  ;;  %v3226_v7 = vmul.f32 0.125, %v3182_v1  ;;  %v3234_v8 = vmul.f32 %v8016_v28, %v8016_v28  ;;  %v4789_v9 = vor.u32 %v6223_v13, %v4788_v27 }
 0x34e   :  { %2981 = vmatmul.bf16.vlgmr.msrb.gmra.mxu2 %v7952_v51  ;;  %v6415_v6 = vld [vmem:[#allocation2 + $0x734] sm:$0xf0]  ;;  %v5301_v10 = vor.u32 %v6351_v4, %v5300_v3  ;;  %v2774_v19 = vpop.f32.mrf.mxu2 }
 0x34f   :  { %3025 = vmatpush.bf16.msra.mxu2 %v5397_v32  ;;  %3000 = vmatpush.bf16.msra.mxu0 %v4853_v41  ;;  %v2748_v32 = vpop.f32.mrf.mxu0  ;;  %v4756_v35 = vld [vmem:[#allocation2 + $0xd8] sm:$0xf]  ;;  %v3242_v34 = vsub.f32 %v3226_v7, %v3234_v8  ;;  %v5557_v42 = vor.u32 %v6415_v6, %v5556_v5  ;;  %v2763_v8 = vpop.f32.mrf.mxu1 }
 0x350   :  { %5631 = vmatmul.msk.bf16.vlgmr.msrb.gmra.mxu3 %vm1022_vm4, %v7954_v53  ;;  %v2749_v23 = vadd.f32 %v2748_v32, %v1392_v56  ;;  %v6215_v33 = vld [vmem:[#allocation2 + $0xf4] sm:$0xf0]  ;;  %v2787_v3 = vpop.f32.mrf.mxu3  ;;  %v5622_v8 = vld [vmem:[#allocation2 + $0x7b8] sm:$0xf0] }
 0x351   :  { %3038 = vmatpush.bf16.msra.mxu3 %v2682_v44  ;;  %3013 = vmatpush.bf16.msra.mxu1 %v5109_v61  ;;  %v5012_v39 = vld [vmem:[#allocation2 + $0x2d8] sm:$0xf]  ;;  %v3250_v41 = vmax.f32 %v3242_v34, 0.0  ;;  %v4757_v61 = vor.u32 %v6215_v33, %v4756_v35  ;;  %v2154_v34 = vunpack.c.h.b16 %v8000_v54 }
 0x352   :  { %v6279_v11 = vld [vmem:[#allocation2 + $0x2f4] sm:$0xf0]  ;;  %v2762_v49 = vadd.f32 %v2761_v43, %v2749_v23 }
 0x353   :  { %3026 = vmatpush.bf16.msra.mxu2 %v5365_v57  ;;  %3001 = vmatpush.bf16.msra.mxu0 %v4821_v25  ;;  %v5268_v44 = vld [vmem:[#allocation2 + $0x4d8] sm:$0xf]  ;;  %v5013_v30 = vor.u32 %v6279_v11, %v5012_v39  ;;  %v8020_v63 = vadd.f32 1e-05, %v3250_v41  ;;  %v6243_v11 = vld [vmem:[#allocation2 + $0x1dc] sm:$0xf] }
 0x354   :  { %v6343_v45 = vld [vmem:[#allocation2 + $0x4f4] sm:$0xf0]  ;;  %v2775_v24 = vadd.f32 %v2774_v19, %v2762_v49  ;;  %v6371_v41 = vld [vmem:[#allocation2 + $0x5dc] sm:$0xf] }
 0x355   :  { %3039 = vmatpush.bf16.msra.mxu3 %v5621_v0  ;;  %3014 = vmatpush.bf16.msra.mxu1 %v5077_v26  ;;  %v5524_v40 = vld [vmem:[#allocation2 + $0x6d8] sm:$0xf]  ;;  %v5269_v58 = vor.u32 %v6343_v45, %v5268_v44  ;;  %6596 = vrsqrt.f32 %v8020_v63  ;;  %v4886_v44 = vld [vmem:[#allocation2 + $0x1f8] sm:$0xf0]  ;;  %vm3280_vm2 = vweird.f32 %v8020_v63 }
 0x356   :  { %v6407_v55 = vld [vmem:[#allocation2 + $0x6f4] sm:$0xf0]  ;;  %v6307_v45 = vld [vmem:[#allocation2 + $0x3dc] sm:$0xf] }
 0x357   :  { %3027 = vmatpush.bf16.msra.mxu2 %v5333_v14  ;;  %3002 = vmatpush.bf16.msra.mxu0 %v4789_v9  ;;  %v4724_v57 = vld [vmem:[#allocation2 + $0x98] sm:$0xf]  ;;  %v5525_v0 = vor.u32 %v6407_v55, %v5524_v40  ;;  %v2750_v15 = vpop.f32.mrf.mxu0  ;;  %v2788_v9 = vadd.f32 %v2787_v3, %v2775_v24  ;;  %v5142_v55 = vld [vmem:[#allocation2 + $0x3f8] sm:$0xf0]  ;;  %v4889_v24 = vor.u32 %v6243_v11, %v4886_v44 }
 0x358   :  { %v6207_v59 = vld [vmem:[#allocation2 + $0xb4] sm:$0xf0]  ;;  %v6299_v15 = vld [vmem:[#allocation2 + $0x39c] sm:$0xf] }
 0x359   :  { %3040 = vmatpush.bf16.msra.mxu3 %v5589_v2  ;;  %3015 = vmatpush.bf16.msra.mxu1 %v5045_v29  ;;  %v4980_v60 = vld [vmem:[#allocation2 + $0x298] sm:$0xf]  ;;  %v4725_v25 = vor.u32 %v6207_v59, %v4724_v57 }
 0x35a   :  { %v6271_v62 = vld [vmem:[#allocation2 + $0x2b4] sm:$0xf0] }
 0x35b   :  { %3028 = vmatpush.bf16.msra.mxu2 %v5301_v10  ;;  %v5236_v17 = vld [vmem:[#allocation2 + $0x498] sm:$0xf]  ;;  %3003 = vmatpush.bf16.msra.mxu0 %v4757_v61  ;;  %v4981_v26 = vor.u32 %v6271_v62, %v4980_v60  ;;  %v8026_v49 = vpop.eup %6596  ;;  %v5398_v61 = vld [vmem:[#allocation2 + $0x5f8] sm:$0xf0]  ;;  %v2776_v62 = vpop.f32.mrf.mxu2 }
 0x35c   :  { %v6335_v18 = vld [vmem:[#allocation2 + $0x4b4] sm:$0xf0]  ;;  %vm3281_vm3 = vweird.f32 %v8026_v49  ;;  %v6219_v62 = vld [vmem:[#allocation2 + $0x11c] sm:$0xf] }
 0x35d   :  { %3041 = vmatpush.bf16.msra.mxu3 %v5557_v42  ;;  %v5492_v20 = vld [vmem:[#allocation2 + $0x698] sm:$0xf]  ;;  %3016 = vmatpush.bf16.msra.mxu1 %v5013_v30  ;;  %v5237_v16 = vor.u32 %v6335_v18, %v5236_v17  ;;  %v8024_v42 = vmax.f32 %v2788_v9, 0.0  ;;  %v3275_v30 = vmul.f32 %v8026_v49, %v8020_v63  ;;  %v2410_v18 = vpack.c.b16 %v2154_v34, %v2154_v34  ;;  %vm8042_vm5 = vmor %vm3280_vm2, %vm3281_vm3  ;;  %v6291_v34 = vld [vmem:[#allocation2 + $0x35c] sm:$0xf] }
 0x35e   :  { %v6399_v21 = vld [vmem:[#allocation2 + $0x6b4] sm:$0xf0]  ;;  %v3258_v63 = vsub.f32 %v8003_v22, %v8016_v28 }
 0x35f   :  { %v4692_v27 = vld [vmem:[#allocation2 + $0x58] sm:$0xf]  ;;  %3029 = vmatpush.bf16.msra.mxu2 %v5269_v58  ;;  %v5493_v4 = vor.u32 %v6399_v21, %v5492_v20  ;;  %3004 = vmatpush.bf16.msra.mxu0 %v4725_v25  ;;  %v3117_v57 = vrot.slane %v8024_v42, 4  ;;  %v3170_v54 = vmul.f32 %v8024_v42, %v8024_v42  ;;  %v3276_v19 = vmul.f32 %v8026_v49, %v3275_v30  ;;  %v6235_v25 = vld [vmem:[#allocation2 + $0x19c] sm:$0xf] }
 0x360   :  { %v6199_v13 = vld [vmem:[#allocation2 + $0x74] sm:$0xf0]  ;;  %v6419_v30 = vld [vmem:[#allocation2 + $0x75c] sm:$0xf] }
 0x361   :  { %v4948_v14 = vld [vmem:[#allocation2 + $0x258] sm:$0xf]  ;;  %3042 = vmatpush.bf16.msra.mxu3 %v5525_v0  ;;  %3017 = vmatpush.bf16.msra.mxu1 %v4981_v26  ;;  %v4693_v10 = vor.u32 %v6199_v13, %v4692_v27  ;;  %v3118_v20 = vadd.f32 %v3117_v57, %v8024_v42  ;;  %v3183_v21 = vrot.slane %v3170_v54, 4  ;;  %v5145_v26 = vor.u32 %v6307_v45, %v5142_v55  ;;  %v6355_v55 = vld [vmem:[#allocation2 + $0x55c] sm:$0xf] }
 0x362   :  { %v6263_v56 = vld [vmem:[#allocation2 + $0x274] sm:$0xf0]  ;;  %v5401_v27 = vor.u32 %v6371_v41, %v5398_v61  ;;  %v5334_v41 = vld [vmem:[#allocation2 + $0x578] sm:$0xf0] }
 0x363   :  { %v5204_v1 = vld [vmem:[#allocation2 + $0x458] sm:$0xf]  ;;  %v4949_v23 = vor.u32 %v6263_v56, %v4948_v14  ;;  %3030 = vmatpush.bf16.msra.mxu2 %v5237_v16  ;;  %3005 = vmatpush.bf16.msra.mxu0 %v4693_v10  ;;  %v4854_v14 = vld [vmem:[#allocation2 + $0x1b8] sm:$0xf0]  ;;  %v2789_v56 = vpop.f32.mrf.mxu3  ;;  %v3184_v3 = vadd.f32 %v3183_v21, %v3170_v54  ;;  %v5337_v28 = vor.u32 %v6355_v55, %v5334_v41 }
 0x364   :  { %v6327_v2 = vld [vmem:[#allocation2 + $0x474] sm:$0xf0]  ;;  %v5110_v16 = vld [vmem:[#allocation2 + $0x3b8] sm:$0xf0] }
 0x365   :  { %v5460_v5 = vld [vmem:[#allocation2 + $0x658] sm:$0xf]  ;;  %v5205_v43 = vor.u32 %v6327_v2, %v5204_v1  ;;  %3043 = vmatpush.bf16.msra.mxu3 %v5493_v4  ;;  %3018 = vmatpush.bf16.msra.mxu1 %v4949_v23  ;;  %v3277_v1 = vmul.f32 0.5, %v3276_v19  ;;  %v3119_v2 = vrot.slane %v3118_v20, 2  ;;  %v6363_v4 = vld [vmem:[#allocation2 + $0x59c] sm:$0xf] }
 0x366   :  { %v6391_v6 = vld [vmem:[#allocation2 + $0x674] sm:$0xf0]  ;;  %v6227_v10 = vld [vmem:[#allocation2 + $0x15c] sm:$0xf] }
 0x367   :  { %v4660_v7 = vld [vmem:[#allocation2 + $0x18] sm:$0xf]  ;;  %v5461_v40 = vor.u32 %v6391_v6, %v5460_v5  ;;  %3031 = vmatpush.bf16.msra.mxu2 %v5205_v43  ;;  %v5366_v5 = vld [vmem:[#allocation2 + $0x5b8] sm:$0xf0]  ;;  %v2685_v6 = vsel %vm2662_vm1, %v2410_v18, 0  ;;  %v3278_v9 = vsub.f32 1.5, %v3277_v1 }
 0x368   :  { %v6191_v29 = vld [vmem:[#allocation2 + $0x34] sm:$0xf0]  ;;  %v4822_v23 = vld [vmem:[#allocation2 + $0x178] sm:$0xf0]  ;;  %v5369_v11 = vor.u32 %v6363_v4, %v5366_v5 }
 0x369   :  { %v4916_v32 = vld [vmem:[#allocation2 + $0x218] sm:$0xf]  ;;  %v4661_v58 = vor.u32 %v6191_v29, %v4660_v7  ;;  %3044 = vmatpush.bf16.msra.mxu3 %v5461_v40  ;;  %v6427_v7 = vld [vmem:[#allocation2 + $0x79c] sm:$0xf]  ;;  %v3120_v29 = vadd.f32 %v3119_v2, %v3118_v20  ;;  %v3279_v44 = vmul.f32 %v8026_v49, %v3278_v9 }
 0x36a   :  { %v6255_v35 = vld [vmem:[#allocation2 + $0x234] sm:$0xf0]  ;;  %v5078_v43 = vld [vmem:[#allocation2 + $0x378] sm:$0xf0]  ;;  %v5625_v61 = vor.u32 %v6427_v7, %v5622_v8 }
 0x36b   :  { %v5172_v33 = vld [vmem:[#allocation2 + $0x418] sm:$0xf]  ;;  %v4917_v0 = vor.u32 %v6255_v35, %v4916_v32  ;;  %3006 = vmatpush.bf16.msra.mxu0 %v4661_v58  ;;  %v3185_v32 = vrot.slane %v3184_v3, 2  ;;  %v4857_v35 = vor.u32 %v6235_v25, %v4854_v14  ;;  %v3121_v45 = vrot.slane %v3120_v29, 1  ;;  %v6283_v18 = vld [vmem:[#allocation2 + $0x31c] sm:$0xf] }
 0x36c   :  { %v6319_v39 = vld [vmem:[#allocation2 + $0x434] sm:$0xf0]  ;;  %v3283_v57 = vsel %vm8042_vm5, %v8026_v49, %v3279_v44  ;;  %v5081_v22 = vor.u32 %v6291_v34, %v5078_v43  ;;  %v5046_v19 = vld [vmem:[#allocation2 + $0x338] sm:$0xf0]  ;;  %v1393_v25 = vperm.slane %v7864_v37, 2  ;;  %vm3153_vm5 = vcmask 850944  }
 0x36d   :  { %v5428_v59 = vld [vmem:[#allocation2 + $0x618] sm:$0xf]  ;;  %v5173_v17 = vor.u32 %v6319_v39, %v5172_v33  ;;  %3019 = vmatpush.bf16.msra.mxu1 %v4917_v0  ;;  %v5113_v39 = vor.u32 %v6299_v15, %v5110_v16  ;;  %v3186_v40 = vadd.f32 %v3185_v32, %v3184_v3  ;;  %v3122_v54 = vadd.f32 %v3121_v45, %v3120_v29  ;;  %v6347_v49 = vld [vmem:[#allocation2 + $0x51c] sm:$0xf]  ;;  %v2800_v3 = vpop.f32.mrf.mxu0 }
 0x36e   :  { %v6383_v60 = vld [vmem:[#allocation2 + $0x634] sm:$0xf0]  ;;  %3007 = vmatmul.bf16.vlgmr.msra.gmra.mxu0 %v7948_v50  ;;  %v3354_v0 = vmul.f32 %v3283_v57, %v3258_v63  ;;  %v6411_v16 = vld [vmem:[#allocation2 + $0x71c] sm:$0xf]  ;;  %v5049_v1 = vor.u32 %v6283_v18, %v5046_v19  ;;  %v2801_v7 = vadd.f32 %v2800_v3, %v1393_v25 }
 0x36f   :  { %v5429_v13 = vor.u32 %v6383_v60, %v5428_v59  ;;  %3032 = vmatpush.bf16.msra.mxu2 %v5173_v17  ;;  %3051 = vmatpush.bf16.msrb.mxu0 %v4889_v24  ;;  %v3187_v58 = vrot.slane %v3186_v40, 1  ;;  %v4825_v59 = vor.u32 %v6227_v10, %v4822_v23  ;;  %v5590_v60 = vld [vmem:[#allocation2 + $0x778] sm:$0xf0]  ;;  %v8055_v20 = vmul.f32 0.125, %v3122_v54  ;;  %v2826_v57 = vpop.f32.mrf.mxu2 }
 0x370   :  { %3020 = vmatmul.bf16.vlgmr.msra.gmra.mxu1 %v7950_v12  ;;  %v4790_v17 = vld [vmem:[#allocation2 + $0x138] sm:$0xf0] }
 0x371   :  { %3064 = vmatpush.bf16.msrb.mxu1 %v5145_v26  ;;  %3045 = vmatpush.bf16.msra.mxu3 %v5429_v13  ;;  %v3188_v21 = vadd.f32 %v3187_v58, %v3186_v40  ;;  %v5302_v24 = vld [vmem:[#allocation2 + $0x538] sm:$0xf0]  ;;  %v8060_v26 = vpack.c.bf16 %v3354_v0, %v3354_v0  ;;  %v3235_v14 = vmul.f32 %v8055_v20, %v8055_v20 }
 0x372   :  { %3033 = vmatmul.bf16.vlgmr.msra.gmra.mxu2 %v7952_v51  ;;  %v4793_v15 = vor.u32 %v6219_v62, %v4790_v17  ;;  %v5558_v56 = vld [vmem:[#allocation2 + $0x738] sm:$0xf0]  ;;  %v5305_v2 = vor.u32 %v6347_v49, %v5302_v24  ;;  %v2839_v24 = vpop.f32.mrf.mxu3 }
 0x373   :  { %3077 = vmatpush.bf16.msrb.mxu2 %v5401_v27  ;;  %3052 = vmatpush.bf16.msrb.mxu0 %v4857_v35  ;;  %v5593_v27 = vor.u32 %v6419_v30, %v5590_v60  ;;  %v3227_v13 = vmul.f32 0.125, %v3188_v21  ;;  %v6211_v4 = vld [vmem:[#allocation2 + $0xdc] sm:$0xf]  ;;  %v5561_v32 = vor.u32 %v6411_v16, %v5558_v56  ;;  %v2813_v35 = vpop.f32.mrf.mxu1 }
 0x374   :  { %5632 = vmatmul.msk.bf16.vlgmr.msra.gmra.mxu3 %vm1022_vm4, %v7954_v53  ;;  %v4758_v5 = vld [vmem:[#allocation2 + $0xf8] sm:$0xf0]  ;;  %v2814_v33 = vadd.f32 %v2813_v35, %v2801_v7 }
 0x375   :  { %3090 = vmatpush.bf16.msrb.mxu3 %v2685_v6  ;;  %3065 = vmatpush.bf16.msrb.mxu1 %v5113_v39  ;;  %v6275_v37 = vld [vmem:[#allocation2 + $0x2dc] sm:$0xf]  ;;  %v3243_v6 = vsub.f32 %v3227_v13, %v3235_v14  ;;  %v4761_v39 = vor.u32 %v6211_v4, %v4758_v5  ;;  %v2802_v18 = vpop.f32.mrf.mxu0 }
 0x376   :  { %v5014_v8 = vld [vmem:[#allocation2 + $0x2f8] sm:$0xf0]  ;;  %v2827_v60 = vadd.f32 %v2826_v57, %v2814_v33 }
 0x377   :  { %3078 = vmatpush.bf16.msrb.mxu2 %v5369_v11  ;;  %3053 = vmatpush.bf16.msrb.mxu0 %v4825_v59  ;;  %v6339_v9 = vld [vmem:[#allocation2 + $0x4dc] sm:$0xf]  ;;  %v3251_v23 = vmax.f32 %v3243_v6, 0.0  ;;  %v5017_v43 = vor.u32 %v6275_v37, %v5014_v8 }
 0x378   :  { %v5270_v29 = vld [vmem:[#allocation2 + $0x4f8] sm:$0xf0]  ;;  %v2840_v13 = vadd.f32 %v2839_v24, %v2827_v60 }
 0x379   :  { %3091 = vmatpush.bf16.msrb.mxu3 %v5625_v61  ;;  %3066 = vmatpush.bf16.msrb.mxu1 %v5081_v22  ;;  %v6403_v10 = vld [vmem:[#allocation2 + $0x6dc] sm:$0xf]  ;;  %v5273_v44 = vor.u32 %v6339_v9, %v5270_v29  ;;  %v8064_v41 = vadd.f32 1e-05, %v3251_v23 }
 0x37a   :  { %v5526_v11 = vld [vmem:[#allocation2 + $0x6f8] sm:$0xf0]  ;;  %v8067_v6 = vmax.f32 %v2840_v13, 0.0 }
 0x37b   :  { %3079 = vmatpush.bf16.msrb.mxu2 %v5337_v28  ;;  %3054 = vmatpush.bf16.msrb.mxu0 %v4793_v15  ;;  %v6203_v34 = vld [vmem:[#allocation2 + $0x9c] sm:$0xf]  ;;  %v5529_v30 = vor.u32 %v6403_v10, %v5526_v11  ;;  %6598 = vrsqrt.f32 %v8064_v41  ;;  %vm3290_vm6 = vweird.f32 %v8064_v41 }
 0x37c   :  { %v4726_v45 = vld [vmem:[#allocation2 + $0xb8] sm:$0xf0]  ;;  %v3171_v35 = vmul.f32 %v8067_v6, %v8067_v6 }
 0x37d   :  { %3092 = vmatpush.bf16.msrb.mxu3 %v5593_v27  ;;  %3067 = vmatpush.bf16.msrb.mxu1 %v5049_v1  ;;  %v6267_v40 = vld [vmem:[#allocation2 + $0x29c] sm:$0xf]  ;;  %v4729_v54 = vor.u32 %v6203_v34, %v4726_v45  ;;  %v2815_v27 = vpop.f32.mrf.mxu1 }
 0x37e   :  { %v4982_v55 = vld [vmem:[#allocation2 + $0x2b8] sm:$0xf0]  ;;  %v3189_v45 = vrot.slane %v3171_v35, 4 }
 0x37f   :  { %3080 = vmatpush.bf16.msrb.mxu2 %v5305_v2  ;;  %v6331_v63 = vld [vmem:[#allocation2 + $0x49c] sm:$0xf]  ;;  %3055 = vmatpush.bf16.msrb.mxu0 %v4761_v39  ;;  %v4985_v62 = vor.u32 %v6267_v40, %v4982_v55  ;;  %v2828_v39 = vpop.f32.mrf.mxu2 }
 0x380   :  { %v5238_v61 = vld [vmem:[#allocation2 + $0x4b8] sm:$0xf0] }
 0x381   :  { %3093 = vmatpush.bf16.msrb.mxu3 %v5561_v32  ;;  %v6395_v58 = vld [vmem:[#allocation2 + $0x69c] sm:$0xf]  ;;  %3068 = vmatpush.bf16.msrb.mxu1 %v5017_v43  ;;  %v5241_v0 = vor.u32 %v6331_v63, %v5238_v61  ;;  %v6599_v37 = vpop.eup %6598  ;;  %v3123_v32 = vrot.slane %v8067_v6, 4  ;;  %v2841_v63 = vpop.f32.mrf.mxu3 }
 0x382   :  { %v5494_v59 = vld [vmem:[#allocation2 + $0x6b8] sm:$0xf0]  ;;  %v3285_v9 = vmul.f32 %v6599_v37, %v8064_v41  ;;  %vm3291_vm7 = vweird.f32 %v6599_v37  ;;  %v3259_v41 = vsub.f32 %v8024_v42, %v8055_v20 }
 0x383   :  { %3081 = vmatpush.bf16.msrb.mxu2 %v5273_v44  ;;  %v6195_v22 = vld [vmem:[#allocation2 + $0x5c] sm:$0xf]  ;;  %v5497_v25 = vor.u32 %v6395_v58, %v5494_v59  ;;  %3056 = vmatpush.bf16.msrb.mxu0 %v4729_v54  ;;  %v3124_v44 = vadd.f32 %v3123_v32, %v8067_v6  ;;  %vm3292_vm8 = vmor %vm3290_vm6, %vm3291_vm7 }
 0x384   :  { %v4694_v28 = vld [vmem:[#allocation2 + $0x78] sm:$0xf0]  ;;  %v3286_v11 = vmul.f32 %v6599_v37, %v3285_v9 }
 0x385   :  { %v6259_v17 = vld [vmem:[#allocation2 + $0x25c] sm:$0xf]  ;;  %3094 = vmatpush.bf16.msrb.mxu3 %v5529_v30  ;;  %v4697_v14 = vor.u32 %v6195_v22, %v4694_v28  ;;  %3069 = vmatpush.bf16.msrb.mxu1 %v4985_v62  ;;  %v3125_v61 = vrot.slane %v3124_v44, 2  ;;  %v3190_v30 = vadd.f32 %v3189_v45, %v3171_v35  ;;  %v2852_v24 = vpop.f32.mrf.mxu0 }
 0x386   :  { %v4950_v19 = vld [vmem:[#allocation2 + $0x278] sm:$0xf0]  ;;  %v3287_v40 = vmul.f32 0.5, %v3286_v11 }
 0x387   :  { %v6323_v21 = vld [vmem:[#allocation2 + $0x45c] sm:$0xf]  ;;  %3082 = vmatpush.bf16.msrb.mxu2 %v5241_v0  ;;  %v4953_v1 = vor.u32 %v6259_v17, %v4950_v19  ;;  %3057 = vmatpush.bf16.msrb.mxu0 %v4697_v14  ;;  %v3126_v54 = vadd.f32 %v3125_v61, %v3124_v44  ;;  %v3191_v58 = vrot.slane %v3190_v30, 2 }
 0x388   :  { %v5206_v49 = vld [vmem:[#allocation2 + $0x478] sm:$0xf0]  ;;  %v3288_v57 = vsub.f32 1.5, %v3287_v40 }
 0x389   :  { %v6387_v15 = vld [vmem:[#allocation2 + $0x65c] sm:$0xf]  ;;  %v5209_v2 = vor.u32 %v6323_v21, %v5206_v49  ;;  %3095 = vmatpush.bf16.msrb.mxu3 %v5497_v25  ;;  %3070 = vmatpush.bf16.msrb.mxu1 %v4953_v1  ;;  %v3127_v60 = vrot.slane %v3126_v54, 1  ;;  %v3192_v62 = vadd.f32 %v3191_v58, %v3190_v30  ;;  %v1394_v21 = vperm.slane %v7869_v38, 2 }
 0x38a   :  { %v5462_v16 = vld [vmem:[#allocation2 + $0x678] sm:$0xf0]  ;;  %v3289_v59 = vmul.f32 %v6599_v37, %v3288_v57  ;;  %v1395_v57 = vperm.slane %v7921_v46, 2 }
 0x38b   :  { %v6187_v56 = vld [vmem:[#allocation2 + $0x1c] sm:$0xf]  ;;  %v5465_v29 = vor.u32 %v6387_v15, %v5462_v16  ;;  %3083 = vmatpush.bf16.msrb.mxu2 %v5209_v2  ;;  %v3128_v28 = vadd.f32 %v3127_v60, %v3126_v54  ;;  %v3193_v17 = vrot.slane %v3192_v62, 1  ;;  %v2853_v25 = vadd.f32 %v2852_v24, %v1394_v21 }
 0x38c   :  { %v4662_v3 = vld [vmem:[#allocation2 + $0x38] sm:$0xf0]  ;;  %v3293_v0 = vsel %vm3292_vm8, %v6599_v37, %v3289_v59 }
 0x38d   :  { %v6251_v4 = vld [vmem:[#allocation2 + $0x21c] sm:$0xf]  ;;  %v4665_v10 = vor.u32 %v6187_v56, %v4662_v3  ;;  %3096 = vmatpush.bf16.msrb.mxu3 %v5465_v29  ;;  %v3355_v22 = vmul.f32 %v3293_v0, %v3259_v41  ;;  %v3194_v19 = vadd.f32 %v3193_v17, %v3192_v62 }
 0x38e   :  { %v4918_v5 = vld [vmem:[#allocation2 + $0x238] sm:$0xf0] }
 0x38f   :  { %v6315_v7 = vld [vmem:[#allocation2 + $0x41c] sm:$0xf]  ;;  %v4921_v34 = vor.u32 %v6251_v4, %v4918_v5  ;;  %3058 = vmatpush.bf16.msrb.mxu0 %v4665_v10  ;;  %v8082_v18 = vpack.c.bf16 %v3355_v22, %v3355_v22  ;;  %v3228_v42 = vmul.f32 0.125, %v3194_v19  ;;  %v2878_v14 = vpop.f32.mrf.mxu2 }
 0x390   :  { %v5174_v8 = vld [vmem:[#allocation2 + $0x438] sm:$0xf0] }
 0x391   :  { %v6379_v23 = vld [vmem:[#allocation2 + $0x61c] sm:$0xf]  ;;  %v5177_v43 = vor.u32 %v6315_v7, %v5174_v8  ;;  %3071 = vmatpush.bf16.msrb.mxu1 %v4921_v34  ;;  %v2891_v16 = vpop.f32.mrf.mxu3 }
 0x392   :  { %v5430_v33 = vld [vmem:[#allocation2 + $0x638] sm:$0xf0]  ;;  %3059 = vmatmul.bf16.vlgmr.msrb.gmra.mxu0 %v7948_v50  ;;  %v3163_v50 = vmul.f32 0.125, %v3128_v28 }
 0x393   :  { %v5433_v55 = vor.u32 %v6379_v23, %v5430_v33  ;;  %3084 = vmatpush.bf16.msrb.mxu2 %v5177_v43 }
 0x394   :  { %3072 = vmatmul.bf16.vlgmr.msrb.gmra.mxu1 %v7950_v12  ;;  %v3236_v20 = vmul.f32 %v3163_v50, %v3163_v50  ;;  %v2865_v12 = vpop.f32.mrf.mxu1  ;;  %v3260_v44 = vsub.f32 %v8067_v6, %v3163_v50 }
 0x395   :  { %3097 = vmatpush.bf16.msrb.mxu3 %v5433_v55  ;;  %v2866_v27 = vadd.f32 %v2865_v12, %v2853_v25 }
 0x396   :  { %3085 = vmatmul.bf16.vlgmr.msrb.gmra.mxu2 %v7952_v51  ;;  %v3244_v49 = vsub.f32 %v3228_v42, %v3236_v20 }
 0x397   :  { %v2879_v15 = vadd.f32 %v2878_v14, %v2866_v27  ;;  %v2880_v37 = vpop.f32.mrf.mxu2 }
 0x398   :  { %5633 = vmatmul.msk.bf16.vlgmr.msrb.gmra.mxu3 %vm1022_vm4, %v7954_v53  ;;  %v3252_v51 = vmax.f32 %v3244_v49, 0.0  ;;  %v2854_v53 = vpop.f32.mrf.mxu0 }
 0x399   :  { %v2892_v56 = vadd.f32 %v2891_v16, %v2879_v15  ;;  %v2893_v29 = vpop.f32.mrf.mxu3 }
 0x39a   :  { %v3268_v13 = vadd.f32 1e-05, %v3252_v51 }
 0x39b   :  { %v8085_v2 = vmax.f32 %v2892_v56, 0.0 }
 0x39c   :  { %6600 = vrsqrt.f32 %v3268_v13  ;;  %v2867_v1 = vpop.f32.mrf.mxu1  ;;  %vm3300_vm4 = vweird.f32 %v3268_v13 }
 0x39d   :  { %v3129_v4 = vrot.slane %v8085_v2, 4  ;;  %v3172_v5 = vmul.f32 %v8085_v2, %v8085_v2 }
 0x39f   :  { %v3130_v8 = vadd.f32 %v3129_v4, %v8085_v2  ;;  %v3195_v9 = vrot.slane %v3172_v5, 4 }
 0x3a1   :  { %v3131_v35 = vrot.slane %v3130_v8, 2  ;;  %v3196_v10 = vadd.f32 %v3195_v9, %v3172_v5 }
 0x3a2   :  { %v6601_v3 = vpop.eup %6600 }
 0x3a3   :  { %v3295_v38 = vmul.f32 %v6601_v3, %v3268_v13  ;;  %vm3301_vm9 = vweird.f32 %v6601_v3  ;;  %v3132_v33 = vadd.f32 %v3131_v35, %v3130_v8  ;;  %v3197_v39 = vrot.slane %v3196_v10, 2 }
 0x3a4   :  { %vm3302_vm10 = vmor %vm3300_vm4, %vm3301_vm9 }
 0x3a5   :  { %v3296_v7 = vmul.f32 %v6601_v3, %v3295_v38  ;;  %v3133_v34 = vrot.slane %v3132_v33, 1  ;;  %v3198_v43 = vadd.f32 %v3197_v39, %v3196_v10 }
 0x3a7   :  { %v3297_v32 = vmul.f32 0.5, %v3296_v7  ;;  %v3134_v40 = vadd.f32 %v3133_v34, %v3132_v33  ;;  %v3199_v55 = vrot.slane %v3198_v43, 1  ;;  %v2904_v41 = vpop.f32.mrf.mxu0  ;;  %v1396_v33 = vperm.slane %v7926_v47, 2 }
 0x3a8   :  { %v2905_v62 = vadd.f32 %v2904_v41, %v1395_v57 }
 0x3a9   :  { %v3298_v23 = vsub.f32 1.5, %v3297_v32  ;;  %v3164_v61 = vmul.f32 0.125, %v3134_v40  ;;  %v3200_v30 = vadd.f32 %v3199_v55, %v3198_v43  ;;  %v2917_v0 = vpop.f32.mrf.mxu1 }
 0x3aa   :  { %v2918_v28 = vadd.f32 %v2917_v0, %v2905_v62 }
 0x3ab   :  { %v3299_v11 = vmul.f32 %v6601_v3, %v3298_v23  ;;  %v3229_v58 = vmul.f32 0.125, %v3200_v30  ;;  %v3237_v59 = vmul.f32 %v3164_v61, %v3164_v61  ;;  %v3261_v5 = vsub.f32 %v8085_v2, %v3164_v61 }
 0x3ad   :  { %v3303_v45 = vsel %vm3302_vm10, %v6601_v3, %v3299_v11  ;;  %v3245_v60 = vsub.f32 %v3229_v58, %v3237_v59 }
 0x3ae   :  { %v3356_v63 = vmul.f32 %v3303_v45, %v3260_v44 }
 0x3af   :  { %v3253_v22 = vmax.f32 %v3245_v60, 0.0  ;;  %v2906_v19 = vpop.f32.mrf.mxu0 }
 0x3b0   :  { %v8093_v54 = vpack.c.bf16 %v3356_v63, %v3356_v63 }
 0x3b1   :  { %v3269_v17 = vadd.f32 1e-05, %v3253_v22  ;;  %v2930_v6 = vpop.f32.mrf.mxu2  ;;  %v2919_v42 = vpop.f32.mrf.mxu1 }
 0x3b2   :  { %v2931_v50 = vadd.f32 %v2930_v6, %v2918_v28 }
 0x3b3   :  { %6602 = vrsqrt.f32 %v3269_v17  ;;  %v2943_v21 = vpop.f32.mrf.mxu3  ;;  %vm3310_vm11 = vweird.f32 %v3269_v17 }
 0x3b4   :  { %v2944_v20 = vadd.f32 %v2943_v21, %v2931_v50 }
 0x3b6   :  { %v8095_v46 = vmax.f32 %v2944_v20, 0.0 }
 0x3b8   :  { %v3135_v12 = vrot.slane %v8095_v46, 4  ;;  %v3173_v25 = vmul.f32 %v8095_v46, %v8095_v46 }
 0x3b9   :  { %v6603_v49 = vpop.eup %6602  ;;  %v2932_v51 = vpop.f32.mrf.mxu2 }
 0x3ba   :  { %v3305_v24 = vmul.f32 %v6603_v49, %v3269_v17  ;;  %v3136_v13 = vadd.f32 %v3135_v12, %v8095_v46  ;;  %v3201_v14 = vrot.slane %v3173_v25, 4  ;;  %vm3311_vm12 = vweird.f32 %v6603_v49 }
 0x3bb   :  { %v2945_v16 = vpop.f32.mrf.mxu3  ;;  %vm3312_vm13 = vmor %vm3310_vm11, %vm3311_vm12 }
 0x3bc   :  { %v3306_v27 = vmul.f32 %v6603_v49, %v3305_v24  ;;  %v3137_v53 = vrot.slane %v3136_v13, 2  ;;  %v3202_v56 = vadd.f32 %v3201_v14, %v3173_v25 }
 0x3be   :  { %v3307_v15 = vmul.f32 0.5, %v3306_v27  ;;  %v3138_v3 = vadd.f32 %v3137_v53, %v3136_v13  ;;  %v3203_v38 = vrot.slane %v3202_v56, 2 }
 0x3c0   :  { %v3308_v1 = vsub.f32 1.5, %v3307_v15  ;;  %v3139_v37 = vrot.slane %v3138_v3, 1  ;;  %v3204_v7 = vadd.f32 %v3203_v38, %v3202_v56 }
 0x3c2   :  { %v3309_v4 = vmul.f32 %v6603_v49, %v3308_v1  ;;  %v3140_v29 = vadd.f32 %v3139_v37, %v3138_v3  ;;  %v3205_v32 = vrot.slane %v3204_v7, 1  ;;  %v1397_v1 = vperm.slane %v7931_v48, 2 }
 0x3c4   :  { %v3313_v8 = vsel %vm3312_vm13, %v6603_v49, %v3309_v4  ;;  %v3165_v10 = vmul.f32 0.125, %v3140_v29  ;;  %v3206_v23 = vadd.f32 %v3205_v32, %v3204_v7 }
 0x3c5   :  { %v3357_v9 = vmul.f32 %v3313_v8, %v3261_v5 }
 0x3c6   :  { %v3230_v39 = vmul.f32 0.125, %v3206_v23  ;;  %v3238_v11 = vmul.f32 %v3165_v10, %v3165_v10  ;;  %v3262_v27 = vsub.f32 %v8095_v46, %v3165_v10 }
 0x3c7   :  { %v8102_v35 = vpack.c.bf16 %v3357_v9, %v3357_v9  ;;  %v2956_v43 = vpop.f32.mrf.mxu0 }
 0x3c8   :  { %v3246_v34 = vsub.f32 %v3230_v39, %v3238_v11  ;;  %v2957_v45 = vadd.f32 %v2956_v43, %v1396_v33 }
 0x3c9   :  { %v2969_v44 = vpop.f32.mrf.mxu1 }
 0x3ca   :  { %v3254_v40 = vmax.f32 %v3246_v34, 0.0  ;;  %v2970_v2 = vadd.f32 %v2969_v44, %v2957_v45 }
 0x3cc   :  { %v3270_v55 = vadd.f32 1e-05, %v3254_v40 }
 0x3ce   :  { %6604 = vrsqrt.f32 %v3270_v55  ;;  %vm3320_vm14 = vweird.f32 %v3270_v55 }
 0x3cf   :  { %v2958_v57 = vpop.f32.mrf.mxu0 }
 0x3d1   :  { %v2982_v63 = vpop.f32.mrf.mxu2  ;;  %v2971_v59 = vpop.f32.mrf.mxu1 }
 0x3d2   :  { %v2983_v61 = vadd.f32 %v2982_v63, %v2970_v2 }
 0x3d3   :  { %v2995_v30 = vpop.f32.mrf.mxu3 }
 0x3d4   :  { %v2996_v58 = vadd.f32 %v2995_v30, %v2983_v61  ;;  %v6605_v60 = vpop.eup %6604 }
 0x3d5   :  { %v3315_v47 = vmul.f32 %v6605_v60, %v3270_v55  ;;  %vm3321_vm15 = vweird.f32 %v6605_v60 }
 0x3d6   :  { %v8105_v41 = vmax.f32 %v2996_v58, 0.0  ;;  %vm3322_vm0 = vmor %vm3320_vm14, %vm3321_vm15 }
 0x3d7   :  { %v3316_v28 = vmul.f32 %v6605_v60, %v3315_v47 }
 0x3d8   :  { %v3141_v62 = vrot.slane %v8105_v41, 4  ;;  %v3174_v0 = vmul.f32 %v8105_v41, %v8105_v41 }
 0x3d9   :  { %v2984_v22 = vpop.f32.mrf.mxu2  ;;  %v3317_v19 = vmul.f32 0.5, %v3316_v28 }
 0x3da   :  { %v3142_v17 = vadd.f32 %v3141_v62, %v8105_v41  ;;  %v3207_v6 = vrot.slane %v3174_v0, 4 }
 0x3db   :  { %v2997_v50 = vpop.f32.mrf.mxu3  ;;  %v3318_v20 = vsub.f32 1.5, %v3317_v19 }
 0x3dc   :  { %v3143_v21 = vrot.slane %v3142_v17, 2  ;;  %v3208_v42 = vadd.f32 %v3207_v6, %v3174_v0 }
 0x3dd   :  { %v3319_v12 = vmul.f32 %v6605_v60, %v3318_v20 }
 0x3de   :  { %v3144_v49 = vadd.f32 %v3143_v21, %v3142_v17  ;;  %v3209_v24 = vrot.slane %v3208_v42, 2  ;;  %v1398_v21 = vperm.slane %v7936_v52, 2 }
 0x3df   :  { %v3323_v13 = vsel %vm3322_vm0, %v6605_v60, %v3319_v12 }
 0x3e0   :  { %v3145_v25 = vrot.slane %v3144_v49, 1  ;;  %v3210_v51 = vadd.f32 %v3209_v24, %v3208_v42  ;;  %v3358_v16 = vmul.f32 %v3323_v13, %v3262_v27 }
 0x3e2   :  { %v3146_v14 = vadd.f32 %v3145_v25, %v3144_v49  ;;  %v3211_v15 = vrot.slane %v3210_v51, 1  ;;  %v8113_v3 = vpack.c.bf16 %v3358_v16, %v3358_v16 }
 0x3e4   :  { %v3166_v53 = vmul.f32 0.125, %v3146_v14  ;;  %v3212_v56 = vadd.f32 %v3211_v15, %v3210_v51 }
 0x3e6   :  { %v3231_v38 = vmul.f32 0.125, %v3212_v56  ;;  %v3239_v4 = vmul.f32 %v3166_v53, %v3166_v53  ;;  %v3263_v0 = vsub.f32 %v8105_v41, %v3166_v53 }
 0x3e8   :  { %v3247_v37 = vsub.f32 %v3231_v38, %v3239_v4 }
 0x3ea   :  { %v3255_v9 = vmax.f32 %v3247_v37, 0.0 }
 0x3eb   :  { %v3008_v5 = vpop.f32.mrf.mxu0 }
 0x3ec   :  { %v3009_v7 = vadd.f32 %v3008_v5, %v1397_v1  ;;  %v3271_v32 = vadd.f32 1e-05, %v3255_v9 }
 0x3ed   :  { %v3021_v8 = vpop.f32.mrf.mxu1 }
 0x3ee   :  { %v3022_v29 = vadd.f32 %v3021_v8, %v3009_v7  ;;  %6606 = vrsqrt.f32 %v3271_v32  ;;  %vm3330_vm1 = vweird.f32 %v3271_v32 }
 0x3f3   :  { %v3010_v23 = vpop.f32.mrf.mxu0 }
 0x3f4   :  { %v6607_v34 = vpop.eup %6606 }
 0x3f5   :  { %v3034_v46 = vpop.f32.mrf.mxu2  ;;  %v3023_v39 = vpop.f32.mrf.mxu1  ;;  %v3325_v43 = vmul.f32 %v6607_v34, %v3271_v32  ;;  %vm3331_vm2 = vweird.f32 %v6607_v34 }
 0x3f6   :  { %v3035_v10 = vadd.f32 %v3034_v46, %v3022_v29  ;;  %vm3332_vm3 = vmor %vm3330_vm1, %vm3331_vm2 }
 0x3f7   :  { %v3047_v33 = vpop.f32.mrf.mxu3  ;;  %v3326_v2 = vmul.f32 %v6607_v34, %v3325_v43 }
 0x3f8   :  { %v3048_v11 = vadd.f32 %v3047_v33, %v3035_v10 }
 0x3f9   :  { %v3327_v61 = vmul.f32 0.5, %v3326_v2 }
 0x3fa   :  { %v8115_v48 = vmax.f32 %v3048_v11, 0.0 }
 0x3fb   :  { %v3328_v59 = vsub.f32 1.5, %v3327_v61 }
 0x3fc   :  { %v3147_v44 = vrot.slane %v8115_v48, 4  ;;  %v3175_v45 = vmul.f32 %v8115_v48, %v8115_v48 }
 0x3fd   :  { %v3036_v40 = vpop.f32.mrf.mxu2  ;;  %v3329_v62 = vmul.f32 %v6607_v34, %v3328_v59 }
 0x3fe   :  { %v3148_v55 = vadd.f32 %v3147_v44, %v8115_v48  ;;  %v3213_v63 = vrot.slane %v3175_v45, 4 }
 0x3ff   :  { %v3049_v30 = vpop.f32.mrf.mxu3  ;;  %v3333_v17 = vsel %vm3332_vm3, %v6607_v34, %v3329_v62 }
 0x400   :  { %v3149_v57 = vrot.slane %v3148_v55, 2  ;;  %v3214_v58 = vadd.f32 %v3213_v63, %v3175_v45  ;;  %v3359_v6 = vmul.f32 %v3333_v17, %v3263_v0 }
 0x402   :  { %v3150_v60 = vadd.f32 %v3149_v57, %v3148_v55  ;;  %v3215_v47 = vrot.slane %v3214_v58, 2  ;;  %v8123_v42 = vpack.c.bf16 %v3359_v6, %v3359_v6 }
 0x404   :  { %v3151_v22 = vrot.slane %v3150_v60, 1  ;;  %v3216_v28 = vadd.f32 %v3215_v47, %v3214_v58 }
 0x406   :  { %v3152_v50 = vadd.f32 %v3151_v22, %v3150_v60  ;;  %v3217_v19 = vrot.slane %v3216_v28, 1 }
 0x408   :  { %v3167_v20 = vmul.f32 0.125, %v3152_v50  ;;  %v3218_v49 = vadd.f32 %v3217_v19, %v3216_v28 }
 0x40a   :  { %v3232_v24 = vmul.f32 0.125, %v3218_v49  ;;  %v3240_v12 = vmul.f32 %v3167_v20, %v3167_v20  ;;  %v3264_v63 = vsub.f32 %v8115_v48, %v3167_v20 }
 0x40c   :  { %v3248_v13 = vsub.f32 %v3232_v24, %v3240_v12 }
 0x40e   :  { %v3256_v14 = vmax.f32 %v3248_v13, 0.0 }
 0x40f   :  { %v3060_v25 = vpop.f32.mrf.mxu0 }
 0x410   :  { %v3061_v51 = vadd.f32 %v3060_v25, %v1398_v21  ;;  %v3272_v15 = vadd.f32 1e-05, %v3256_v14 }
 0x411   :  { %v3073_v27 = vpop.f32.mrf.mxu1 }
 0x412   :  { %v3074_v41 = vadd.f32 %v3073_v27, %v3061_v51  ;;  %6608 = vrsqrt.f32 %v3272_v15  ;;  %vm3340_vm6 = vweird.f32 %v3272_v15 }
 0x417   :  { %v3062_v56 = vpop.f32.mrf.mxu0 }
 0x418   :  { %v6609_v5 = vpop.eup %6608 }
 0x419   :  { %v3086_v16 = vpop.f32.mrf.mxu2  ;;  %v3075_v1 = vpop.f32.mrf.mxu1  ;;  %v3335_v8 = vmul.f32 %v6609_v5, %v3272_v15  ;;  %vm3341_vm7 = vweird.f32 %v6609_v5 }
 0x41a   :  { %v3087_v53 = vadd.f32 %v3086_v16, %v3074_v41  ;;  %vm3342_vm8 = vmor %vm3340_vm6, %vm3341_vm7 }
 0x41b   :  { %v3099_v38 = vpop.f32.mrf.mxu3  ;;  %v3336_v46 = vmul.f32 %v6609_v5, %v3335_v8 }
 0x41c   :  { %v3100_v52 = vadd.f32 %v3099_v38, %v3087_v53 }
 0x41d   :  { %v3337_v39 = vmul.f32 0.5, %v3336_v46 }
 0x41e   :  { %v3110_v4 = vmax.f32 %v3100_v52, 0.0 }
 0x41f   :  { %v3338_v43 = vsub.f32 1.5, %v3337_v39 }
 0x420   :  { %v3154_v37 = vsel %vm3153_vm5, %v3110_v4, 0.0  ;;  %v3176_v7 = vmul.f32 %v3110_v4, %v3110_v4 }
 0x421   :  { %v3155_v9 = vrot.slane %v3154_v37, 4  ;;  %v3088_v29 = vpop.f32.mrf.mxu2  ;;  %v3339_v40 = vmul.f32 %v6609_v5, %v3338_v43 }
 0x422   :  { %v3219_v32 = vsel %vm3153_vm5, %v3176_v7, 0.0 }
 0x423   :  { %v3156_v10 = vadd.f32 %v3155_v9, %v3154_v37  ;;  %v3220_v23 = vrot.slane %v3219_v32, 4  ;;  %v3101_v33 = vpop.f32.mrf.mxu3  ;;  %v3343_v61 = vsel %vm3342_vm8, %v6609_v5, %v3339_v40 }
 0x424   :  { %v3360_v58 = vmul.f32 %v3343_v61, %v3264_v63 }
 0x425   :  { %v3157_v11 = vrot.slane %v3156_v10, 2  ;;  %v3221_v34 = vadd.f32 %v3220_v23, %v3219_v32 }
 0x426   :  { %v8128_v47 = vpack.c.bf16 %v3360_v58, %v3360_v58 }
 0x427   :  { %v3158_v44 = vadd.f32 %v3157_v11, %v3156_v10  ;;  %v3222_v45 = vrot.slane %v3221_v34, 2 }
 0x429   :  { %v3159_v2 = vrot.slane %v3158_v44, 1  ;;  %v3223_v55 = vadd.f32 %v3222_v45, %v3221_v34 }
 0x42b   :  { %v3160_v30 = vadd.f32 %v3159_v2, %v3158_v44  ;;  %v3224_v57 = vrot.slane %v3223_v55, 1 }
 0x42d   :  { %v3168_v59 = vmul.f32 0.125, %v3160_v30  ;;  %v3225_v60 = vadd.f32 %v3224_v57, %v3223_v55 }
 0x42f   :  { %v3233_v62 = vmul.f32 0.125, %v3225_v60  ;;  %v3241_v0 = vmul.f32 %v3168_v59, %v3168_v59  ;;  %v3265_v49 = vsub.f32 %v3110_v4, %v3168_v59 }
 0x431   :  { %v3249_v22 = vsub.f32 %v3233_v62, %v3241_v0 }
 0x433   :  { %v3257_v28 = vmax.f32 %v3249_v22, 0.0 }
 0x435   :  { %v3273_v17 = vadd.f32 1e-05, %v3257_v28 }
 0x437   :  { %6610 = vrsqrt.f32 %v3273_v17  ;;  %vm3350_vm9 = vweird.f32 %v3273_v17 }
 0x43d   :  { %v6611_v6 = vpop.eup %6610 }
 0x43e   :  { %v3345_v50 = vmul.f32 %v6611_v6, %v3273_v17  ;;  %vm3351_vm4 = vweird.f32 %v6611_v6 }
 0x43f   :  { %vm3352_vm10 = vmor %vm3350_vm9, %vm3351_vm4 }
 0x440   :  { %v3346_v19 = vmul.f32 %v6611_v6, %v3345_v50 }
 0x442   :  { %v3347_v21 = vmul.f32 0.5, %v3346_v19 }
 0x444   :  { %v3348_v48 = vsub.f32 1.5, %v3347_v21 }
 0x446   :  { %v3349_v20 = vmul.f32 %v6611_v6, %v3348_v48 }
 0x448   :  { %v3353_v24 = vsel %vm3352_vm10, %v6611_v6, %v3349_v20 }
 0x449   :  { %v3361_v12 = vmul.f32 %v3353_v24, %v3265_v49 }
 0x44b   :  { %v8130_v25 = vpack.c.bf16 %v3361_v12, %v3361_v12 }
 0x44c   :  { %6624 = dma.done.wait [#allocation4 + $0x1], 16000 }
 0x44d   :  { %6625 = vsyncadd [#allocation4 + $0x1], 4294951296  ;;  %v5692_v51 = vld [vmem:[#allocation3 + $0x70] sm:$0xf]  ;;  %v6447_v27 = vld [vmem:[#allocation3 + $0x74] sm:$0xf0] }
 0x44e   :  { %v5756_v13 = vld [vmem:[#allocation3 + $0xf0] sm:$0xf]  ;;  %v5693_v14 = vor.u32 %v6447_v27, %v5692_v51  ;;  %v6463_v41 = vld [vmem:[#allocation3 + $0xf4] sm:$0xf0]  ;;  %v5684_v52 = vld [vmem:[#allocation3 + $0x60] sm:$0xf] }
 0x44f   :  { %v5820_v15 = vld [vmem:[#allocation3 + $0x170] sm:$0xf]  ;;  %v6479_v16 = vld [vmem:[#allocation3 + $0x174] sm:$0xf0]  ;;  %v5757_v53 = vor.u32 %v6463_v41, %v5756_v13  ;;  %v6445_v5 = vld [vmem:[#allocation3 + $0x64] sm:$0xf0] }
 0x450   :  { %v5821_v56 = vor.u32 %v6479_v16, %v5820_v15  ;;  %v5884_v1 = vld [vmem:[#allocation3 + $0x1f0] sm:$0xf]  ;;  %v6495_v38 = vld [vmem:[#allocation3 + $0x1f4] sm:$0xf0]  ;;  %4136 = vmatpush.bf16.msra.mxu0 %v5693_v14  ;;  %v5748_v37 = vld [vmem:[#allocation3 + $0xe0] sm:$0xf]  ;;  %v5685_v8 = vor.u32 %v6445_v5, %v5684_v52 }
 0x451   :  { %v5885_v4 = vor.u32 %v6495_v38, %v5884_v1  ;;  %v6461_v7 = vld [vmem:[#allocation3 + $0xe4] sm:$0xf0]  ;;  %4149 = vmatpush.bf16.msra.mxu1 %v5757_v53  ;;  %v5812_v29 = vld [vmem:[#allocation3 + $0x160] sm:$0xf]  ;;  %v5676_v33 = vld [vmem:[#allocation3 + $0x50] sm:$0xf] }
 0x452   :  { %4162 = vmatpush.bf16.msra.mxu2 %v5821_v56  ;;  %v5749_v9 = vor.u32 %v6461_v7, %v5748_v37  ;;  %v6477_v32 = vld [vmem:[#allocation3 + $0x164] sm:$0xf0]  ;;  %v5876_v46 = vld [vmem:[#allocation3 + $0x1e0] sm:$0xf]  ;;  %v6443_v39 = vld [vmem:[#allocation3 + $0x54] sm:$0xf0] }
 0x453   :  { %4175 = vmatpush.bf16.msra.mxu3 %v5885_v4  ;;  %v5813_v10 = vor.u32 %v6477_v32, %v5812_v29  ;;  %v6493_v23 = vld [vmem:[#allocation3 + $0x1e4] sm:$0xf0]  ;;  %v5740_v34 = vld [vmem:[#allocation3 + $0xd0] sm:$0xf]  ;;  %v6459_v43 = vld [vmem:[#allocation3 + $0xd4] sm:$0xf0]  ;;  %v5677_v45 = vor.u32 %v6443_v39, %v5676_v33 }
 0x454   :  { %v5877_v11 = vor.u32 %v6493_v23, %v5876_v46  ;;  %v5804_v44 = vld [vmem:[#allocation3 + $0x150] sm:$0xf]  ;;  %4137 = vmatpush.bf16.msra.mxu0 %v5685_v8  ;;  %v6475_v40 = vld [vmem:[#allocation3 + $0x154] sm:$0xf0]  ;;  %v5741_v63 = vor.u32 %v6459_v43, %v5740_v34  ;;  %v5668_v30 = vld [vmem:[#allocation3 + $0x40] sm:$0xf] }
 0x455   :  { %v5868_v2 = vld [vmem:[#allocation3 + $0x1d0] sm:$0xf]  ;;  %v6491_v55 = vld [vmem:[#allocation3 + $0x1d4] sm:$0xf0]  ;;  %4150 = vmatpush.bf16.msra.mxu1 %v5749_v9  ;;  %v5805_v61 = vor.u32 %v6475_v40, %v5804_v44  ;;  %v6441_v57 = vld [vmem:[#allocation3 + $0x44] sm:$0xf0] }
 0x456   :  { %4163 = vmatpush.bf16.msra.mxu2 %v5813_v10  ;;  %v5732_v58 = vld [vmem:[#allocation3 + $0xc0] sm:$0xf]  ;;  %v5869_v59 = vor.u32 %v6491_v55, %v5868_v2  ;;  %v6457_v60 = vld [vmem:[#allocation3 + $0xc4] sm:$0xf0]  ;;  %v5669_v17 = vor.u32 %v6441_v57, %v5668_v30  ;;  %v5660_v19 = vld [vmem:[#allocation3 + $0x30] sm:$0xf] }
 0x457   :  { %4176 = vmatpush.bf16.msra.mxu3 %v5877_v11  ;;  %v5796_v62 = vld [vmem:[#allocation3 + $0x140] sm:$0xf]  ;;  %v6473_v0 = vld [vmem:[#allocation3 + $0x144] sm:$0xf0]  ;;  %v5733_v6 = vor.u32 %v6457_v60, %v5732_v58  ;;  %v6439_v21 = vld [vmem:[#allocation3 + $0x34] sm:$0xf0] }
 0x458   :  { %v5860_v22 = vld [vmem:[#allocation3 + $0x1c0] sm:$0xf]  ;;  %v6489_v28 = vld [vmem:[#allocation3 + $0x1c4] sm:$0xf0]  ;;  %4138 = vmatpush.bf16.msra.mxu0 %v5677_v45  ;;  %v5797_v50 = vor.u32 %v6473_v0, %v5796_v62  ;;  %v5724_v48 = vld [vmem:[#allocation3 + $0xb0] sm:$0xf]  ;;  %v5661_v13 = vor.u32 %v6439_v21, %v5660_v19 }
 0x459   :  { %4151 = vmatpush.bf16.msra.mxu1 %v5741_v63  ;;  %v5861_v20 = vor.u32 %v6489_v28, %v5860_v22  ;;  %v6455_v49 = vld [vmem:[#allocation3 + $0xb4] sm:$0xf0]  ;;  %v5788_v24 = vld [vmem:[#allocation3 + $0x130] sm:$0xf]  ;;  %v5652_v15 = vld [vmem:[#allocation3 + $0x20] sm:$0xf] }
 0x45a   :  { %4164 = vmatpush.bf16.msra.mxu2 %v5805_v61  ;;  %v6471_v12 = vld [vmem:[#allocation3 + $0x134] sm:$0xf0]  ;;  %v5852_v51 = vld [vmem:[#allocation3 + $0x1b0] sm:$0xf]  ;;  %v5725_v14 = vor.u32 %v6455_v49, %v5724_v48  ;;  %v6437_v16 = vld [vmem:[#allocation3 + $0x24] sm:$0xf0] }
 0x45b   :  { %4177 = vmatpush.bf16.msra.mxu3 %v5869_v59  ;;  %v6487_v27 = vld [vmem:[#allocation3 + $0x1b4] sm:$0xf0]  ;;  %v5789_v41 = vor.u32 %v6471_v12, %v5788_v24  ;;  %v5716_v53 = vld [vmem:[#allocation3 + $0xa0] sm:$0xf]  ;;  %v6453_v1 = vld [vmem:[#allocation3 + $0xa4] sm:$0xf0]  ;;  %v5653_v37 = vor.u32 %v6437_v16, %v5652_v15 }
 0x45c   :  { %4139 = vmatpush.bf16.msra.mxu0 %v5669_v17  ;;  %v5853_v56 = vor.u32 %v6487_v27, %v5852_v51  ;;  %v5780_v38 = vld [vmem:[#allocation3 + $0x120] sm:$0xf]  ;;  %v6469_v52 = vld [vmem:[#allocation3 + $0x124] sm:$0xf0]  ;;  %v5717_v7 = vor.u32 %v6453_v1, %v5716_v53  ;;  %v5644_v9 = vld [vmem:[#allocation3 + $0x10] sm:$0xf] }
 0x45d   :  { %4152 = vmatpush.bf16.msra.mxu1 %v5733_v6  ;;  %v5844_v4 = vld [vmem:[#allocation3 + $0x1a0] sm:$0xf]  ;;  %v6485_v5 = vld [vmem:[#allocation3 + $0x1a4] sm:$0xf0]  ;;  %v5781_v8 = vor.u32 %v6469_v52, %v5780_v38  ;;  %v6435_v29 = vld [vmem:[#allocation3 + $0x14] sm:$0xf0] }
 0x45e   :  { %4165 = vmatpush.bf16.msra.mxu2 %v5797_v50  ;;  %v5708_v32 = vld [vmem:[#allocation3 + $0x90] sm:$0xf]  ;;  %v5845_v46 = vor.u32 %v6485_v5, %v5844_v4  ;;  %v6451_v10 = vld [vmem:[#allocation3 + $0x94] sm:$0xf0]  ;;  %v5645_v34 = vor.u32 %v6435_v29, %v5644_v9  ;;  %v5636_v43 = vld [vmem:[#allocation3] sm:$0xf] }
 0x45f   :  { %4178 = vmatpush.bf16.msra.mxu3 %v5861_v20  ;;  %v5772_v23 = vld [vmem:[#allocation3 + $0x110] sm:$0xf]  ;;  %v6467_v33 = vld [vmem:[#allocation3 + $0x114] sm:$0xf0]  ;;  %v6433_v44 = vld [vmem:[#allocation3 + $0x4] sm:$0xf0]  ;;  %v5709_v40 = vor.u32 %v6451_v10, %v5708_v32 }
 0x460   :  { %4140 = vmatpush.bf16.msra.mxu0 %v5661_v13  ;;  %v5836_v39 = vld [vmem:[#allocation3 + $0x190] sm:$0xf]  ;;  %v6483_v11 = vld [vmem:[#allocation3 + $0x194] sm:$0xf0]  ;;  %v8132_v45 = vld [vmem:[#allocation3 + $0x3e0] sm:$0xff]  ;;  %v5773_v2 = vor.u32 %v6467_v33, %v5772_v23  ;;  %v5637_v28 = vor.u32 %v6433_v44, %v5636_v43  ;;  %vm4129_vm11 = vcmask 1043456  }
 0x461   :  { %4153 = vmatpush.bf16.msra.mxu1 %v5725_v14  ;;  %v5700_v55 = vld [vmem:[#allocation3 + $0x80] sm:$0xf]  ;;  %v6449_v63 = vld [vmem:[#allocation3 + $0x84] sm:$0xf0]  ;;  %v3874_v30 = vunpack.c.l.b16 %v8132_v45  ;;  %v5837_v57 = vor.u32 %v6483_v11, %v5836_v39  ;;  %v5948_v62 = vld [vmem:[#allocation3 + $0x270] sm:$0xf] }
 0x462   :  { %4166 = vmatpush.bf16.msra.mxu2 %v5789_v41  ;;  %v5764_v61 = vld [vmem:[#allocation3 + $0x100] sm:$0xf]  ;;  %v6465_v58 = vld [vmem:[#allocation3 + $0x104] sm:$0xf0]  ;;  %v6511_v0 = vld [vmem:[#allocation3 + $0x274] sm:$0xf0]  ;;  %v5701_v19 = vor.u32 %v6449_v63, %v5700_v55 }
 0x463   :  { %4179 = vmatpush.bf16.msra.mxu3 %v5853_v56  ;;  %v5828_v59 = vld [vmem:[#allocation3 + $0x180] sm:$0xf]  ;;  %v6481_v60 = vld [vmem:[#allocation3 + $0x184] sm:$0xf0]  ;;  %v6012_v22 = vld [vmem:[#allocation3 + $0x2f0] sm:$0xf]  ;;  %v5765_v21 = vor.u32 %v6465_v58, %v5764_v61  ;;  %v4000_v48 = vpack.c.b16 %v3874_v30, %v3874_v30  ;;  %v5949_v49 = vor.u32 %v6511_v0, %v5948_v62 }
 0x464   :  { %4141 = vmatpush.bf16.msra.mxu0 %v5653_v37  ;;  %v6527_v17 = vld [vmem:[#allocation3 + $0x2f4] sm:$0xf0]  ;;  %v6076_v6 = vld [vmem:[#allocation3 + $0x370] sm:$0xf]  ;;  %v5829_v20 = vor.u32 %v6481_v60, %v5828_v59  ;;  %v5940_v51 = vld [vmem:[#allocation3 + $0x260] sm:$0xf] }
 0x465   :  { %4154 = vmatpush.bf16.msra.mxu1 %v5717_v7  ;;  %v6543_v50 = vld [vmem:[#allocation3 + $0x374] sm:$0xf0]  ;;  %v6013_v24 = vor.u32 %v6527_v17, %v6012_v22  ;;  %v6509_v27 = vld [vmem:[#allocation3 + $0x264] sm:$0xf0]  ;;  %v6004_v13 = vld [vmem:[#allocation3 + $0x2e0] sm:$0xf] }
 0x466   :  { %4167 = vmatpush.bf16.msra.mxu2 %v5781_v8  ;;  %v6077_v12 = vor.u32 %v6543_v50, %v6076_v6  ;;  %v6525_v14 = vld [vmem:[#allocation3 + $0x2e4] sm:$0xf0]  ;;  %v6068_v41 = vld [vmem:[#allocation3 + $0x360] sm:$0xf]  ;;  %v4131_v16 = vsel %vm4129_vm11, %v4000_v48, 0  ;;  %v5941_v1 = vor.u32 %v6509_v27, %v5940_v51  ;;  %vm4352_vm15 = vcmask 588800  }
 0x467   :  { %4180 = vmatpush.bf16.msra.mxu3 %v5845_v46  ;;  %v6541_v15 = vld [vmem:[#allocation3 + $0x364] sm:$0xf0]  ;;  %v6124_v53 = vld [vmem:[#allocation3 + $0x3d0] sm:$0xf]  ;;  %v6555_v56 = vld [vmem:[#allocation3 + $0x3d4] sm:$0xf0]  ;;  %v6005_v38 = vor.u32 %v6525_v14, %v6004_v13 }
 0x468   :  { %4142 = vmatpush.bf16.msra.mxu0 %v5645_v34  ;;  %v6069_v52 = vor.u32 %v6541_v15, %v6068_v41  ;;  %v5932_v4 = vld [vmem:[#allocation3 + $0x250] sm:$0xf]  ;;  %v6507_v5 = vld [vmem:[#allocation3 + $0x254] sm:$0xf0]  ;;  %v6125_v7 = vor.u32 %v6555_v56, %v6124_v53  ;;  %v6116_v32 = vld [vmem:[#allocation3 + $0x3c0] sm:$0xf] }
 0x469   :  { %4155 = vmatpush.bf16.msra.mxu1 %v5709_v40  ;;  %v5996_v37 = vld [vmem:[#allocation3 + $0x2d0] sm:$0xf]  ;;  %v6523_v8 = vld [vmem:[#allocation3 + $0x2d4] sm:$0xf0]  ;;  %v6553_v46 = vld [vmem:[#allocation3 + $0x3c4] sm:$0xf0]  ;;  %v5933_v10 = vor.u32 %v6507_v5, %v5932_v4 }
 0x46a   :  { %4168 = vmatpush.bf16.msra.mxu2 %v5773_v2  ;;  %v6060_v9 = vld [vmem:[#allocation3 + $0x350] sm:$0xf]  ;;  %v6539_v29 = vld [vmem:[#allocation3 + $0x354] sm:$0xf0]  ;;  %v5997_v23 = vor.u32 %v6523_v8, %v5996_v37  ;;  %v5924_v39 = vld [vmem:[#allocation3 + $0x240] sm:$0xf]  ;;  %v6117_v43 = vor.u32 %v6553_v46, %v6116_v32 }
 0x46b   :  { %4181 = vmatpush.bf16.msra.mxu3 %v5837_v57  ;;  %v6061_v33 = vor.u32 %v6539_v29, %v6060_v9  ;;  %v6505_v11 = vld [vmem:[#allocation3 + $0x244] sm:$0xf0]  ;;  %v5988_v34 = vld [vmem:[#allocation3 + $0x2c0] sm:$0xf]  ;;  %v6108_v55 = vld [vmem:[#allocation3 + $0x3b0] sm:$0xf] }
 0x46c   :  { %4143 = vmatpush.bf16.msra.mxu0 %v5637_v28  ;;  %v6521_v44 = vld [vmem:[#allocation3 + $0x2c4] sm:$0xf0]  ;;  %v6052_v40 = vld [vmem:[#allocation3 + $0x340] sm:$0xf]  ;;  %v6551_v63 = vld [vmem:[#allocation3 + $0x3b4] sm:$0xf0]  ;;  %v5925_v61 = vor.u32 %v6505_v11, %v5924_v39 }
 0x46d   :  { %4156 = vmatpush.bf16.msra.mxu1 %v5701_v19  ;;  %v6537_v2 = vld [vmem:[#allocation3 + $0x344] sm:$0xf0]  ;;  %v5989_v30 = vor.u32 %v6521_v44, %v5988_v34  ;;  %v5916_v58 = vld [vmem:[#allocation3 + $0x230] sm:$0xf]  ;;  %v6503_v59 = vld [vmem:[#allocation3 + $0x234] sm:$0xf0]  ;;  %v6109_v62 = vor.u32 %v6551_v63, %v6108_v55 }
 0x46e   :  { %4169 = vmatpush.bf16.msra.mxu2 %v5765_v21  ;;  %v6053_v57 = vor.u32 %v6537_v2, %v6052_v40  ;;  %v5980_v60 = vld [vmem:[#allocation3 + $0x2b0] sm:$0xf]  ;;  %v6519_v0 = vld [vmem:[#allocation3 + $0x2b4] sm:$0xf0]  ;;  %v6100_v17 = vld [vmem:[#allocation3 + $0x3a0] sm:$0xf]  ;;  %v5917_v50 = vor.u32 %v6503_v59, %v5916_v58 }
 0x46f   :  { %4182 = vmatpush.bf16.msra.mxu3 %v5829_v20  ;;  %4144 = vmatmul.bf16.vlgmr.msra.gmra.mxu0 %v8060_v26  ;;  %v6044_v22 = vld [vmem:[#allocation3 + $0x330] sm:$0xf]  ;;  %v6535_v28 = vld [vmem:[#allocation3 + $0x334] sm:$0xf0]  ;;  %v6549_v6 = vld [vmem:[#allocation3 + $0x3a4] sm:$0xf0]  ;;  %v5981_v19 = vor.u32 %v6519_v0, %v5980_v60 }
 0x470   :  { %4188 = vmatpush.bf16.msrb.mxu0 %v5949_v49  ;;  %4157 = vmatmul.bf16.vlgmr.msra.gmra.mxu1 %v8082_v18  ;;  %v6045_v21 = vor.u32 %v6535_v28, %v6044_v22  ;;  %v5908_v48 = vld [vmem:[#allocation3 + $0x220] sm:$0xf]  ;;  %v6501_v20 = vld [vmem:[#allocation3 + $0x224] sm:$0xf0]  ;;  %v6092_v13 = vld [vmem:[#allocation3 + $0x390] sm:$0xf] }
 0x471   :  { %4201 = vmatpush.bf16.msrb.mxu1 %v6013_v24  ;;  %4170 = vmatmul.bf16.vlgmr.msra.gmra.mxu2 %v8093_v54  ;;  %v5972_v49 = vld [vmem:[#allocation3 + $0x2a0] sm:$0xf]  ;;  %v6101_v24 = vor.u32 %v6549_v6, %v6100_v17  ;;  %v6533_v27 = vld [vmem:[#allocation3 + $0x324] sm:$0xf0]  ;;  %v6547_v14 = vld [vmem:[#allocation3 + $0x394] sm:$0xf0]  ;;  %v5909_v41 = vor.u32 %v6501_v20, %v5908_v48 }
 0x472   :  { %4214 = vmatpush.bf16.msrb.mxu2 %v6077_v12  ;;  %4183 = vmatmul.bf16.vlgmr.msra.gmra.mxu3 %v8102_v35  ;;  %v6517_v12 = vld [vmem:[#allocation3 + $0x2a4] sm:$0xf0]  ;;  %v6036_v51 = vld [vmem:[#allocation3 + $0x320] sm:$0xf]  ;;  %v5900_v53 = vld [vmem:[#allocation3 + $0x210] sm:$0xf] }
 0x473   :  { %4228 = vmatpush.bf16.msrb.mxu3 %v4131_v16  ;;  %v5973_v15 = vor.u32 %v6517_v12, %v5972_v49  ;;  %v6037_v16 = vor.u32 %v6533_v27, %v6036_v51  ;;  %v6499_v56 = vld [vmem:[#allocation3 + $0x214] sm:$0xf0]  ;;  %v6028_v4 = vld [vmem:[#allocation3 + $0x310] sm:$0xf]  ;;  %v6084_v37 = vld [vmem:[#allocation3 + $0x380] sm:$0xf] }
 0x474   :  { %4189 = vmatpush.bf16.msrb.mxu0 %v5941_v1  ;;  %v5964_v1 = vld [vmem:[#allocation3 + $0x290] sm:$0xf]  ;;  %v6531_v5 = vld [vmem:[#allocation3 + $0x314] sm:$0xf0]  ;;  %v6446_v8 = vld [vmem:[#allocation3 + $0x74] sm:$0xf]  ;;  %v5901_v9 = vor.u32 %v6499_v56, %v5900_v53 }
 0x475   :  { %4202 = vmatpush.bf16.msrb.mxu1 %v6005_v38  ;;  %v6093_v38 = vor.u32 %v6547_v14, %v6092_v13  ;;  %v5694_v29 = vld [vmem:[#allocation3 + $0x78] sm:$0xf0]  ;;  %v5892_v32 = vld [vmem:[#allocation3 + $0x200] sm:$0xf]  ;;  %v6497_v46 = vld [vmem:[#allocation3 + $0x204] sm:$0xf0] }
 0x476   :  { %4215 = vmatpush.bf16.msrb.mxu2 %v6069_v52  ;;  %v6515_v52 = vld [vmem:[#allocation3 + $0x294] sm:$0xf0]  ;;  %v6513_v39 = vld [vmem:[#allocation3 + $0x284] sm:$0xf0]  ;;  %v6020_v11 = vld [vmem:[#allocation3 + $0x300] sm:$0xf]  ;;  %v5697_v2 = vor.u32 %v6446_v8, %v5694_v29 }
 0x477   :  { %4229 = vmatpush.bf16.msrb.mxu3 %v6125_v7  ;;  %v6545_v7 = vld [vmem:[#allocation3 + $0x384] sm:$0xf0]  ;;  %v6444_v44 = vld [vmem:[#allocation3 + $0x64] sm:$0xf]  ;;  %v6462_v40 = vld [vmem:[#allocation3 + $0xf4] sm:$0xf] }
 0x478   :  { %4190 = vmatpush.bf16.msrb.mxu0 %v5933_v10  ;;  %v5965_v10 = vor.u32 %v6515_v52, %v5964_v1  ;;  %v6085_v34 = vor.u32 %v6545_v7, %v6084_v37  ;;  %v5758_v55 = vld [vmem:[#allocation3 + $0xf8] sm:$0xf0]  ;;  %v6478_v63 = vld [vmem:[#allocation3 + $0x174] sm:$0xf]  ;;  %v6460_v17 = vld [vmem:[#allocation3 + $0xe4] sm:$0xf] }
 0x479   :  { %4203 = vmatpush.bf16.msrb.mxu1 %v5997_v23  ;;  %v6029_v23 = vor.u32 %v6531_v5, %v6028_v4  ;;  %v6494_v58 = vld [vmem:[#allocation3 + $0x1f4] sm:$0xf]  ;;  %v5886_v59 = vld [vmem:[#allocation3 + $0x1f8] sm:$0xf0]  ;;  %v5761_v0 = vor.u32 %v6462_v40, %v5758_v55  ;;  %v5814_v48 = vld [vmem:[#allocation3 + $0x168] sm:$0xf0] }
 0x47a   :  { %4216 = vmatpush.bf16.msrb.mxu2 %v6061_v33  ;;  %v5956_v33 = vld [vmem:[#allocation3 + $0x280] sm:$0xf]  ;;  %v6442_v28 = vld [vmem:[#allocation3 + $0x54] sm:$0xf]  ;;  %v5678_v20 = vld [vmem:[#allocation3 + $0x58] sm:$0xf0] }
 0x47b   :  { %4230 = vmatpush.bf16.msrb.mxu3 %v6117_v43  ;;  %v6529_v43 = vld [vmem:[#allocation3 + $0x304] sm:$0xf0]  ;;  %v5957_v60 = vor.u32 %v6513_v39, %v5956_v33  ;;  %v6492_v49 = vld [vmem:[#allocation3 + $0x1e4] sm:$0xf]  ;;  %v6458_v13 = vld [vmem:[#allocation3 + $0xd4] sm:$0xf]  ;;  %v5681_v14 = vor.u32 %v6442_v28, %v5678_v20 }
 0x47c   :  { %4191 = vmatpush.bf16.msrb.mxu0 %v5925_v61  ;;  %v5822_v61 = vld [vmem:[#allocation3 + $0x178] sm:$0xf0]  ;;  %v6440_v27 = vld [vmem:[#allocation3 + $0x44] sm:$0xf]  ;;  %v5670_v56 = vld [vmem:[#allocation3 + $0x48] sm:$0xf0] }
 0x47d   :  { %4204 = vmatpush.bf16.msrb.mxu1 %v5989_v30  ;;  %v5893_v30 = vor.u32 %v6497_v46, %v5892_v32  ;;  %v5825_v22 = vor.u32 %v6478_v63, %v5822_v61  ;;  %v5806_v53 = vld [vmem:[#allocation3 + $0x158] sm:$0xf0]  ;;  %v6490_v1 = vld [vmem:[#allocation3 + $0x1d4] sm:$0xf]  ;;  %v6456_v37 = vld [vmem:[#allocation3 + $0xc4] sm:$0xf]  ;;  %v5673_v7 = vor.u32 %v6440_v27, %v5670_v56  ;;  %v3875_v56 = vunpack.c.h.b16 %v8132_v45 }
 0x47e   :  { %4217 = vmatpush.bf16.msrb.mxu2 %v6053_v57  ;;  %v5686_v57 = vld [vmem:[#allocation3 + $0x68] sm:$0xf0]  ;;  %v6438_v5 = vld [vmem:[#allocation3 + $0x34] sm:$0xf]  ;;  %v6472_v29 = vld [vmem:[#allocation3 + $0x144] sm:$0xf] }
 0x47f   :  { %4231 = vmatpush.bf16.msrb.mxu3 %v6109_v62  ;;  %v6021_v62 = vor.u32 %v6529_v43, %v6020_v11  ;;  %v5689_v6 = vor.u32 %v6444_v44, %v5686_v57  ;;  %v5798_v32 = vld [vmem:[#allocation3 + $0x148] sm:$0xf0]  ;;  %v5662_v46 = vld [vmem:[#allocation3 + $0x38] sm:$0xf0]  ;;  %v6436_v11 = vld [vmem:[#allocation3 + $0x24] sm:$0xf] }
 0x480   :  { %4192 = vmatpush.bf16.msrb.mxu0 %v5917_v50  ;;  %v5889_v50 = vor.u32 %v6494_v58, %v5886_v59  ;;  %v5801_v39 = vor.u32 %v6472_v29, %v5798_v32  ;;  %v5665_v43 = vor.u32 %v6438_v5, %v5662_v46  ;;  %v5726_v40 = vld [vmem:[#allocation3 + $0xb8] sm:$0xf0]  ;;  %v5654_v63 = vld [vmem:[#allocation3 + $0x28] sm:$0xf0]  ;;  %v6486_v61 = vld [vmem:[#allocation3 + $0x1b4] sm:$0xf] }
 0x481   :  { %4205 = vmatpush.bf16.msrb.mxu1 %v5981_v19  ;;  %v5750_v19 = vld [vmem:[#allocation3 + $0xe8] sm:$0xf0]  ;;  %v5790_v55 = vld [vmem:[#allocation3 + $0x138] sm:$0xf0]  ;;  %v6434_v59 = vld [vmem:[#allocation3 + $0x14] sm:$0xf] }
 0x482   :  { %4218 = vmatpush.bf16.msrb.mxu2 %v6045_v21  ;;  %v6476_v21 = vld [vmem:[#allocation3 + $0x164] sm:$0xf]  ;;  %v5753_v12 = vor.u32 %v6460_v17, %v5750_v19  ;;  %v5782_v17 = vld [vmem:[#allocation3 + $0x128] sm:$0xf0]  ;;  %v6466_v27 = vld [vmem:[#allocation3 + $0x114] sm:$0xf] }
 0x483   :  { %4232 = vmatpush.bf16.msrb.mxu3 %v6101_v24  ;;  %v5878_v24 = vld [vmem:[#allocation3 + $0x1e8] sm:$0xf0]  ;;  %v5817_v51 = vor.u32 %v6476_v21, %v5814_v48  ;;  %v6468_v28 = vld [vmem:[#allocation3 + $0x124] sm:$0xf]  ;;  %v6542_v45 = vld [vmem:[#allocation3 + $0x374] sm:$0xf] }
 0x484   :  { %4193 = vmatpush.bf16.msrb.mxu0 %v5909_v41  ;;  %v5881_v41 = vor.u32 %v6492_v49, %v5878_v24  ;;  %v5846_v19 = vld [vmem:[#allocation3 + $0x1a8] sm:$0xf0]  ;;  %v5785_v48 = vor.u32 %v6468_v28, %v5782_v17  ;;  %v6432_v20 = vld [vmem:[#allocation3 + $0x4] sm:$0xf]  ;;  %v6450_v49 = vld [vmem:[#allocation3 + $0x94] sm:$0xf] }
 0x485   :  { %4206 = vmatpush.bf16.msrb.mxu1 %v5973_v15  ;;  %v5742_v15 = vld [vmem:[#allocation3 + $0xd8] sm:$0xf0]  ;;  %v6464_v5 = vld [vmem:[#allocation3 + $0x104] sm:$0xf]  ;;  %v5830_v29 = vld [vmem:[#allocation3 + $0x188] sm:$0xf0] }
 0x486   :  { %4219 = vmatpush.bf16.msrb.mxu2 %v6037_v16  ;;  %v6474_v16 = vld [vmem:[#allocation3 + $0x154] sm:$0xf]  ;;  %v5745_v52 = vor.u32 %v6458_v13, %v5742_v15  ;;  %v5774_v13 = vld [vmem:[#allocation3 + $0x118] sm:$0xf0]  ;;  %v6508_v46 = vld [vmem:[#allocation3 + $0x264] sm:$0xf] }
 0x487   :  { %4233 = vmatpush.bf16.msrb.mxu3 %v6093_v38  ;;  %v5870_v38 = vld [vmem:[#allocation3 + $0x1d8] sm:$0xf0]  ;;  %v5809_v4 = vor.u32 %v6474_v16, %v5806_v53  ;;  %v6510_v16 = vld [vmem:[#allocation3 + $0x274] sm:$0xf]  ;;  %vm4547_vm3 = vcmask 818176   ;;  %vm4607_vm10 = vcmask 7168  }
 0x488   :  { %4194 = vmatpush.bf16.msrb.mxu0 %v5901_v9  ;;  %v5873_v8 = vor.u32 %v6490_v1, %v5870_v38  ;;  %v5734_v9 = vld [vmem:[#allocation3 + $0xc8] sm:$0xf0]  ;;  %v5838_v15 = vld [vmem:[#allocation3 + $0x198] sm:$0xf0]  ;;  %v5777_v38 = vor.u32 %v6466_v27, %v5774_v13 }
 0x489   :  { %4207 = vmatpush.bf16.msrb.mxu1 %v5965_v10  ;;  %v6488_v10 = vld [vmem:[#allocation3 + $0x1c4] sm:$0xf]  ;;  %v5737_v33 = vor.u32 %v6456_v37, %v5734_v9  ;;  %v5950_v53 = vld [vmem:[#allocation3 + $0x278] sm:$0xf0] }
 0x48a   :  { %4220 = vmatpush.bf16.msrb.mxu2 %v6029_v23  ;;  %v5862_v23 = vld [vmem:[#allocation3 + $0x1c8] sm:$0xf0]  ;;  %v6480_v9 = vld [vmem:[#allocation3 + $0x184] sm:$0xf]  ;;  %v5953_v32 = vor.u32 %v6510_v16, %v5950_v53  ;;  %v5918_v16 = vld [vmem:[#allocation3 + $0x238] sm:$0xf0] }
 0x48b   :  { %4234 = vmatpush.bf16.msrb.mxu3 %v6085_v34  ;;  %v6454_v34 = vld [vmem:[#allocation3 + $0xb4] sm:$0xf]  ;;  %v5865_v44 = vor.u32 %v6488_v10, %v5862_v23  ;;  %v6014_v23 = vld [vmem:[#allocation3 + $0x2f8] sm:$0xf0]  ;;  %v6536_v53 = vld [vmem:[#allocation3 + $0x344] sm:$0xf] }
 0x48c   :  { %4195 = vmatpush.bf16.msrb.mxu0 %v5893_v30  ;;  %v5854_v30 = vld [vmem:[#allocation3 + $0x1b8] sm:$0xf0]  ;;  %v5729_v57 = vor.u32 %v6454_v34, %v5726_v40  ;;  %v6526_v10 = vld [vmem:[#allocation3 + $0x2f4] sm:$0xf] }
 0x48d   :  { %4208 = vmatpush.bf16.msrb.mxu1 %v5957_v60  ;;  %v6452_v60 = vld [vmem:[#allocation3 + $0xa4] sm:$0xf]  ;;  %v6017_v40 = vor.u32 %v6526_v10, %v6014_v23 }
 0x48e   :  { %4221 = vmatpush.bf16.msrb.mxu2 %v6021_v62  ;;  %6130 = vmatmul.msk.bf16.vlgmr.msrb.gmra.mxu3 %vm3153_vm5, %v8130_v25  ;;  %v5657_v62 = vor.u32 %v6436_v11, %v5654_v63  ;;  %v6506_v63 = vld [vmem:[#allocation3 + $0x254] sm:$0xf] }
 0x48f   :  { %4240 = vmatpush.bf16.msra.mxu3 %v5697_v2  ;;  %4196 = vmatmul.bf16.vlgmr.msrb.gmra.mxu0 %v8113_v3  ;;  %v6470_v2 = vld [vmem:[#allocation3 + $0x134] sm:$0xf] }
 0x490   :  { %4253 = vmatpush.bf16.msra.mxu0 %v5761_v0  ;;  %4209 = vmatmul.bf16.vlgmr.msrb.gmra.mxu1 %v8123_v42  ;;  %v5793_v58 = vor.u32 %v6470_v2, %v5790_v55  ;;  %v5857_v0 = vor.u32 %v6486_v61, %v5854_v30  ;;  %v6524_v61 = vld [vmem:[#allocation3 + $0x2e4] sm:$0xf]  ;;  %v6006_v30 = vld [vmem:[#allocation3 + $0x2e8] sm:$0xf0] }
 0x491   :  { %4266 = vmatpush.bf16.msra.mxu1 %v5825_v22  ;;  %4222 = vmatmul.bf16.vlgmr.msrb.gmra.mxu2 %v8128_v47  ;;  %v5718_v22 = vld [vmem:[#allocation3 + $0xa8] sm:$0xf0] }
 0x492   :  { %4279 = vmatpush.bf16.msra.mxu2 %v5889_v50  ;;  %v6484_v50 = vld [vmem:[#allocation3 + $0x1a4] sm:$0xf]  ;;  %v5721_v21 = vor.u32 %v6452_v60, %v5718_v22  ;;  %v6009_v22 = vor.u32 %v6524_v61, %v6006_v30 }
 0x493   :  { %4241 = vmatpush.bf16.msra.mxu3 %v5689_v6  ;;  %v5646_v6 = vld [vmem:[#allocation3 + $0x18] sm:$0xf0]  ;;  %v6496_v30 = vld [vmem:[#allocation3 + $0x204] sm:$0xf] }
 0x494   :  { %4254 = vmatpush.bf16.msra.mxu0 %v5753_v12  ;;  %v5649_v24 = vor.u32 %v6434_v59, %v5646_v6  ;;  %v5849_v12 = vor.u32 %v6484_v50, %v5846_v19  ;;  %v6070_v59 = vld [vmem:[#allocation3 + $0x368] sm:$0xf0]  ;;  %v6504_v6 = vld [vmem:[#allocation3 + $0x244] sm:$0xf]  ;;  %v6522_v50 = vld [vmem:[#allocation3 + $0x2d4] sm:$0xf] }
 0x495   :  { %4267 = vmatpush.bf16.msra.mxu1 %v5817_v51  ;;  %v5710_v51 = vld [vmem:[#allocation3 + $0x98] sm:$0xf0] }
 0x496   :  { %4280 = vmatpush.bf16.msra.mxu2 %v5881_v41  ;;  %v6482_v41 = vld [vmem:[#allocation3 + $0x194] sm:$0xf]  ;;  %v5713_v1 = vor.u32 %v6450_v49, %v5710_v51  ;;  %v5998_v19 = vld [vmem:[#allocation3 + $0x2d8] sm:$0xf0] }
 0x497   :  { %4242 = vmatpush.bf16.msra.mxu3 %v5681_v14  ;;  %v5638_v14 = vld [vmem:[#allocation3 + $0x8] sm:$0xf0]  ;;  %v6062_v49 = vld [vmem:[#allocation3 + $0x358] sm:$0xf0]  ;;  %v6001_v51 = vor.u32 %v6522_v50, %v5998_v19  ;;  %v6512_v19 = vld [vmem:[#allocation3 + $0x284] sm:$0xf] }
 0x498   :  { %4255 = vmatpush.bf16.msra.mxu0 %v5745_v52  ;;  %v6448_v52 = vld [vmem:[#allocation3 + $0x84] sm:$0xf]  ;;  %v5641_v37 = vor.u32 %v6432_v20, %v5638_v14  ;;  %v6538_v20 = vld [vmem:[#allocation3 + $0x354] sm:$0xf] }
 0x499   :  { %4268 = vmatpush.bf16.msra.mxu1 %v5809_v4  ;;  %v5702_v4 = vld [vmem:[#allocation3 + $0x88] sm:$0xf0]  ;;  %v6065_v13 = vor.u32 %v6538_v20, %v6062_v49  ;;  %v6502_v14 = vld [vmem:[#allocation3 + $0x234] sm:$0xf]  ;;  %v6528_v20 = vld [vmem:[#allocation3 + $0x304] sm:$0xf] }
 0x49a   :  { %4281 = vmatpush.bf16.msra.mxu2 %v5873_v8  ;;  %v5766_v8 = vld [vmem:[#allocation3 + $0x108] sm:$0xf0]  ;;  %v5705_v11 = vor.u32 %v6448_v52, %v5702_v4  ;;  %v6500_v52 = vld [vmem:[#allocation3 + $0x224] sm:$0xf]  ;;  %v6518_v4 = vld [vmem:[#allocation3 + $0x2b4] sm:$0xf] }
 0x49b   :  { %4243 = vmatpush.bf16.msra.mxu3 %v5673_v7  ;;  %v5841_v7 = vor.u32 %v6482_v41, %v5838_v15  ;;  %v5769_v34 = vor.u32 %v6464_v5, %v5766_v8  ;;  %v5990_v41 = vld [vmem:[#allocation3 + $0x2c8] sm:$0xf0]  ;;  %v5982_v5 = vld [vmem:[#allocation3 + $0x2b8] sm:$0xf0]  ;;  %v6534_v8 = vld [vmem:[#allocation3 + $0x334] sm:$0xf] }
 0x49c   :  { %4256 = vmatpush.bf16.msra.mxu0 %v5737_v33  ;;  %v5942_v33 = vld [vmem:[#allocation3 + $0x268] sm:$0xf0] }
 0x49d   :  { %4269 = vmatpush.bf16.msra.mxu1 %v5801_v39  ;;  %v6078_v39 = vld [vmem:[#allocation3 + $0x378] sm:$0xf0]  ;;  %v5945_v2 = vor.u32 %v6508_v46, %v5942_v33  ;;  %v5985_v46 = vor.u32 %v6518_v4, %v5982_v5  ;;  %v6498_v33 = vld [vmem:[#allocation3 + $0x214] sm:$0xf]  ;;  %v6022_v49 = vld [vmem:[#allocation3 + $0x308] sm:$0xf0] }
 0x49e   :  { %4282 = vmatpush.bf16.msra.mxu2 %v5865_v44  ;;  %v5833_v44 = vor.u32 %v6480_v9, %v5830_v29  ;;  %v6081_v55 = vor.u32 %v6542_v45, %v6078_v39  ;;  %v6046_v9 = vld [vmem:[#allocation3 + $0x338] sm:$0xf0]  ;;  %v6548_v29 = vld [vmem:[#allocation3 + $0x3a4] sm:$0xf]  ;;  %v5974_v39 = vld [vmem:[#allocation3 + $0x2a8] sm:$0xf0] }
 0x49f   :  { %4244 = vmatpush.bf16.msra.mxu3 %v5665_v43  ;;  %v4001_v43 = vpack.c.b16 %v3875_v56, %v3875_v56  ;;  %v6054_v56 = vld [vmem:[#allocation3 + $0x348] sm:$0xf0]  ;;  %v6049_v23 = vor.u32 %v6534_v8, %v6046_v9  ;;  %v6516_v45 = vld [vmem:[#allocation3 + $0x2a4] sm:$0xf] }
 0x4a0   :  { %4257 = vmatpush.bf16.msra.mxu0 %v5729_v57  ;;  %v5934_v57 = vld [vmem:[#allocation3 + $0x258] sm:$0xf0]  ;;  %v6560_v5 = vld [vmem:[%s8212_s2 + $0x20] sm:$0xff] }
 0x4a1   :  { %4270 = vmatpush.bf16.msra.mxu1 %v5793_v58  ;;  %v6540_v58 = vld [vmem:[#allocation3 + $0x364] sm:$0xf]  ;;  %v4134_v60 = vsel %vm4129_vm11, %v4001_v43, 0  ;;  %v5937_v28 = vor.u32 %v6506_v63, %v5934_v57  ;;  %v6514_v57 = vld [vmem:[#allocation3 + $0x294] sm:$0xf] }
 0x4a2   :  { %4283 = vmatpush.bf16.msra.mxu2 %v5857_v0  ;;  %v6126_v0 = vld [vmem:[#allocation3 + $0x3d8] sm:$0xf0]  ;;  %v6073_v17 = vor.u32 %v6540_v58, %v6070_v59  ;;  %v6532_v43 = vld [vmem:[#allocation3 + $0x324] sm:$0xf] }
 0x4a3   :  { %4245 = vmatpush.bf16.msra.mxu3 %v5657_v62  ;;  %v6554_v62 = vld [vmem:[#allocation3 + $0x3d4] sm:$0xf]  ;;  %v5966_v58 = vld [vmem:[#allocation3 + $0x298] sm:$0xf0] }
 0x4a4   :  { %4258 = vmatpush.bf16.msra.mxu0 %v5721_v21  ;;  %v6129_v21 = vor.u32 %v6554_v62, %v6126_v0  ;;  %v6530_v62 = vld [vmem:[#allocation3 + $0x314] sm:$0xf]  ;;  %v6030_v0 = vld [vmem:[#allocation3 + $0x318] sm:$0xf0] }
 0x4a5   :  { %4271 = vmatpush.bf16.msra.mxu1 %v5785_v48  ;;  %v5926_v48 = vld [vmem:[#allocation3 + $0x248] sm:$0xf0]  ;;  %v6033_v50 = vor.u32 %v6530_v62, %v6030_v0 }
 0x4a6   :  { %4284 = vmatpush.bf16.msra.mxu2 %v5849_v12  ;;  %v6118_v12 = vld [vmem:[#allocation3 + $0x3c8] sm:$0xf0]  ;;  %v5929_v27 = vor.u32 %v6504_v6, %v5926_v48 }
 0x4a7   :  { %4246 = vmatpush.bf16.msra.mxu3 %v5649_v24  ;;  %v6552_v24 = vld [vmem:[#allocation3 + $0x3c4] sm:$0xf] }
 0x4a8   :  { %4259 = vmatpush.bf16.msra.mxu0 %v5713_v1  ;;  %v6121_v15 = vor.u32 %v6552_v24, %v6118_v12  ;;  %v6550_v1 = vld [vmem:[#allocation3 + $0x3b4] sm:$0xf]  ;;  %v6025_v12 = vor.u32 %v6528_v20, %v6022_v49 }
 0x4a9   :  { %4272 = vmatpush.bf16.msra.mxu1 %v5777_v38  ;;  %v5921_v38 = vor.u32 %v6502_v14, %v5918_v16 }
 0x4aa   :  { %4285 = vmatpush.bf16.msra.mxu2 %v5841_v7  ;;  %v5910_v7 = vld [vmem:[#allocation3 + $0x228] sm:$0xf0] }
 0x4ab   :  { %4247 = vmatpush.bf16.msra.mxu3 %v5641_v37  ;;  %v5913_v10 = vor.u32 %v6500_v52, %v5910_v7 }
 0x4ac   :  { %4260 = vmatpush.bf16.msra.mxu0 %v5705_v11 }
 0x4ad   :  { %4273 = vmatpush.bf16.msra.mxu1 %v5769_v34  ;;  %v5902_v34 = vld [vmem:[#allocation3 + $0x218] sm:$0xf0] }
 0x4ae   :  { %4286 = vmatpush.bf16.msra.mxu2 %v5833_v44  ;;  %4248 = vmatmul.bf16.vlgmr.msra.gmra.mxu3 %v8060_v26  ;;  %v6520_v26 = vld [vmem:[#allocation3 + $0x2c4] sm:$0xf]  ;;  %v6038_v44 = vld [vmem:[#allocation3 + $0x328] sm:$0xf0]  ;;  %v5905_v63 = vor.u32 %v6498_v33, %v5902_v34 }
 0x4af   :  { %4292 = vmatpush.bf16.msrb.mxu3 %v5953_v32  ;;  %4261 = vmatmul.bf16.vlgmr.msra.gmra.mxu0 %v8082_v18  ;;  %v5993_v18 = vor.u32 %v6520_v26, %v5990_v41  ;;  %v6102_v32 = vld [vmem:[#allocation3 + $0x3a8] sm:$0xf0]  ;;  %v6041_v61 = vor.u32 %v6532_v43, %v6038_v44 }
 0x4b0   :  { %4305 = vmatpush.bf16.msrb.mxu0 %v6017_v40  ;;  %4274 = vmatmul.bf16.vlgmr.msra.gmra.mxu1 %v8093_v54  ;;  %v6057_v54 = vor.u32 %v6536_v53, %v6054_v56  ;;  %v6105_v11 = vor.u32 %v6548_v29, %v6102_v32  ;;  %v6546_v40 = vld [vmem:[#allocation3 + $0x394] sm:$0xf]  ;;  %v6559_v32 = vld [vmem:[%s8212_s2 + $0x18] sm:$0xff]  ;;  %v6557_v43 = vld [vmem:[%s8212_s2 + $0x8] sm:$0xff] }
 0x4b1   :  { %4318 = vmatpush.bf16.msrb.mxu1 %v6081_v55  ;;  %4287 = vmatmul.bf16.vlgmr.msra.gmra.mxu2 %v8102_v35  ;;  %v6110_v35 = vld [vmem:[#allocation3 + $0x3b8] sm:$0xf0]  ;;  %v5977_v55 = vor.u32 %v6516_v45, %v5974_v39 }
 0x4b2   :  { %4332 = vmatpush.bf16.msrb.mxu2 %v4134_v60  ;;  %v6113_v37 = vor.u32 %v6550_v1, %v6110_v35  ;;  %v5894_v60 = vld [vmem:[#allocation3 + $0x208] sm:$0xf0] }
 0x4b3   :  { %4293 = vmatpush.bf16.msrb.mxu3 %v5945_v2  ;;  %v6094_v2 = vld [vmem:[#allocation3 + $0x398] sm:$0xf0]  ;;  %v5897_v6 = vor.u32 %v6496_v30, %v5894_v60 }
 0x4b4   :  { %4306 = vmatpush.bf16.msrb.mxu0 %v6009_v22  ;;  %v6097_v59 = vor.u32 %v6546_v40, %v6094_v2  ;;  %v6544_v22 = vld [vmem:[#allocation3 + $0x384] sm:$0xf] }
 0x4b5   :  { %4319 = vmatpush.bf16.msrb.mxu1 %v6073_v17  ;;  %v5969_v17 = vor.u32 %v6514_v57, %v5966_v58 }
 0x4b6   :  { %4333 = vmatpush.bf16.msrb.mxu2 %v6129_v21  ;;  %v5958_v21 = vld [vmem:[#allocation3 + $0x288] sm:$0xf0] }
 0x4b7   :  { %4294 = vmatpush.bf16.msrb.mxu3 %v5937_v28  ;;  %v6086_v28 = vld [vmem:[#allocation3 + $0x388] sm:$0xf0]  ;;  %v5961_v24 = vor.u32 %v6512_v19, %v5958_v21 }
 0x4b8   :  { %4307 = vmatpush.bf16.msrb.mxu0 %v6001_v51  ;;  %v6089_v48 = vor.u32 %v6544_v22, %v6086_v28 }
 0x4b9   :  { %4320 = vmatpush.bf16.msrb.mxu1 %v6065_v13 }
 0x4ba   :  { %4334 = vmatpush.bf16.msrb.mxu2 %v6121_v15  ;;  %v3499_v15 = vperm.slane %v7854_v31, 3 }
 0x4bb   :  { %4295 = vmatpush.bf16.msrb.mxu3 %v5929_v27 }
 0x4bc   :  { %4308 = vmatpush.bf16.msrb.mxu0 %v5993_v18 }
 0x4bd   :  { %4321 = vmatpush.bf16.msrb.mxu1 %v6057_v54  ;;  %v6561_v54 = vld [vmem:[%s8212_s2 + $0x28] sm:$0xff] }
 0x4be   :  { %4335 = vmatpush.bf16.msrb.mxu2 %v6113_v37 }
 0x4bf   :  { %4296 = vmatpush.bf16.msrb.mxu3 %v5921_v38 }
 0x4c0   :  { %4309 = vmatpush.bf16.msrb.mxu0 %v5985_v46 }
 0x4c1   :  { %4322 = vmatpush.bf16.msrb.mxu1 %v6049_v23 }
 0x4c2   :  { %4336 = vmatpush.bf16.msrb.mxu2 %v6105_v11 }
 0x4c3   :  { %4297 = vmatpush.bf16.msrb.mxu3 %v5913_v10  ;;  %v6558_v10 = vld [vmem:[%s8212_s2 + $0x10] sm:$0xff] }
 0x4c4   :  { %4310 = vmatpush.bf16.msrb.mxu0 %v5977_v55 }
 0x4c5   :  { %4323 = vmatpush.bf16.msrb.mxu1 %v6041_v61 }
 0x4c6   :  { %4337 = vmatpush.bf16.msrb.mxu2 %v6097_v59 }
 0x4c7   :  { %4298 = vmatpush.bf16.msrb.mxu3 %v5905_v63  ;;  %v6556_v63 = vld [vmem:[%s8212_s2] sm:$0xff] }
 0x4c8   :  { %4311 = vmatpush.bf16.msrb.mxu0 %v5969_v17 }
 0x4c9   :  { %4324 = vmatpush.bf16.msrb.mxu1 %v6033_v50 }
 0x4ca   :  { %4338 = vmatpush.bf16.msrb.mxu2 %v6089_v48 }
 0x4cb   :  { %4299 = vmatpush.bf16.msrb.mxu3 %v5897_v6 }
 0x4cc   :  { %4312 = vmatpush.bf16.msrb.mxu0 %v5961_v24 }
 0x4cd   :  { %6131 = vmatmul.msk.bf16.vlgmr.msrb.gmra.mxu2 %vm3153_vm5, %v8130_v25  ;;  %4325 = vmatpush.bf16.msrb.mxu1 %v6025_v12  ;;  %v6563_v25 = vld [vmem:[%s8212_s2 + $0x38] sm:$0xff] }
 0x4ce   :  { %4300 = vmatmul.bf16.vlgmr.msrb.gmra.mxu3 %v8113_v3  ;;  %4520 = vmatpush.bf16.msra.mxu2 %v6563_v25 }
 0x4cf   :  { %4313 = vmatmul.bf16.vlgmr.msrb.gmra.mxu0 %v8123_v42 }
 0x4d0   :  { %4326 = vmatmul.bf16.vlgmr.msrb.gmra.mxu1 %v8128_v47  ;;  %v6562_v47 = vld [vmem:[%s8212_s2 + $0x30] sm:$0xff] }
 0x4d2   :  { %4521 = vmatpush.bf16.msra.mxu2 %v6562_v47 }
 0x4d6   :  { %4522 = vmatpush.bf16.msra.mxu2 %v6561_v54 }
 0x4da   :  { %4523 = vmatpush.bf16.msra.mxu2 %v6560_v5 }
 0x4de   :  { %4524 = vmatpush.bf16.msra.mxu2 %v6559_v32 }
 0x4e2   :  { %4525 = vmatpush.bf16.msra.mxu2 %v6558_v10 }
 0x4e6   :  { %4526 = vmatpush.bf16.msra.mxu2 %v6557_v43 }
 0x4ea   :  { %4527 = vmatpush.bf16.msra.mxu2 %v6556_v63 }
 0x4ec   :  { %v4145_v51 = vpop.f32.mrf.mxu0 }
 0x4ed   :  { %v4158_v27 = vpop.f32.mrf.mxu1  ;;  %v4146_v53 = vadd.f32 %v4145_v51, %v3499_v15  ;;  %v3500_v51 = vperm.slane %v7859_v36, 3 }
 0x4ef   :  { %v4159_v56 = vadd.f32 %v4158_v27, %v4146_v53 }
 0x4f4   :  { %v4171_v13 = vpop.f32.mrf.mxu2  ;;  %v4147_v26 = vpop.f32.mrf.mxu0 }
 0x4f5   :  { %v4184_v14 = vpop.f32.mrf.mxu3  ;;  %v4160_v41 = vpop.f32.mrf.mxu1  ;;  %v4172_v1 = vadd.f32 %v4171_v13, %v4159_v56 }
 0x4f7   :  { %v4185_v42 = vadd.f32 %v4184_v14, %v4172_v1 }
 0x4fc   :  { %v4173_v16 = vpop.f32.mrf.mxu2 }
 0x4fd   :  { %v4186_v3 = vpop.f32.mrf.mxu3 }
 0x50c   :  { %v4197_v35 = vpop.f32.mrf.mxu0 }
 0x50d   :  { %v4198_v18 = vadd.f32 %v4197_v35, %v4185_v42  ;;  %v4210_v38 = vpop.f32.mrf.mxu1 }
 0x50f   :  { %v4211_v52 = vadd.f32 %v4210_v38, %v4198_v18  ;;  %v4437_v18 = vld [vmem:[%s8212_s2 + $0x60] sm:$0xf] }
 0x511   :  { %v4236_v7 = vpop.f32.mrf.mxu3 }
 0x514   :  { %v4223_v4 = vpop.f32.mrf.mxu2  ;;  %v4199_v8 = vpop.f32.mrf.mxu0 }
 0x515   :  { %v4224_v37 = vadd.f32 %v4223_v4, %v4211_v52  ;;  %v4212_v29 = vpop.f32.mrf.mxu1  ;;  %v4488_v52 = vunpack.c.l.b16 %v4437_v18 }
 0x517   :  { %v4237_v9 = vadd.f32 %v4236_v7, %v4224_v37  ;;  %v4501_v5 = vpack.c.b16 %v4488_v52, %v4488_v52 }
 0x519   :  { %v4344_v46 = vmax.f32 %v4237_v9, 0.0  ;;  %v4238_v34 = vpop.f32.mrf.mxu3  ;;  %v4518_v8 = vsel %vm4129_vm11, %v4501_v5, 0 }
 0x51a   :  { %4536 = vmatpush.bf16.msra.mxu3 %v4518_v8 }
 0x51b   :  { %v4346_v23 = vrot.slane %v4344_v46, 4  ;;  %v4362_v33 = vmul.f32 %v4344_v46, %v4344_v46 }
 0x51c   :  { %v4225_v45 = vpop.f32.mrf.mxu2 }
 0x51d   :  { %v4347_v39 = vadd.f32 %v4346_v23, %v4344_v46  ;;  %v4364_v11 = vrot.slane %v4362_v33, 4 }
 0x51f   :  { %v4348_v44 = vrot.slane %v4347_v39, 2  ;;  %v4365_v40 = vadd.f32 %v4364_v11, %v4362_v33  ;;  %v6566_v11 = vld [vmem:[%s8212_s2 + $0x50] sm:$0xff] }
 0x521   :  { %v4349_v2 = vadd.f32 %v4348_v44, %v4347_v39  ;;  %v4366_v55 = vrot.slane %v4365_v40, 2 }
 0x523   :  { %v4350_v61 = vrot.slane %v4349_v2, 1  ;;  %v4367_v30 = vadd.f32 %v4366_v55, %v4365_v40  ;;  %v6565_v55 = vld [vmem:[%s8212_s2 + $0x48] sm:$0xff] }
 0x525   :  { %v4351_v57 = vadd.f32 %v4350_v61, %v4349_v2  ;;  %v4368_v58 = vrot.slane %v4367_v30, 1 }
 0x527   :  { %v4360_v59 = vmul.f32 0.125, %v4351_v57  ;;  %v4369_v60 = vadd.f32 %v4368_v58, %v4367_v30  ;;  %v6564_v58 = vld [vmem:[%s8212_s2 + $0x40] sm:$0xff] }
 0x529   :  { %v4377_v62 = vmul.f32 0.125, %v4369_v60  ;;  %v4379_v0 = vmul.f32 %v4360_v59, %v4360_v59  ;;  %v4385_v16 = vsub.f32 %v4344_v46, %v4360_v59  ;;  %v6567_v46 = vld [vmem:[%s8212_s2 + $0x58] sm:$0xff] }
 0x52a   :  { %4537 = vmatpush.bf16.msra.mxu3 %v6567_v46 }
 0x52b   :  { %v4381_v22 = vsub.f32 %v4377_v62, %v4379_v0 }
 0x52c   :  { %v4262_v28 = vpop.f32.mrf.mxu0 }
 0x52d   :  { %v4383_v17 = vmax.f32 %v4381_v22, 0.0  ;;  %v4275_v6 = vpop.f32.mrf.mxu1 }
 0x52e   :  { %4538 = vmatpush.bf16.msra.mxu3 %v6566_v11 }
 0x52f   :  { %v4387_v50 = vadd.f32 1e-05, %v4383_v17 }
 0x531   :  { %6612 = vrsqrt.f32 %v4387_v50  ;;  %v4249_v19 = vpop.f32.mrf.mxu3  ;;  %vm4395_vm13 = vweird.f32 %v4387_v50 }
 0x532   :  { %v4250_v26 = vadd.f32 %v4249_v19, %v3500_v51  ;;  %4539 = vmatpush.bf16.msra.mxu3 %v6565_v55 }
 0x534   :  { %v4288_v21 = vpop.f32.mrf.mxu2  ;;  %v4264_v48 = vpop.f32.mrf.mxu0  ;;  %v4263_v53 = vadd.f32 %v4262_v28, %v4250_v26 }
 0x535   :  { %v4277_v20 = vpop.f32.mrf.mxu1 }
 0x536   :  { %v4276_v25 = vadd.f32 %v4275_v6, %v4263_v53  ;;  %4540 = vmatpush.bf16.msra.mxu3 %v6564_v58 }
 0x537   :  { %v6613_v49 = vpop.eup %6612 }
 0x538   :  { %v4390_v24 = vmul.f32 %v6613_v49, %v4387_v50  ;;  %vm4396_vm12 = vweird.f32 %v6613_v49  ;;  %v4289_v35 = vadd.f32 %v4288_v21, %v4276_v25 }
 0x539   :  { %v4251_v12 = vpop.f32.mrf.mxu3  ;;  %vm4397_vm14 = vmor %vm4395_vm13, %vm4396_vm12 }
 0x53a   :  { %v4391_v13 = vmul.f32 %v6613_v49, %v4390_v24 }
 0x53c   :  { %v4290_v27 = vpop.f32.mrf.mxu2  ;;  %v4392_v14 = vmul.f32 0.5, %v4391_v13 }
 0x53e   :  { %v4393_v41 = vsub.f32 1.5, %v4392_v14 }
 0x540   :  { %v4394_v15 = vmul.f32 %v6613_v49, %v4393_v41  ;;  %v4438_v41 = vperm.slane %v7854_v31, 4 }
 0x542   :  { %v4398_v3 = vsel %vm4397_vm14, %v6613_v49, %v4394_v15 }
 0x543   :  { %v4409_v56 = vmul.f32 %v4398_v3, %v4385_v16 }
 0x545   :  { %v4411_v1 = vpack.c.bf16 %v4409_v56, %v4409_v56 }
 0x547   :  { %4528 = vmatmul.bf16.vlgmr.msra.gmra.mxu2 %v4411_v1 }
 0x54c   :  { %v4314_v42 = vpop.f32.mrf.mxu0 }
 0x54d   :  { %v4327_v47 = vpop.f32.mrf.mxu1 }
 0x550   :  { %v4340_v54 = vpop.f32.mrf.mxu2 }
 0x551   :  { %v4301_v36 = vpop.f32.mrf.mxu3 }
 0x552   :  { %v4302_v38 = vadd.f32 %v4301_v36, %v4289_v35 }
 0x554   :  { %v4315_v4 = vadd.f32 %v4314_v42, %v4302_v38  ;;  %v4316_v7 = vpop.f32.mrf.mxu0 }
 0x555   :  { %v4329_v9 = vpop.f32.mrf.mxu1 }
 0x556   :  { %v4328_v37 = vadd.f32 %v4327_v47, %v4315_v4 }
 0x558   :  { %v4341_v29 = vadd.f32 %v4340_v54, %v4328_v37  ;;  %v4342_v23 = vpop.f32.mrf.mxu2 }
 0x559   :  { %v4303_v32 = vpop.f32.mrf.mxu3 }
 0x55a   :  { %v4345_v10 = vmax.f32 %v4341_v29, 0.0 }
 0x55c   :  { %v4353_v33 = vsel %vm4352_vm15, %v4345_v10, 0.0  ;;  %v4363_v45 = vmul.f32 %v4345_v10, %v4345_v10 }
 0x55d   :  { %v4354_v39 = vrot.slane %v4353_v33, 4 }
 0x55e   :  { %v4370_v34 = vsel %vm4352_vm15, %v4363_v45, 0.0 }
 0x55f   :  { %v4355_v43 = vadd.f32 %v4354_v39, %v4353_v33  ;;  %v4371_v44 = vrot.slane %v4370_v34, 4 }
 0x561   :  { %v4356_v40 = vrot.slane %v4355_v43, 2  ;;  %v4372_v2 = vadd.f32 %v4371_v44, %v4370_v34 }
 0x563   :  { %v4357_v63 = vadd.f32 %v4356_v40, %v4355_v43  ;;  %v4373_v61 = vrot.slane %v4372_v2, 2  ;;  %v4581_v40 = vperm.slane %v7854_v31, 5 }
 0x565   :  { %v4358_v30 = vrot.slane %v4357_v63, 1  ;;  %v4374_v57 = vadd.f32 %v4373_v61, %v4372_v2 }
 0x567   :  { %v4359_v59 = vadd.f32 %v4358_v30, %v4357_v63  ;;  %v4375_v60 = vrot.slane %v4374_v57, 1  ;;  %v4586_v30 = vperm.slane %v7854_v31, 6 }
 0x569   :  { %v4361_v62 = vmul.f32 0.125, %v4359_v59  ;;  %v4376_v0 = vadd.f32 %v4375_v60, %v4374_v57 }
 0x56b   :  { %v4378_v22 = vmul.f32 0.125, %v4376_v0  ;;  %v4380_v28 = vmul.f32 %v4361_v62, %v4361_v62  ;;  %v4386_v12 = vsub.f32 %v4345_v10, %v4361_v62 }
 0x56d   :  { %v4382_v17 = vsub.f32 %v4378_v22, %v4380_v28 }
 0x56f   :  { %v4384_v6 = vmax.f32 %v4382_v17, 0.0 }
 0x571   :  { %v4388_v50 = vadd.f32 1e-05, %v4384_v6 }
 0x573   :  { %6614 = vrsqrt.f32 %v4388_v50  ;;  %vm4405_vm1 = vweird.f32 %v4388_v50 }
 0x579   :  { %v6615_v19 = vpop.eup %6614 }
 0x57a   :  { %v4400_v21 = vmul.f32 %v6615_v19, %v4388_v50  ;;  %vm4406_vm0 = vweird.f32 %v6615_v19 }
 0x57b   :  { %vm4407_vm2 = vmor %vm4405_vm1, %vm4406_vm0 }
 0x57c   :  { %v4401_v48 = vmul.f32 %v6615_v19, %v4400_v21 }
 0x57e   :  { %v4402_v20 = vmul.f32 0.5, %v4401_v48 }
 0x580   :  { %v4403_v49 = vsub.f32 1.5, %v4402_v20 }
 0x582   :  { %v4404_v24 = vmul.f32 %v6615_v19, %v4403_v49 }
 0x584   :  { %v4408_v51 = vsel %vm4407_vm2, %v6615_v19, %v4404_v24 }
 0x585   :  { %v4410_v27 = vmul.f32 %v4408_v51, %v4386_v12 }
 0x587   :  { %v4412_v13 = vpack.c.bf16 %v4410_v27, %v4410_v27 }
 0x589   :  { %6180 = vmatmul.msk.bf16.vlgmr.msra.gmra.mxu3 %vm4352_vm15, %v4412_v13 }
 0x5ca   :  { %v4529_v14 = vpop.f32.mrf.mxu2 }
 0x5cb   :  { %v4530_v15 = vadd.f32 %v4529_v14, %v4438_v41 }
 0x5d2   :  { %v4531_v26 = vpop.f32.mrf.mxu2 }
 0x60c   :  { %v4542_v16 = vpop.f32.mrf.mxu3 }
 0x60d   :  { %v4543_v53 = vadd.f32 %v4542_v16, %v4530_v15 }
 0x60f   :  { %v4546_v3 = vmax.f32 %v4543_v53, 0.0 }
 0x611   :  { %v4556_v56 = vmul.f32 %v4546_v3, %v4546_v3  ;;  %v4548_v1 = vsel %vm4547_vm3, %v4546_v3, 0.0 }
 0x612   :  { %v4549_v25 = vrot.slane %v4548_v1, 4 }
 0x613   :  { %v4557_v42 = vsel %vm4547_vm3, %v4556_v56, 0.0 }
 0x614   :  { %v4544_v47 = vpop.f32.mrf.mxu3  ;;  %v4550_v35 = vadd.f32 %v4549_v25, %v4548_v1  ;;  %v4558_v36 = vrot.slane %v4557_v42, 4 }
 0x616   :  { %v4551_v18 = vrot.slane %v4550_v35, 2  ;;  %v4559_v38 = vadd.f32 %v4558_v36, %v4557_v42 }
 0x618   :  { %v4552_v54 = vadd.f32 %v4551_v18, %v4550_v35  ;;  %v4560_v52 = vrot.slane %v4559_v38, 2 }
 0x61a   :  { %v4553_v4 = vrot.slane %v4552_v54, 1  ;;  %v4561_v5 = vadd.f32 %v4560_v52, %v4559_v38 }
 0x61c   :  { %v4554_v37 = vadd.f32 %v4553_v4, %v4552_v54  ;;  %v4562_v7 = vrot.slane %v4561_v5, 1 }
 0x61e   :  { %v4555_v8 = vmul.f32 0.125, %v4554_v37  ;;  %v4563_v9 = vadd.f32 %v4562_v7, %v4561_v5 }
 0x620   :  { %v4564_v29 = vmul.f32 0.125, %v4563_v9  ;;  %v4565_v32 = vmul.f32 %v4555_v8, %v4555_v8  ;;  %v4568_v44 = vsub.f32 %v4546_v3, %v4555_v8 }
 0x622   :  { %v4566_v46 = vsub.f32 %v4564_v29, %v4565_v32 }
 0x624   :  { %v4567_v10 = vmax.f32 %v4566_v46, 0.0 }
 0x626   :  { %v4569_v23 = vadd.f32 1e-05, %v4567_v10 }
 0x628   :  { %6616 = vrsqrt.f32 %v4569_v23  ;;  %vm4576_vm6 = vweird.f32 %v4569_v23 }
 0x62e   :  { %v6617_v33 = vpop.eup %6616 }
 0x62f   :  { %v4571_v45 = vmul.f32 %v6617_v33, %v4569_v23  ;;  %vm4577_vm5 = vweird.f32 %v6617_v33 }
 0x630   :  { %vm4578_vm7 = vmor %vm4576_vm6, %vm4577_vm5 }
 0x631   :  { %v4572_v39 = vmul.f32 %v6617_v33, %v4571_v45 }
 0x633   :  { %v4573_v11 = vmul.f32 0.5, %v4572_v39 }
 0x635   :  { %v4574_v34 = vsub.f32 1.5, %v4573_v11 }
 0x637   :  { %v4575_v43 = vmul.f32 %v6617_v33, %v4574_v34 }
 0x639   :  { %v4579_v2 = vsel %vm4578_vm7, %v6617_v33, %v4575_v43 }
 0x63a   :  { %v4580_v55 = vmul.f32 %v4579_v2, %v4568_v44 }
 0x63c   :  { %v4582_v63 = vmul.f32 %v4581_v40, %v4580_v55 }
 0x63e   :  { %v4583_v61 = vsel %vm4547_vm3, %v4582_v63, 0.0 }
 0x63f   :  { %4584 = vadd.xlane.f32.xlu0 %v4583_v61 }
 0x6b2   :  { %v4585_v57 = vpop.xlane.xlu0 %4584 }
 0x6b3   :  { %v4587_v58 = vadd.f32 %v4586_v30, %v4585_v57 }
 0x6b5   :  { %v6181_v59 = vmul.f32 -1.442695, %v4587_v58 }
 0x6b7   :  { %6618 = vpow2.f32 %v6181_v59 }
 0x6bd   :  { %v6619_v60 = vpop.eup %6618 }
 0x6be   :  { %v4591_v62 = vadd.f32 1.0, %v6619_v60 }
 0x6c0   :  { %6620 = vrcp.f32 %v4591_v62  ;;  %v4603_v17 = vand.u32 2147483648, %v4591_v62  ;;  %v4601_v50 = vand.u32 2147483647, %v4591_v62  ;;  %vm4597_vm4 = vweird.f32 %v4591_v62 }
 0x6c2   :  { %v4604_v21 = vor.u32 1.1754944e-38, %v4603_v17  ;;  %vm4602_vm11 = vcmp.eq.f32.partialorder %v4601_v50, 8.507059e+37 }
 0x6c6   :  { %v6621_v0 = vpop.eup %6620 }
 0x6c7   :  { %v4593_v22 = vmul.f32 %v6621_v0, %v4591_v62  ;;  %vm4598_vm8 = vweird.f32 %v6621_v0 }
 0x6c8   :  { %vm4599_vm9 = vmor %vm4597_vm4, %vm4598_vm8 }
 0x6c9   :  { %v4594_v28 = vsub.f32 1.0, %v4593_v22 }
 0x6cb   :  { %v4595_v6 = vmul.f32 %v6621_v0, %v4594_v28 }
 0x6cd   :  { %v4596_v19 = vadd.f32 %v6621_v0, %v4595_v6 }
 0x6cf   :  { %v4600_v31 = vsel %vm4599_vm9, %v6621_v0, %v4596_v19 }
 0x6d0   :  { %v4605_v48 = vsel %vm4602_vm11, %v4604_v21, %v4600_v31 }
 0x6d1   :  { %4608 = vst.msk [vmem:[%s8215_s5] sm:$0xff] %vm4607_vm10, %v4605_v48 }
 0x6d2   :  { %4613 = vsyncmov [#allocation4] }
 0x6d5   :  { %s4614_s8 = vpop.sfrf %4613 }
 0x6d6   :  { %p6182_p0 = scmp.ne.s32.totalorder %s4614_s8, 0 }
 0x6d8   :  { %4618 = shalt.err (%p6182_p0)  }
 0x6d9   :  { %4620 = vsyncmov [#allocation4 + $0x1] }
 0x6dc   :  { %s4621_s9 = vpop.sfrf %4620 }
 0x6dd   :  { %p6183_p1 = scmp.ne.s32.totalorder %s4621_s9, 0 }
 0x6df   :  { %4625 = shalt.err (%p6183_p1)  }

</bundles_post_ra>
